<compile_context>
chip_gen: v6e
topology: v6e:2x2x1
jax: 0.10.0
libtpu: 0.0.40
codegen_flags: <defaults>
</compile_context>

<pallas_src>
import functools
import math

import jax
import jax.numpy as jnp
from jax.experimental import pallas as pl
from jax.experimental.pallas import tpu as pltpu

_VMEM_LIMIT = 48 * 1024 * 1024


def _round_up(x, m):
    return (x + m - 1) // m * m


def _pad_to(x, shape):
    pads = [(0, s - d) for d, s in zip(x.shape, shape)]
    return jnp.pad(x, pads)


# ----------------------------- LSTM layer kernel -----------------------------

def _lstm_layer_kernel(x_ref, h0_ref, c0_ref, w_ref, b_ref,
                       y_ref, hn_ref, cn_ref, *, t_chunk, t_real, hp, masked):
    chunk = pl.program_id(1)

    # hn/cn output blocks have a constant block index along the chunk axis, so
    # they stay resident in VMEM and carry the recurrent state across chunks.
    @pl.when(chunk == 0)
    def _():
        hn_ref[...] = h0_ref[...]
        cn_ref[...] = c0_ref[...]

    def step(t, carry):
        h, c = carry                               # f32 (Bblk, Hp)
        x_t = x_ref[t]                             # bf16 (Bblk, Fp)
        xh = jnp.concatenate([x_t, h.astype(x_t.dtype)], axis=-1)
        gates = (jnp.dot(xh, w_ref[...], preferred_element_type=jnp.float32)
                 + b_ref[...])                     # f32 (Bblk, 4*Hp), i,f,g,o
        i_g = jax.nn.sigmoid(gates[:, 0 * hp:1 * hp])
        f_g = jax.nn.sigmoid(gates[:, 1 * hp:2 * hp])
        g_g = jnp.tanh(gates[:, 2 * hp:3 * hp])
        o_g = jax.nn.sigmoid(gates[:, 3 * hp:4 * hp])
        c_new = f_g * c + i_g * g_g
        h_new = o_g * jnp.tanh(c_new)
        if masked:                                  # only when T padded
            valid = (chunk * t_chunk + t) < t_real
            h_new = jnp.where(valid, h_new, h)
            c_new = jnp.where(valid, c_new, c)
        y_ref[t] = h_new.astype(y_ref.dtype)
        return h_new, c_new

    h_fin, c_fin = jax.lax.fori_loop(0, t_chunk, step,
                                     (hn_ref[...], cn_ref[...]),
                                     unroll=t_chunk <= 8)
    hn_ref[...] = h_fin
    cn_ref[...] = c_fin


def lstm_layer(x, h0, c0, w, b, *, t_real, t_chunk, b_blk):
    """x: (T_pad, Bp, Fp) bf16; h0/c0: (Bp, Hp) f32; w: (Fp+Hp, 4Hp) bf16;
    b: (1, 4Hp) f32. Returns y (T_pad, Bp, Hp) bf16, h_n, c_n (Bp, Hp) f32."""
    t_pad, bp, fp = x.shape
    hp = h0.shape[-1]
    n_chunks = t_pad // t_chunk
    n_b = bp // b_blk
    masked = (t_pad != t_real)

    kernel = functools.partial(_lstm_layer_kernel, t_chunk=t_chunk,
                               t_real=t_real, hp=hp, masked=masked)
    return pl.pallas_call(
        kernel,
        out_shape=(jax.ShapeDtypeStruct((t_pad, bp, hp), jnp.bfloat16),
                   jax.ShapeDtypeStruct((bp, hp), jnp.float32),
                   jax.ShapeDtypeStruct((bp, hp), jnp.float32)),
        grid_spec=pltpu.PrefetchScalarGridSpec(
            num_scalar_prefetch=0,
            grid=(n_b, n_chunks),
            in_specs=[
                pl.BlockSpec((t_chunk, b_blk, fp), lambda nb, nc: (nc, nb, 0)),
                pl.BlockSpec((b_blk, hp), lambda nb, nc: (nb, 0)),
                pl.BlockSpec((b_blk, hp), lambda nb, nc: (nb, 0)),
                pl.BlockSpec((fp + hp, 4 * hp), lambda nb, nc: (0, 0)),
                pl.BlockSpec((1, 4 * hp), lambda nb, nc: (0, 0)),
            ],
            out_specs=(
                pl.BlockSpec((t_chunk, b_blk, hp), lambda nb, nc: (nc, nb, 0)),
                pl.BlockSpec((b_blk, hp), lambda nb, nc: (nb, 0)),
                pl.BlockSpec((b_blk, hp), lambda nb, nc: (nb, 0)),
            ),
        ),
        compiler_params=pltpu.CompilerParams(
            dimension_semantics=("parallel", "arbitrary"),
            vmem_limit_bytes=_VMEM_LIMIT),
    )(x, h0, c0, w, b)


# ------------------------ decoder (tiled log_softmax) ------------------------

def _dec_logits_kernel(x_ref, w_ref, b_ref, logits_ref, lse_ref, m_sc, l_sc):
    j = pl.program_id(1)

    @pl.when(j == 0)
    def _():
        m_sc[...] = jnp.full_like(m_sc, -jnp.inf)
        l_sc[...] = jnp.zeros_like(l_sc)

    logits = (jnp.dot(x_ref[...], w_ref[...],
                      preferred_element_type=jnp.float32) + b_ref[...])
    logits_ref[...] = logits

    m_prev = m_sc[...]
    m_new = jnp.maximum(m_prev, jnp.max(logits, axis=-1, keepdims=True))
    l_sc[...] = (l_sc[...] * jnp.exp(m_prev - m_new)
                 + jnp.sum(jnp.exp(logits - m_new), axis=-1, keepdims=True))
    m_sc[...] = m_new

    @pl.when(j == pl.num_programs(1) - 1)
    def _():
        lse_ref[...] = m_sc[...] + jnp.log(l_sc[...])


def _dec_sub_kernel(logits_ref, lse_ref, out_ref):
    out_ref[...] = logits_ref[...] - lse_ref[...]


def decoder_log_softmax(x, w, b, *, tile_n, tile_v):
    """x: (Np, Hp) bf16; w: (Hp, Vp) bf16; b: (1, Vp) f32 (pad cols = -1e30).
    Returns log_softmax(x @ w + b) as (Np, Vp) f32."""
    np_, hp = x.shape
    vp = w.shape[1]
    n_n = np_ // tile_n
    n_v = vp // tile_v

    logits, lse = pl.pallas_call(
        _dec_logits_kernel,
        out_shape=(jax.ShapeDtypeStruct((np_, vp), jnp.float32),
                   jax.ShapeDtypeStruct((np_, 1), jnp.float32)),
        grid_spec=pltpu.PrefetchScalarGridSpec(
            num_scalar_prefetch=0,
            grid=(n_n, n_v),
            in_specs=[
                pl.BlockSpec((tile_n, hp), lambda i, j: (i, 0)),
                pl.BlockSpec((hp, tile_v), lambda i, j: (0, j)),
                pl.BlockSpec((1, tile_v), lambda i, j: (0, j)),
            ],
            out_specs=(
                pl.BlockSpec((tile_n, tile_v), lambda i, j: (i, j)),
                pl.BlockSpec((tile_n, 1), lambda i, j: (i, 0)),
            ),
            scratch_shapes=[pltpu.VMEM((tile_n, 1), jnp.float32),
                            pltpu.VMEM((tile_n, 1), jnp.float32)],
        ),
        compiler_params=pltpu.CompilerParams(
            dimension_semantics=("parallel", "arbitrary"),
            vmem_limit_bytes=_VMEM_LIMIT),
    )(x, w, b)

    return pl.pallas_call(
        _dec_sub_kernel,
        out_shape=jax.ShapeDtypeStruct((np_, vp), jnp.float32),
        grid_spec=pltpu.PrefetchScalarGridSpec(
            num_scalar_prefetch=0,
            grid=(n_n, n_v),
            in_specs=[
                pl.BlockSpec((tile_n, tile_v), lambda i, j: (i, j)),
                pl.BlockSpec((tile_n, 1), lambda i, j: (i, 0)),
            ],
            out_specs=pl.BlockSpec((tile_n, tile_v), lambda i, j: (i, j)),
        ),
        compiler_params=pltpu.CompilerParams(
            dimension_semantics=("parallel", "parallel"),
            vmem_limit_bytes=_VMEM_LIMIT),
    )(logits, lse)


# ------------------------------- parameters ----------------------------------

def init_params(key, ntoken, ninp, nhid, nlayers):
    keys = jax.random.split(key, 3 + 4 * nlayers)
    initrange = 0.1
    bound = 1.0 / math.sqrt(nhid)
    params = {
        "encoder": jax.random.uniform(keys[0], (ntoken, ninp), jnp.float32,
                                      -initrange, initrange),
        "decoder_w": jax.random.uniform(keys[1], (ntoken, nhid), jnp.float32,
                                        -initrange, initrange),
        "decoder_b": jax.random.uniform(keys[2], (ntoken,), jnp.float32,
                                        -bound, bound),
    }
    layers = []
    k = 3
    for layer in range(nlayers):
        in_f = ninp if layer == 0 else nhid
        w_ih = jax.random.uniform(keys[k], (4 * nhid, in_f), jnp.float32, -bound, bound); k += 1
        w_hh = jax.random.uniform(keys[k], (4 * nhid, nhid), jnp.float32, -bound, bound); k += 1
        b_ih = jax.random.uniform(keys[k], (4 * nhid,), jnp.float32, -bound, bound); k += 1
        b_hh = jax.random.uniform(keys[k], (4 * nhid,), jnp.float32, -bound, bound); k += 1
        layers.append((w_ih, w_hh, b_ih, b_hh))
    params["lstm"] = layers
    return params


def prepare_params(params, *, ninp, nhid, ntoken):
    """One-time prep: transpose, fuse [W_ih^T; W_hh^T], fuse biases, pad to
    lane-aligned shapes, cast weights to bf16."""
    hp = _round_up(nhid, 128)
    prep = {"encoder": params["encoder"], "nhid": nhid, "ninp": ninp,
            "ntoken": ntoken, "Hp": hp}

    layers = []
    for (w_ih, w_hh, b_ih, b_hh) in params["lstm"]:
        f_in = w_ih.shape[1]
        fp = _round_up(f_in, 128)
        w = jnp.zeros((fp + hp, 4 * hp), jnp.float32)
        b = jnp.zeros((1, 4 * hp), jnp.float32)
        w_ih_t = w_ih.T                      # (f_in, 4*nhid) gate order i,f,g,o
        w_hh_t = w_hh.T                      # (nhid, 4*nhid)
        bias = b_ih + b_hh
        for g in range(4):
            w = w.at[:f_in, g * hp:g * hp + nhid].set(
                w_ih_t[:, g * nhid:(g + 1) * nhid])
            w = w.at[fp:fp + nhid, g * hp:g * hp + nhid].set(
                w_hh_t[:, g * nhid:(g + 1) * nhid])
            b = b.at[0, g * hp:g * hp + nhid].set(bias[g * nhid:(g + 1) * nhid])
        layers.append({"w": w.astype(jnp.bfloat16), "b": b, "fp": fp})
    prep["lstm"] = layers

    v128 = _round_up(ntoken, 128)
    tile_v = 512 if v128 >= 512 else v128
    vp = _round_up(ntoken, tile_v)
    dec_w = jnp.zeros((hp, vp), jnp.float32)
    dec_w = dec_w.at[:nhid, :ntoken].set(params["decoder_w"].T)
    dec_b = jnp.full((1, vp), -1e30, jnp.float32)      # mask pad vocab columns
    dec_b = dec_b.at[0, :ntoken].set(params["decoder_b"])
    prep["dec_w"] = dec_w.astype(jnp.bfloat16)
    prep["dec_b"] = dec_b
    prep["tile_v"] = tile_v
    return prep


# ------------------------------ model forward --------------------------------

def rnn_model_forward(prep, tokens, hidden):
    """tokens: (T, B) int32; hidden: (h0, c0), each (nlayers, B, nhid)."""
    h0_all, c0_all = hidden
    T, B = tokens.shape
    nhid, ntoken, hp = prep["nhid"], prep["ntoken"], prep["Hp"]

    t_chunk = min(T, 32)
    n_chunks = -(-T // t_chunk)
    t_pad = n_chunks * t_chunk
    bp = _round_up(B, 16)
    if bp > 128:
        bp = _round_up(B, 128)
        b_blk = 128
    else:
        b_blk = bp

    # Embedding gather (glue, plain JAX). Dropout == identity (eval mode).
    x = jnp.take(prep["encoder"], tokens, axis=0)            # (T, B, ninp) f32
    fp0 = prep["lstm"][0]["fp"]
    x = _pad_to(x, (t_pad, bp, fp0)).astype(jnp.bfloat16)

    h_n, c_n = [], []
    for layer, lp in enumerate(prep["lstm"]):
        h0p = _pad_to(h0_all[layer], (bp, hp))
        c0p = _pad_to(c0_all[layer], (bp, hp))
        x, hl, cl = lstm_layer(x, h0p, c0p, lp["w"], lp["b"],
                               t_real=T, t_chunk=t_chunk, b_blk=b_blk)
        h_n.append(hl[:B, :nhid])
        c_n.append(cl[:B, :nhid])

    # Decoder + log_softmax (tiled).
    N = T * B
    dec_in = x[:T, :B, :].reshape(N, hp)                     # bf16 (N, Hp)
    tile_n = 128 if N >= 128 else _round_up(N, 16)
    np_ = _round_up(N, tile_n)
    dec_in = _pad_to(dec_in, (np_, hp))
    log_probs = decoder_log_softmax(dec_in, prep["dec_w"], prep["dec_b"],
                                    tile_n=tile_n, tile_v=prep["tile_v"])
    log_probs = log_probs[:N, :ntoken]
    return log_probs, (jnp.stack(h_n), jnp.stack(c_n))


# ---------------------------- pure-JAX reference -----------------------------

def _reference_forward(params, tokens, hidden):
    h0_all, c0_all = hidden
    x = jnp.take(params["encoder"], tokens, axis=0)
    h_n, c_n = [], []
    for layer, (w_ih, w_hh, b_ih, b_hh) in enumerate(params["lstm"]):
        H = w_hh.shape[1]

        def step(carry, xt, w_ih=w_ih, w_hh=w_hh, b_ih=b_ih, b_hh=b_hh, H=H):
            h, c = carry
            g = xt @ w_ih.T + h @ w_hh.T + b_ih + b_hh
            i = jax.nn.sigmoid(g[:, :H])
            f = jax.nn.sigmoid(g[:, H:2 * H])
            gg = jnp.tanh(g[:, 2 * H:3 * H])
            o = jax.nn.sigmoid(g[:, 3 * H:])
            c = f * c + i * gg
            h = o * jnp.tanh(c)
            return (h, c), h

        (hl, cl), ys = jax.lax.scan(step, (h0_all[layer], c0_all[layer]), x)
        x = ys
        h_n.append(hl)
        c_n.append(cl)
    out = x.reshape(-1, x.shape[-1])
    logits = out @ params["decoder_w"].T + params["decoder_b"]
    return jax.nn.log_softmax(logits, axis=1), (jnp.stack(h_n), jnp.stack(c_n))


# ----------------------------------- main -------------------------------------

if __name__ == "__main__":
    ntoken, ninp, nhid, nlayers = 128, 32, 32, 2
    T, B = 8, 4

    key = jax.random.PRNGKey(0)
    k_param, k_tok = jax.random.split(key)
    params = init_params(k_param, ntoken, ninp, nhid, nlayers)
    prep = prepare_params(params, ninp=ninp, nhid=nhid, ntoken=ntoken)

    tokens = jax.random.randint(k_tok, (T, B), 0, ntoken, dtype=jnp.int32)
    hidden = (jnp.zeros((nlayers, B, nhid), jnp.float32),
              jnp.zeros((nlayers, B, nhid), jnp.float32))

    log_probs, (h_n, c_n) = jax.block_until_ready(
        rnn_model_forward(prep, tokens, hidden))

    assert log_probs.shape == (T * B, ntoken)
    assert h_n.shape == (nlayers, B, nhid) and c_n.shape == (nlayers, B, nhid)

    ref_lp, (ref_h, ref_c) = _reference_forward(params, tokens, hidden)
    assert jnp.allclose(log_probs, ref_lp, atol=2e-2, rtol=2e-2)
    assert jnp.allclose(h_n, ref_h, atol=2e-2, rtol=2e-2)
    assert jnp.allclose(c_n, ref_c, atol=2e-2, rtol=2e-2)

    print("KERNEL_OK")
</pallas_src>

<mosaic_0001>
module attributes {stable_mosaic.version = 11 : i64} {
  func.func @_lstm_layer_kernel(%arg0: i32, %arg1: i32, %arg2: memref<8x16x128xbf16, #tpu.memory_space<vmem>>, %arg3: memref<16x128xf32, #tpu.memory_space<vmem>>, %arg4: memref<16x128xf32, #tpu.memory_space<vmem>>, %arg5: memref<256x512xbf16, #tpu.memory_space<vmem>>, %arg6: memref<1x512xf32, #tpu.memory_space<vmem>>, %arg7: memref<8x16x128xbf16, #tpu.memory_space<vmem>>, %arg8: memref<16x128xf32, #tpu.memory_space<vmem>>, %arg9: memref<16x128xf32, #tpu.memory_space<vmem>>) attributes {dimension_semantics = [#tpu.dimension_semantics<parallel>, #tpu.dimension_semantics<arbitrary>], iteration_bounds = array<i64: 1, 1>, scalar_prefetch = 0 : i64, scratch_operands = 0 : i64, tpu.core_type = #tpu.core_type<tc>, window_params = [{transform_indices = @transform_0, window_bounds = array<i64: 8, 16, 128>}, {transform_indices = @transform_1, window_bounds = array<i64: 16, 128>}, {transform_indices = @transform_2, window_bounds = array<i64: 16, 128>}, {pipeline_mode = #tpu.pipeline_mode<synchronous>, transform_indices = @transform_3, window_bounds = array<i64: 256, 512>}, {pipeline_mode = #tpu.pipeline_mode<synchronous>, transform_indices = @transform_4, window_bounds = array<i64: 1, 512>}, {transform_indices = @transform_5, window_bounds = array<i64: 8, 16, 128>}, {transform_indices = @transform_6, window_bounds = array<i64: 16, 128>}, {transform_indices = @transform_7, window_bounds = array<i64: 16, 128>}]} {
    %c0_i32 = arith.constant 0 : i32
    %0 = arith.cmpi eq, %arg1, %c0_i32 : i32
    %1 = arith.extui %0 : i1 to i32
    %c0_i32_0 = arith.constant 0 : i32
    %2 = arith.cmpi ne, %1, %c0_i32_0 : i32
    scf.if %2 {
      %c0_104 = arith.constant 0 : index
      %c0_105 = arith.constant 0 : index
      %327 = vector.load %arg3[%c0_104, %c0_105] : memref<16x128xf32, #tpu.memory_space<vmem>>, vector<16x128xf32>
      %c0_106 = arith.constant 0 : index
      %c0_107 = arith.constant 0 : index
      %328 = vector.load %arg8[%c0_106, %c0_107] : memref<16x128xf32, #tpu.memory_space<vmem>>, vector<16x128xf32>
      tpu.vector_store %arg8[%c0_106, %c0_107], %327 {strides = array<i32>} : memref<16x128xf32, #tpu.memory_space<vmem>>, vector<16x128xf32>,
      %c0_108 = arith.constant 0 : index
      %c0_109 = arith.constant 0 : index
      %329 = vector.load %arg4[%c0_108, %c0_109] : memref<16x128xf32, #tpu.memory_space<vmem>>, vector<16x128xf32>
      %c0_110 = arith.constant 0 : index
      %c0_111 = arith.constant 0 : index
      %330 = vector.load %arg9[%c0_110, %c0_111] : memref<16x128xf32, #tpu.memory_space<vmem>>, vector<16x128xf32>
      tpu.vector_store %arg9[%c0_110, %c0_111], %329 {strides = array<i32>} : memref<16x128xf32, #tpu.memory_space<vmem>>, vector<16x128xf32>,
    } else {
    }
    %c0 = arith.constant 0 : index
    %c0_1 = arith.constant 0 : index
    %3 = vector.load %arg8[%c0, %c0_1] : memref<16x128xf32, #tpu.memory_space<vmem>>, vector<16x128xf32>
    %c0_2 = arith.constant 0 : index
    %c0_3 = arith.constant 0 : index
    %4 = vector.load %arg9[%c0_2, %c0_3] : memref<16x128xf32, #tpu.memory_space<vmem>>, vector<16x128xf32>
    %c0_i32_4 = arith.constant 0 : i32
    %5 = arith.index_cast %c0_i32_4 : i32 to index
    %c0_5 = arith.constant 0 : index
    %c0_6 = arith.constant 0 : index
    %6 = vector.load %arg2[%5, %c0_5, %c0_6] : memref<8x16x128xbf16, #tpu.memory_space<vmem>>, vector<1x16x128xbf16>
    %7 = vector.shape_cast %6 : vector<1x16x128xbf16> to vector<16x128xbf16>
    %8 = arith.truncf %3 : vector<16x128xf32> to vector<16x128xbf16>
    %9 = tpu.concatenate %7, %8 in 1 : vector<16x128xbf16>, vector<16x128xbf16> -> vector<16x256xbf16>
    %c0_7 = arith.constant 0 : index
    %c0_8 = arith.constant 0 : index
    %10 = vector.load %arg5[%c0_7, %c0_8] : memref<256x512xbf16, #tpu.memory_space<vmem>>, vector<256x512xbf16>
    %cst = arith.constant dense<0.000000e+00> : vector<16x512xf32>
    %11 = tpu.matmul %9, %10, %cst {dimension_numbers = #tpu.dot_dimension_numbers<[1], [0], [0], [1], [0, 0, 1, 1], [], []>} : vector<16x256xbf16>, vector<256x512xbf16>, vector<16x512xf32> -> vector<16x512xf32>
    %c0_9 = arith.constant 0 : index
    %c0_10 = arith.constant 0 : index
    %12 = vector.load %arg6[%c0_9, %c0_10] : memref<1x512xf32, #tpu.memory_space<vmem>>, vector<1x512xf32>
    %13 = vector.broadcast %12 : vector<1x512xf32> to vector<16x512xf32>
    %14 = arith.addf %11, %13 : vector<16x512xf32>
    %15 = vector.extract_strided_slice %14 {offsets = [0, 0], sizes = [16, 128], strides = [1, 1]} : vector<16x512xf32> to vector<16x128xf32>
    %16 = arith.negf %15 : vector<16x128xf32>
    %17 = math.exp %16 : vector<16x128xf32>
    %cst_11 = arith.constant 1.000000e+00 : f32
    %18 = vector.broadcast %cst_11 : f32 to vector<16x128xf32>
    %19 = arith.addf %18, %17 : vector<16x128xf32>
    %20 = arith.divf %18, %19 : vector<16x128xf32>
    %21 = vector.extract_strided_slice %14 {offsets = [0, 128], sizes = [16, 128], strides = [1, 1]} : vector<16x512xf32> to vector<16x128xf32>
    %22 = arith.negf %21 : vector<16x128xf32>
    %23 = math.exp %22 : vector<16x128xf32>
    %cst_12 = arith.constant 1.000000e+00 : f32
    %24 = vector.broadcast %cst_12 : f32 to vector<16x128xf32>
    %25 = arith.addf %24, %23 : vector<16x128xf32>
    %26 = arith.divf %24, %25 : vector<16x128xf32>
    %27 = vector.extract_strided_slice %14 {offsets = [0, 256], sizes = [16, 128], strides = [1, 1]} : vector<16x512xf32> to vector<16x128xf32>
    %28 = math.tanh %27 : vector<16x128xf32>
    %29 = vector.extract_strided_slice %14 {offsets = [0, 384], sizes = [16, 128], strides = [1, 1]} : vector<16x512xf32> to vector<16x128xf32>
    %30 = arith.negf %29 : vector<16x128xf32>
    %31 = math.exp %30 : vector<16x128xf32>
    %cst_13 = arith.constant 1.000000e+00 : f32
    %32 = vector.broadcast %cst_13 : f32 to vector<16x128xf32>
    %33 = arith.addf %32, %31 : vector<16x128xf32>
    %34 = arith.divf %32, %33 : vector<16x128xf32>
    %35 = arith.mulf %26, %4 : vector<16x128xf32>
    %36 = arith.mulf %20, %28 : vector<16x128xf32>
    %37 = arith.addf %35, %36 : vector<16x128xf32>
    %38 = math.tanh %37 : vector<16x128xf32>
    %39 = arith.mulf %34, %38 : vector<16x128xf32>
    %40 = arith.truncf %39 : vector<16x128xf32> to vector<16x128xbf16>
    %41 = arith.index_cast %c0_i32_4 : i32 to index
    %c0_14 = arith.constant 0 : index
    %c0_15 = arith.constant 0 : index
    %42 = vector.load %arg7[%41, %c0_14, %c0_15] : memref<8x16x128xbf16, #tpu.memory_space<vmem>>, vector<1x16x128xbf16>
    %43 = vector.shape_cast %42 : vector<1x16x128xbf16> to vector<16x128xbf16>
    %44 = vector.shape_cast %40 : vector<16x128xbf16> to vector<1x16x128xbf16>
    tpu.vector_store %arg7[%41, %c0_14, %c0_15], %44 {strides = array<i32>} : memref<8x16x128xbf16, #tpu.memory_space<vmem>>, vector<1x16x128xbf16>,
    %c1_i32 = arith.constant 1 : i32
    %45 = arith.index_cast %c1_i32 : i32 to index
    %c0_16 = arith.constant 0 : index
    %c0_17 = arith.constant 0 : index
    %46 = vector.load %arg2[%45, %c0_16, %c0_17] : memref<8x16x128xbf16, #tpu.memory_space<vmem>>, vector<1x16x128xbf16>
    %47 = vector.shape_cast %46 : vector<1x16x128xbf16> to vector<16x128xbf16>
    %48 = arith.truncf %39 : vector<16x128xf32> to vector<16x128xbf16>
    %49 = tpu.concatenate %47, %48 in 1 : vector<16x128xbf16>, vector<16x128xbf16> -> vector<16x256xbf16>
    %c0_18 = arith.constant 0 : index
    %c0_19 = arith.constant 0 : index
    %50 = vector.load %arg5[%c0_18, %c0_19] : memref<256x512xbf16, #tpu.memory_space<vmem>>, vector<256x512xbf16>
    %cst_20 = arith.constant dense<0.000000e+00> : vector<16x512xf32>
    %51 = tpu.matmul %49, %50, %cst_20 {dimension_numbers = #tpu.dot_dimension_numbers<[1], [0], [0], [1], [0, 0, 1, 1], [], []>} : vector<16x256xbf16>, vector<256x512xbf16>, vector<16x512xf32> -> vector<16x512xf32>
    %c0_21 = arith.constant 0 : index
    %c0_22 = arith.constant 0 : index
    %52 = vector.load %arg6[%c0_21, %c0_22] : memref<1x512xf32, #tpu.memory_space<vmem>>, vector<1x512xf32>
    %53 = vector.broadcast %52 : vector<1x512xf32> to vector<16x512xf32>
    %54 = arith.addf %51, %53 : vector<16x512xf32>
    %55 = vector.extract_strided_slice %54 {offsets = [0, 0], sizes = [16, 128], strides = [1, 1]} : vector<16x512xf32> to vector<16x128xf32>
    %56 = arith.negf %55 : vector<16x128xf32>
    %57 = math.exp %56 : vector<16x128xf32>
    %cst_23 = arith.constant 1.000000e+00 : f32
    %58 = vector.broadcast %cst_23 : f32 to vector<16x128xf32>
    %59 = arith.addf %58, %57 : vector<16x128xf32>
    %60 = arith.divf %58, %59 : vector<16x128xf32>
    %61 = vector.extract_strided_slice %54 {offsets = [0, 128], sizes = [16, 128], strides = [1, 1]} : vector<16x512xf32> to vector<16x128xf32>
    %62 = arith.negf %61 : vector<16x128xf32>
    %63 = math.exp %62 : vector<16x128xf32>
    %cst_24 = arith.constant 1.000000e+00 : f32
    %64 = vector.broadcast %cst_24 : f32 to vector<16x128xf32>
    %65 = arith.addf %64, %63 : vector<16x128xf32>
    %66 = arith.divf %64, %65 : vector<16x128xf32>
    %67 = vector.extract_strided_slice %54 {offsets = [0, 256], sizes = [16, 128], strides = [1, 1]} : vector<16x512xf32> to vector<16x128xf32>
    %68 = math.tanh %67 : vector<16x128xf32>
    %69 = vector.extract_strided_slice %54 {offsets = [0, 384], sizes = [16, 128], strides = [1, 1]} : vector<16x512xf32> to vector<16x128xf32>
    %70 = arith.negf %69 : vector<16x128xf32>
    %71 = math.exp %70 : vector<16x128xf32>
    %cst_25 = arith.constant 1.000000e+00 : f32
    %72 = vector.broadcast %cst_25 : f32 to vector<16x128xf32>
    %73 = arith.addf %72, %71 : vector<16x128xf32>
    %74 = arith.divf %72, %73 : vector<16x128xf32>
    %75 = arith.mulf %66, %37 : vector<16x128xf32>
    %76 = arith.mulf %60, %68 : vector<16x128xf32>
    %77 = arith.addf %75, %76 : vector<16x128xf32>
    %78 = math.tanh %77 : vector<16x128xf32>
    %79 = arith.mulf %74, %78 : vector<16x128xf32>
    %80 = arith.truncf %79 : vector<16x128xf32> to vector<16x128xbf16>
    %81 = arith.index_cast %c1_i32 : i32 to index
    %c0_26 = arith.constant 0 : index
    %c0_27 = arith.constant 0 : index
    %82 = vector.load %arg7[%81, %c0_26, %c0_27] : memref<8x16x128xbf16, #tpu.memory_space<vmem>>, vector<1x16x128xbf16>
    %83 = vector.shape_cast %82 : vector<1x16x128xbf16> to vector<16x128xbf16>
    %84 = vector.shape_cast %80 : vector<16x128xbf16> to vector<1x16x128xbf16>
    tpu.vector_store %arg7[%81, %c0_26, %c0_27], %84 {strides = array<i32>} : memref<8x16x128xbf16, #tpu.memory_space<vmem>>, vector<1x16x128xbf16>,
    %c2_i32 = arith.constant 2 : i32
    %85 = arith.index_cast %c2_i32 : i32 to index
    %c0_28 = arith.constant 0 : index
    %c0_29 = arith.constant 0 : index
    %86 = vector.load %arg2[%85, %c0_28, %c0_29] : memref<8x16x128xbf16, #tpu.memory_space<vmem>>, vector<1x16x128xbf16>
    %87 = vector.shape_cast %86 : vector<1x16x128xbf16> to vector<16x128xbf16>
    %88 = arith.truncf %79 : vector<16x128xf32> to vector<16x128xbf16>
    %89 = tpu.concatenate %87, %88 in 1 : vector<16x128xbf16>, vector<16x128xbf16> -> vector<16x256xbf16>
    %c0_30 = arith.constant 0 : index
    %c0_31 = arith.constant 0 : index
    %90 = vector.load %arg5[%c0_30, %c0_31] : memref<256x512xbf16, #tpu.memory_space<vmem>>, vector<256x512xbf16>
    %cst_32 = arith.constant dense<0.000000e+00> : vector<16x512xf32>
    %91 = tpu.matmul %89, %90, %cst_32 {dimension_numbers = #tpu.dot_dimension_numbers<[1], [0], [0], [1], [0, 0, 1, 1], [], []>} : vector<16x256xbf16>, vector<256x512xbf16>, vector<16x512xf32> -> vector<16x512xf32>
    %c0_33 = arith.constant 0 : index
    %c0_34 = arith.constant 0 : index
    %92 = vector.load %arg6[%c0_33, %c0_34] : memref<1x512xf32, #tpu.memory_space<vmem>>, vector<1x512xf32>
    %93 = vector.broadcast %92 : vector<1x512xf32> to vector<16x512xf32>
    %94 = arith.addf %91, %93 : vector<16x512xf32>
    %95 = vector.extract_strided_slice %94 {offsets = [0, 0], sizes = [16, 128], strides = [1, 1]} : vector<16x512xf32> to vector<16x128xf32>
    %96 = arith.negf %95 : vector<16x128xf32>
    %97 = math.exp %96 : vector<16x128xf32>
    %cst_35 = arith.constant 1.000000e+00 : f32
    %98 = vector.broadcast %cst_35 : f32 to vector<16x128xf32>
    %99 = arith.addf %98, %97 : vector<16x128xf32>
    %100 = arith.divf %98, %99 : vector<16x128xf32>
    %101 = vector.extract_strided_slice %94 {offsets = [0, 128], sizes = [16, 128], strides = [1, 1]} : vector<16x512xf32> to vector<16x128xf32>
    %102 = arith.negf %101 : vector<16x128xf32>
    %103 = math.exp %102 : vector<16x128xf32>
    %cst_36 = arith.constant 1.000000e+00 : f32
    %104 = vector.broadcast %cst_36 : f32 to vector<16x128xf32>
    %105 = arith.addf %104, %103 : vector<16x128xf32>
    %106 = arith.divf %104, %105 : vector<16x128xf32>
    %107 = vector.extract_strided_slice %94 {offsets = [0, 256], sizes = [16, 128], strides = [1, 1]} : vector<16x512xf32> to vector<16x128xf32>
    %108 = math.tanh %107 : vector<16x128xf32>
    %109 = vector.extract_strided_slice %94 {offsets = [0, 384], sizes = [16, 128], strides = [1, 1]} : vector<16x512xf32> to vector<16x128xf32>
    %110 = arith.negf %109 : vector<16x128xf32>
    %111 = math.exp %110 : vector<16x128xf32>
    %cst_37 = arith.constant 1.000000e+00 : f32
    %112 = vector.broadcast %cst_37 : f32 to vector<16x128xf32>
    %113 = arith.addf %112, %111 : vector<16x128xf32>
    %114 = arith.divf %112, %113 : vector<16x128xf32>
    %115 = arith.mulf %106, %77 : vector<16x128xf32>
    %116 = arith.mulf %100, %108 : vector<16x128xf32>
    %117 = arith.addf %115, %116 : vector<16x128xf32>
    %118 = math.tanh %117 : vector<16x128xf32>
    %119 = arith.mulf %114, %118 : vector<16x128xf32>
    %120 = arith.truncf %119 : vector<16x128xf32> to vector<16x128xbf16>
    %121 = arith.index_cast %c2_i32 : i32 to index
    %c0_38 = arith.constant 0 : index
    %c0_39 = arith.constant 0 : index
    %122 = vector.load %arg7[%121, %c0_38, %c0_39] : memref<8x16x128xbf16, #tpu.memory_space<vmem>>, vector<1x16x128xbf16>
    %123 = vector.shape_cast %122 : vector<1x16x128xbf16> to vector<16x128xbf16>
    %124 = vector.shape_cast %120 : vector<16x128xbf16> to vector<1x16x128xbf16>
    tpu.vector_store %arg7[%121, %c0_38, %c0_39], %124 {strides = array<i32>} : memref<8x16x128xbf16, #tpu.memory_space<vmem>>, vector<1x16x128xbf16>,
    %c3_i32 = arith.constant 3 : i32
    %125 = arith.index_cast %c3_i32 : i32 to index
    %c0_40 = arith.constant 0 : index
    %c0_41 = arith.constant 0 : index
    %126 = vector.load %arg2[%125, %c0_40, %c0_41] : memref<8x16x128xbf16, #tpu.memory_space<vmem>>, vector<1x16x128xbf16>
    %127 = vector.shape_cast %126 : vector<1x16x128xbf16> to vector<16x128xbf16>
    %128 = arith.truncf %119 : vector<16x128xf32> to vector<16x128xbf16>
    %129 = tpu.concatenate %127, %128 in 1 : vector<16x128xbf16>, vector<16x128xbf16> -> vector<16x256xbf16>
    %c0_42 = arith.constant 0 : index
    %c0_43 = arith.constant 0 : index
    %130 = vector.load %arg5[%c0_42, %c0_43] : memref<256x512xbf16, #tpu.memory_space<vmem>>, vector<256x512xbf16>
    %cst_44 = arith.constant dense<0.000000e+00> : vector<16x512xf32>
    %131 = tpu.matmul %129, %130, %cst_44 {dimension_numbers = #tpu.dot_dimension_numbers<[1], [0], [0], [1], [0, 0, 1, 1], [], []>} : vector<16x256xbf16>, vector<256x512xbf16>, vector<16x512xf32> -> vector<16x512xf32>
    %c0_45 = arith.constant 0 : index
    %c0_46 = arith.constant 0 : index
    %132 = vector.load %arg6[%c0_45, %c0_46] : memref<1x512xf32, #tpu.memory_space<vmem>>, vector<1x512xf32>
    %133 = vector.broadcast %132 : vector<1x512xf32> to vector<16x512xf32>
    %134 = arith.addf %131, %133 : vector<16x512xf32>
    %135 = vector.extract_strided_slice %134 {offsets = [0, 0], sizes = [16, 128], strides = [1, 1]} : vector<16x512xf32> to vector<16x128xf32>
    %136 = arith.negf %135 : vector<16x128xf32>
    %137 = math.exp %136 : vector<16x128xf32>
    %cst_47 = arith.constant 1.000000e+00 : f32
    %138 = vector.broadcast %cst_47 : f32 to vector<16x128xf32>
    %139 = arith.addf %138, %137 : vector<16x128xf32>
    %140 = arith.divf %138, %139 : vector<16x128xf32>
    %141 = vector.extract_strided_slice %134 {offsets = [0, 128], sizes = [16, 128], strides = [1, 1]} : vector<16x512xf32> to vector<16x128xf32>
    %142 = arith.negf %141 : vector<16x128xf32>
    %143 = math.exp %142 : vector<16x128xf32>
    %cst_48 = arith.constant 1.000000e+00 : f32
    %144 = vector.broadcast %cst_48 : f32 to vector<16x128xf32>
    %145 = arith.addf %144, %143 : vector<16x128xf32>
    %146 = arith.divf %144, %145 : vector<16x128xf32>
    %147 = vector.extract_strided_slice %134 {offsets = [0, 256], sizes = [16, 128], strides = [1, 1]} : vector<16x512xf32> to vector<16x128xf32>
    %148 = math.tanh %147 : vector<16x128xf32>
    %149 = vector.extract_strided_slice %134 {offsets = [0, 384], sizes = [16, 128], strides = [1, 1]} : vector<16x512xf32> to vector<16x128xf32>
    %150 = arith.negf %149 : vector<16x128xf32>
    %151 = math.exp %150 : vector<16x128xf32>
    %cst_49 = arith.constant 1.000000e+00 : f32
    %152 = vector.broadcast %cst_49 : f32 to vector<16x128xf32>
    %153 = arith.addf %152, %151 : vector<16x128xf32>
    %154 = arith.divf %152, %153 : vector<16x128xf32>
    %155 = arith.mulf %146, %117 : vector<16x128xf32>
    %156 = arith.mulf %140, %148 : vector<16x128xf32>
    %157 = arith.addf %155, %156 : vector<16x128xf32>
    %158 = math.tanh %157 : vector<16x128xf32>
    %159 = arith.mulf %154, %158 : vector<16x128xf32>
    %160 = arith.truncf %159 : vector<16x128xf32> to vector<16x128xbf16>
    %161 = arith.index_cast %c3_i32 : i32 to index
    %c0_50 = arith.constant 0 : index
    %c0_51 = arith.constant 0 : index
    %162 = vector.load %arg7[%161, %c0_50, %c0_51] : memref<8x16x128xbf16, #tpu.memory_space<vmem>>, vector<1x16x128xbf16>
    %163 = vector.shape_cast %162 : vector<1x16x128xbf16> to vector<16x128xbf16>
    %164 = vector.shape_cast %160 : vector<16x128xbf16> to vector<1x16x128xbf16>
    tpu.vector_store %arg7[%161, %c0_50, %c0_51], %164 {strides = array<i32>} : memref<8x16x128xbf16, #tpu.memory_space<vmem>>, vector<1x16x128xbf16>,
    %c4_i32 = arith.constant 4 : i32
    %165 = arith.index_cast %c4_i32 : i32 to index
    %c0_52 = arith.constant 0 : index
    %c0_53 = arith.constant 0 : index
    %166 = vector.load %arg2[%165, %c0_52, %c0_53] : memref<8x16x128xbf16, #tpu.memory_space<vmem>>, vector<1x16x128xbf16>
    %167 = vector.shape_cast %166 : vector<1x16x128xbf16> to vector<16x128xbf16>
    %168 = arith.truncf %159 : vector<16x128xf32> to vector<16x128xbf16>
    %169 = tpu.concatenate %167, %168 in 1 : vector<16x128xbf16>, vector<16x128xbf16> -> vector<16x256xbf16>
    %c0_54 = arith.constant 0 : index
    %c0_55 = arith.constant 0 : index
    %170 = vector.load %arg5[%c0_54, %c0_55] : memref<256x512xbf16, #tpu.memory_space<vmem>>, vector<256x512xbf16>
    %cst_56 = arith.constant dense<0.000000e+00> : vector<16x512xf32>
    %171 = tpu.matmul %169, %170, %cst_56 {dimension_numbers = #tpu.dot_dimension_numbers<[1], [0], [0], [1], [0, 0, 1, 1], [], []>} : vector<16x256xbf16>, vector<256x512xbf16>, vector<16x512xf32> -> vector<16x512xf32>
    %c0_57 = arith.constant 0 : index
    %c0_58 = arith.constant 0 : index
    %172 = vector.load %arg6[%c0_57, %c0_58] : memref<1x512xf32, #tpu.memory_space<vmem>>, vector<1x512xf32>
    %173 = vector.broadcast %172 : vector<1x512xf32> to vector<16x512xf32>
    %174 = arith.addf %171, %173 : vector<16x512xf32>
    %175 = vector.extract_strided_slice %174 {offsets = [0, 0], sizes = [16, 128], strides = [1, 1]} : vector<16x512xf32> to vector<16x128xf32>
    %176 = arith.negf %175 : vector<16x128xf32>
    %177 = math.exp %176 : vector<16x128xf32>
    %cst_59 = arith.constant 1.000000e+00 : f32
    %178 = vector.broadcast %cst_59 : f32 to vector<16x128xf32>
    %179 = arith.addf %178, %177 : vector<16x128xf32>
    %180 = arith.divf %178, %179 : vector<16x128xf32>
    %181 = vector.extract_strided_slice %174 {offsets = [0, 128], sizes = [16, 128], strides = [1, 1]} : vector<16x512xf32> to vector<16x128xf32>
    %182 = arith.negf %181 : vector<16x128xf32>
    %183 = math.exp %182 : vector<16x128xf32>
    %cst_60 = arith.constant 1.000000e+00 : f32
    %184 = vector.broadcast %cst_60 : f32 to vector<16x128xf32>
    %185 = arith.addf %184, %183 : vector<16x128xf32>
    %186 = arith.divf %184, %185 : vector<16x128xf32>
    %187 = vector.extract_strided_slice %174 {offsets = [0, 256], sizes = [16, 128], strides = [1, 1]} : vector<16x512xf32> to vector<16x128xf32>
    %188 = math.tanh %187 : vector<16x128xf32>
    %189 = vector.extract_strided_slice %174 {offsets = [0, 384], sizes = [16, 128], strides = [1, 1]} : vector<16x512xf32> to vector<16x128xf32>
    %190 = arith.negf %189 : vector<16x128xf32>
    %191 = math.exp %190 : vector<16x128xf32>
    %cst_61 = arith.constant 1.000000e+00 : f32
    %192 = vector.broadcast %cst_61 : f32 to vector<16x128xf32>
    %193 = arith.addf %192, %191 : vector<16x128xf32>
    %194 = arith.divf %192, %193 : vector<16x128xf32>
    %195 = arith.mulf %186, %157 : vector<16x128xf32>
    %196 = arith.mulf %180, %188 : vector<16x128xf32>
    %197 = arith.addf %195, %196 : vector<16x128xf32>
    %198 = math.tanh %197 : vector<16x128xf32>
    %199 = arith.mulf %194, %198 : vector<16x128xf32>
    %200 = arith.truncf %199 : vector<16x128xf32> to vector<16x128xbf16>
    %201 = arith.index_cast %c4_i32 : i32 to index
    %c0_62 = arith.constant 0 : index
    %c0_63 = arith.constant 0 : index
    %202 = vector.load %arg7[%201, %c0_62, %c0_63] : memref<8x16x128xbf16, #tpu.memory_space<vmem>>, vector<1x16x128xbf16>
    %203 = vector.shape_cast %202 : vector<1x16x128xbf16> to vector<16x128xbf16>
    %204 = vector.shape_cast %200 : vector<16x128xbf16> to vector<1x16x128xbf16>
    tpu.vector_store %arg7[%201, %c0_62, %c0_63], %204 {strides = array<i32>} : memref<8x16x128xbf16, #tpu.memory_space<vmem>>, vector<1x16x128xbf16>,
    %c5_i32 = arith.constant 5 : i32
    %205 = arith.index_cast %c5_i32 : i32 to index
    %c0_64 = arith.constant 0 : index
    %c0_65 = arith.constant 0 : index
    %206 = vector.load %arg2[%205, %c0_64, %c0_65] : memref<8x16x128xbf16, #tpu.memory_space<vmem>>, vector<1x16x128xbf16>
    %207 = vector.shape_cast %206 : vector<1x16x128xbf16> to vector<16x128xbf16>
    %208 = arith.truncf %199 : vector<16x128xf32> to vector<16x128xbf16>
    %209 = tpu.concatenate %207, %208 in 1 : vector<16x128xbf16>, vector<16x128xbf16> -> vector<16x256xbf16>
    %c0_66 = arith.constant 0 : index
    %c0_67 = arith.constant 0 : index
    %210 = vector.load %arg5[%c0_66, %c0_67] : memref<256x512xbf16, #tpu.memory_space<vmem>>, vector<256x512xbf16>
    %cst_68 = arith.constant dense<0.000000e+00> : vector<16x512xf32>
    %211 = tpu.matmul %209, %210, %cst_68 {dimension_numbers = #tpu.dot_dimension_numbers<[1], [0], [0], [1], [0, 0, 1, 1], [], []>} : vector<16x256xbf16>, vector<256x512xbf16>, vector<16x512xf32> -> vector<16x512xf32>
    %c0_69 = arith.constant 0 : index
    %c0_70 = arith.constant 0 : index
    %212 = vector.load %arg6[%c0_69, %c0_70] : memref<1x512xf32, #tpu.memory_space<vmem>>, vector<1x512xf32>
    %213 = vector.broadcast %212 : vector<1x512xf32> to vector<16x512xf32>
    %214 = arith.addf %211, %213 : vector<16x512xf32>
    %215 = vector.extract_strided_slice %214 {offsets = [0, 0], sizes = [16, 128], strides = [1, 1]} : vector<16x512xf32> to vector<16x128xf32>
    %216 = arith.negf %215 : vector<16x128xf32>
    %217 = math.exp %216 : vector<16x128xf32>
    %cst_71 = arith.constant 1.000000e+00 : f32
    %218 = vector.broadcast %cst_71 : f32 to vector<16x128xf32>
    %219 = arith.addf %218, %217 : vector<16x128xf32>
    %220 = arith.divf %218, %219 : vector<16x128xf32>
    %221 = vector.extract_strided_slice %214 {offsets = [0, 128], sizes = [16, 128], strides = [1, 1]} : vector<16x512xf32> to vector<16x128xf32>
    %222 = arith.negf %221 : vector<16x128xf32>
    %223 = math.exp %222 : vector<16x128xf32>
    %cst_72 = arith.constant 1.000000e+00 : f32
    %224 = vector.broadcast %cst_72 : f32 to vector<16x128xf32>
    %225 = arith.addf %224, %223 : vector<16x128xf32>
    %226 = arith.divf %224, %225 : vector<16x128xf32>
    %227 = vector.extract_strided_slice %214 {offsets = [0, 256], sizes = [16, 128], strides = [1, 1]} : vector<16x512xf32> to vector<16x128xf32>
    %228 = math.tanh %227 : vector<16x128xf32>
    %229 = vector.extract_strided_slice %214 {offsets = [0, 384], sizes = [16, 128], strides = [1, 1]} : vector<16x512xf32> to vector<16x128xf32>
    %230 = arith.negf %229 : vector<16x128xf32>
    %231 = math.exp %230 : vector<16x128xf32>
    %cst_73 = arith.constant 1.000000e+00 : f32
    %232 = vector.broadcast %cst_73 : f32 to vector<16x128xf32>
    %233 = arith.addf %232, %231 : vector<16x128xf32>
    %234 = arith.divf %232, %233 : vector<16x128xf32>
    %235 = arith.mulf %226, %197 : vector<16x128xf32>
    %236 = arith.mulf %220, %228 : vector<16x128xf32>
    %237 = arith.addf %235, %236 : vector<16x128xf32>
    %238 = math.tanh %237 : vector<16x128xf32>
    %239 = arith.mulf %234, %238 : vector<16x128xf32>
    %240 = arith.truncf %239 : vector<16x128xf32> to vector<16x128xbf16>
    %241 = arith.index_cast %c5_i32 : i32 to index
    %c0_74 = arith.constant 0 : index
    %c0_75 = arith.constant 0 : index
    %242 = vector.load %arg7[%241, %c0_74, %c0_75] : memref<8x16x128xbf16, #tpu.memory_space<vmem>>, vector<1x16x128xbf16>
    %243 = vector.shape_cast %242 : vector<1x16x128xbf16> to vector<16x128xbf16>
    %244 = vector.shape_cast %240 : vector<16x128xbf16> to vector<1x16x128xbf16>
    tpu.vector_store %arg7[%241, %c0_74, %c0_75], %244 {strides = array<i32>} : memref<8x16x128xbf16, #tpu.memory_space<vmem>>, vector<1x16x128xbf16>,
    %c6_i32 = arith.constant 6 : i32
    %245 = arith.index_cast %c6_i32 : i32 to index
    %c0_76 = arith.constant 0 : index
    %c0_77 = arith.constant 0 : index
    %246 = vector.load %arg2[%245, %c0_76, %c0_77] : memref<8x16x128xbf16, #tpu.memory_space<vmem>>, vector<1x16x128xbf16>
    %247 = vector.shape_cast %246 : vector<1x16x128xbf16> to vector<16x128xbf16>
    %248 = arith.truncf %239 : vector<16x128xf32> to vector<16x128xbf16>
    %249 = tpu.concatenate %247, %248 in 1 : vector<16x128xbf16>, vector<16x128xbf16> -> vector<16x256xbf16>
    %c0_78 = arith.constant 0 : index
    %c0_79 = arith.constant 0 : index
    %250 = vector.load %arg5[%c0_78, %c0_79] : memref<256x512xbf16, #tpu.memory_space<vmem>>, vector<256x512xbf16>
    %cst_80 = arith.constant dense<0.000000e+00> : vector<16x512xf32>
    %251 = tpu.matmul %249, %250, %cst_80 {dimension_numbers = #tpu.dot_dimension_numbers<[1], [0], [0], [1], [0, 0, 1, 1], [], []>} : vector<16x256xbf16>, vector<256x512xbf16>, vector<16x512xf32> -> vector<16x512xf32>
    %c0_81 = arith.constant 0 : index
    %c0_82 = arith.constant 0 : index
    %252 = vector.load %arg6[%c0_81, %c0_82] : memref<1x512xf32, #tpu.memory_space<vmem>>, vector<1x512xf32>
    %253 = vector.broadcast %252 : vector<1x512xf32> to vector<16x512xf32>
    %254 = arith.addf %251, %253 : vector<16x512xf32>
    %255 = vector.extract_strided_slice %254 {offsets = [0, 0], sizes = [16, 128], strides = [1, 1]} : vector<16x512xf32> to vector<16x128xf32>
    %256 = arith.negf %255 : vector<16x128xf32>
    %257 = math.exp %256 : vector<16x128xf32>
    %cst_83 = arith.constant 1.000000e+00 : f32
    %258 = vector.broadcast %cst_83 : f32 to vector<16x128xf32>
    %259 = arith.addf %258, %257 : vector<16x128xf32>
    %260 = arith.divf %258, %259 : vector<16x128xf32>
    %261 = vector.extract_strided_slice %254 {offsets = [0, 128], sizes = [16, 128], strides = [1, 1]} : vector<16x512xf32> to vector<16x128xf32>
    %262 = arith.negf %261 : vector<16x128xf32>
    %263 = math.exp %262 : vector<16x128xf32>
    %cst_84 = arith.constant 1.000000e+00 : f32
    %264 = vector.broadcast %cst_84 : f32 to vector<16x128xf32>
    %265 = arith.addf %264, %263 : vector<16x128xf32>
    %266 = arith.divf %264, %265 : vector<16x128xf32>
    %267 = vector.extract_strided_slice %254 {offsets = [0, 256], sizes = [16, 128], strides = [1, 1]} : vector<16x512xf32> to vector<16x128xf32>
    %268 = math.tanh %267 : vector<16x128xf32>
    %269 = vector.extract_strided_slice %254 {offsets = [0, 384], sizes = [16, 128], strides = [1, 1]} : vector<16x512xf32> to vector<16x128xf32>
    %270 = arith.negf %269 : vector<16x128xf32>
    %271 = math.exp %270 : vector<16x128xf32>
    %cst_85 = arith.constant 1.000000e+00 : f32
    %272 = vector.broadcast %cst_85 : f32 to vector<16x128xf32>
    %273 = arith.addf %272, %271 : vector<16x128xf32>
    %274 = arith.divf %272, %273 : vector<16x128xf32>
    %275 = arith.mulf %266, %237 : vector<16x128xf32>
    %276 = arith.mulf %260, %268 : vector<16x128xf32>
    %277 = arith.addf %275, %276 : vector<16x128xf32>
    %278 = math.tanh %277 : vector<16x128xf32>
    %279 = arith.mulf %274, %278 : vector<16x128xf32>
    %280 = arith.truncf %279 : vector<16x128xf32> to vector<16x128xbf16>
    %281 = arith.index_cast %c6_i32 : i32 to index
    %c0_86 = arith.constant 0 : index
    %c0_87 = arith.constant 0 : index
    %282 = vector.load %arg7[%281, %c0_86, %c0_87] : memref<8x16x128xbf16, #tpu.memory_space<vmem>>, vector<1x16x128xbf16>
    %283 = vector.shape_cast %282 : vector<1x16x128xbf16> to vector<16x128xbf16>
    %284 = vector.shape_cast %280 : vector<16x128xbf16> to vector<1x16x128xbf16>
    tpu.vector_store %arg7[%281, %c0_86, %c0_87], %284 {strides = array<i32>} : memref<8x16x128xbf16, #tpu.memory_space<vmem>>, vector<1x16x128xbf16>,
    %c7_i32 = arith.constant 7 : i32
    %285 = arith.index_cast %c7_i32 : i32 to index
    %c0_88 = arith.constant 0 : index
    %c0_89 = arith.constant 0 : index
    %286 = vector.load %arg2[%285, %c0_88, %c0_89] : memref<8x16x128xbf16, #tpu.memory_space<vmem>>, vector<1x16x128xbf16>
    %287 = vector.shape_cast %286 : vector<1x16x128xbf16> to vector<16x128xbf16>
    %288 = arith.truncf %279 : vector<16x128xf32> to vector<16x128xbf16>
    %289 = tpu.concatenate %287, %288 in 1 : vector<16x128xbf16>, vector<16x128xbf16> -> vector<16x256xbf16>
    %c0_90 = arith.constant 0 : index
    %c0_91 = arith.constant 0 : index
    %290 = vector.load %arg5[%c0_90, %c0_91] : memref<256x512xbf16, #tpu.memory_space<vmem>>, vector<256x512xbf16>
    %cst_92 = arith.constant dense<0.000000e+00> : vector<16x512xf32>
    %291 = tpu.matmul %289, %290, %cst_92 {dimension_numbers = #tpu.dot_dimension_numbers<[1], [0], [0], [1], [0, 0, 1, 1], [], []>} : vector<16x256xbf16>, vector<256x512xbf16>, vector<16x512xf32> -> vector<16x512xf32>
    %c0_93 = arith.constant 0 : index
    %c0_94 = arith.constant 0 : index
    %292 = vector.load %arg6[%c0_93, %c0_94] : memref<1x512xf32, #tpu.memory_space<vmem>>, vector<1x512xf32>
    %293 = vector.broadcast %292 : vector<1x512xf32> to vector<16x512xf32>
    %294 = arith.addf %291, %293 : vector<16x512xf32>
    %295 = vector.extract_strided_slice %294 {offsets = [0, 0], sizes = [16, 128], strides = [1, 1]} : vector<16x512xf32> to vector<16x128xf32>
    %296 = arith.negf %295 : vector<16x128xf32>
    %297 = math.exp %296 : vector<16x128xf32>
    %cst_95 = arith.constant 1.000000e+00 : f32
    %298 = vector.broadcast %cst_95 : f32 to vector<16x128xf32>
    %299 = arith.addf %298, %297 : vector<16x128xf32>
    %300 = arith.divf %298, %299 : vector<16x128xf32>
    %301 = vector.extract_strided_slice %294 {offsets = [0, 128], sizes = [16, 128], strides = [1, 1]} : vector<16x512xf32> to vector<16x128xf32>
    %302 = arith.negf %301 : vector<16x128xf32>
    %303 = math.exp %302 : vector<16x128xf32>
    %cst_96 = arith.constant 1.000000e+00 : f32
    %304 = vector.broadcast %cst_96 : f32 to vector<16x128xf32>
    %305 = arith.addf %304, %303 : vector<16x128xf32>
    %306 = arith.divf %304, %305 : vector<16x128xf32>
    %307 = vector.extract_strided_slice %294 {offsets = [0, 256], sizes = [16, 128], strides = [1, 1]} : vector<16x512xf32> to vector<16x128xf32>
    %308 = math.tanh %307 : vector<16x128xf32>
    %309 = vector.extract_strided_slice %294 {offsets = [0, 384], sizes = [16, 128], strides = [1, 1]} : vector<16x512xf32> to vector<16x128xf32>
    %310 = arith.negf %309 : vector<16x128xf32>
    %311 = math.exp %310 : vector<16x128xf32>
    %cst_97 = arith.constant 1.000000e+00 : f32
    %312 = vector.broadcast %cst_97 : f32 to vector<16x128xf32>
    %313 = arith.addf %312, %311 : vector<16x128xf32>
    %314 = arith.divf %312, %313 : vector<16x128xf32>
    %315 = arith.mulf %306, %277 : vector<16x128xf32>
    %316 = arith.mulf %300, %308 : vector<16x128xf32>
    %317 = arith.addf %315, %316 : vector<16x128xf32>
    %318 = math.tanh %317 : vector<16x128xf32>
    %319 = arith.mulf %314, %318 : vector<16x128xf32>
    %320 = arith.truncf %319 : vector<16x128xf32> to vector<16x128xbf16>
    %321 = arith.index_cast %c7_i32 : i32 to index
    %c0_98 = arith.constant 0 : index
    %c0_99 = arith.constant 0 : index
    %322 = vector.load %arg7[%321, %c0_98, %c0_99] : memref<8x16x128xbf16, #tpu.memory_space<vmem>>, vector<1x16x128xbf16>
    %323 = vector.shape_cast %322 : vector<1x16x128xbf16> to vector<16x128xbf16>
    %324 = vector.shape_cast %320 : vector<16x128xbf16> to vector<1x16x128xbf16>
    tpu.vector_store %arg7[%321, %c0_98, %c0_99], %324 {strides = array<i32>} : memref<8x16x128xbf16, #tpu.memory_space<vmem>>, vector<1x16x128xbf16>,
    %c8_i32 = arith.constant 8 : i32
    %c0_100 = arith.constant 0 : index
    %c0_101 = arith.constant 0 : index
    %325 = vector.load %arg8[%c0_100, %c0_101] : memref<16x128xf32, #tpu.memory_space<vmem>>, vector<16x128xf32>
    tpu.vector_store %arg8[%c0_100, %c0_101], %319 {strides = array<i32>} : memref<16x128xf32, #tpu.memory_space<vmem>>, vector<16x128xf32>,
    %c0_102 = arith.constant 0 : index
    %c0_103 = arith.constant 0 : index
    %326 = vector.load %arg9[%c0_102, %c0_103] : memref<16x128xf32, #tpu.memory_space<vmem>>, vector<16x128xf32>
    tpu.vector_store %arg9[%c0_102, %c0_103], %317 {strides = array<i32>} : memref<16x128xf32, #tpu.memory_space<vmem>>, vector<16x128xf32>,
    return
  }
  func.func @transform_0(%arg0: i32, %arg1: i32) -> (i32, i32, i32) {
    %c0_i32 = arith.constant 0 : i32
    %c0_i32_0 = arith.constant 0 : i32
    return %arg1, %arg0, %c0_i32 : i32, i32, i32
  }
  func.func @transform_1(%arg0: i32, %arg1: i32) -> (i32, i32) {
    %c0_i32 = arith.constant 0 : i32
    %c0_i32_0 = arith.constant 0 : i32
    return %arg0, %c0_i32 : i32, i32
  }
  func.func @transform_2(%arg0: i32, %arg1: i32) -> (i32, i32) {
    %c0_i32 = arith.constant 0 : i32
    %c0_i32_0 = arith.constant 0 : i32
    return %arg0, %c0_i32 : i32, i32
  }
  func.func @transform_3(%arg0: i32, %arg1: i32) -> (i32, i32) {
    %c0_i32 = arith.constant 0 : i32
    %c0_i32_0 = arith.constant 0 : i32
    %c0_i32_1 = arith.constant 0 : i32
    return %c0_i32, %c0_i32_0 : i32, i32
  }
  func.func @transform_4(%arg0: i32, %arg1: i32) -> (i32, i32) {
    %c0_i32 = arith.constant 0 : i32
    %c0_i32_0 = arith.constant 0 : i32
    %c0_i32_1 = arith.constant 0 : i32
    return %c0_i32, %c0_i32_0 : i32, i32
  }
  func.func @transform_5(%arg0: i32, %arg1: i32) -> (i32, i32, i32) {
    %c0_i32 = arith.constant 0 : i32
    %c0_i32_0 = arith.constant 0 : i32
    return %arg1, %arg0, %c0_i32 : i32, i32, i32
  }
  func.func @transform_6(%arg0: i32, %arg1: i32) -> (i32, i32) {
    %c0_i32 = arith.constant 0 : i32
    %c0_i32_0 = arith.constant 0 : i32
    return %arg0, %c0_i32 : i32, i32
  }
  func.func @transform_7(%arg0: i32, %arg1: i32) -> (i32, i32) {
    %c0_i32 = arith.constant 0 : i32
    %c0_i32_0 = arith.constant 0 : i32
    return %arg0, %c0_i32 : i32, i32
  }
}

</mosaic_0001>

<bundles_post_ra>
// kernel: tpu_custom_call.1
= control target key start
LH: loop header
LB: loop body
LE: loop exit
PB: predicated region body
PF: predicated region fallthrough
CT: control target
= control target key end

     0   :  { %13 = vsyncpa [#allocation3], 0  ;;  %s7279_s0 = inlined_call_operand.hbm [shape: bf16[8,16,128], index: 0, kind: input, shape index: {}]   ;;  %s7280_s1 = inlined_call_operand.hbm [shape: f32[16,128], index: 1, kind: input, shape index: {}]   ;;  %s7281_s2 = inlined_call_operand.hbm [shape: f32[16,128], index: 2, kind: input, shape index: {}]   ;;  %s7282_s3 = inlined_call_operand.hbm [shape: bf16[256,512], index: 3, kind: input, shape index: {}]   ;;  %s7283_s4 = inlined_call_operand.vmem [shape: f32[1,512], index: 4, kind: input, shape index: {}]   ;;  %s7284_s5 = inlined_call_operand.hbm [shape: bf16[8,16,128], index: 5, kind: output, shape index: {0}]   ;;  %s7285_s6 = inlined_call_operand.hbm [shape: f32[16,128], index: 6, kind: output, shape index: {1}]   ;;  %s7286_s7 = inlined_call_operand.hbm [shape: f32[16,128], index: 7, kind: output, shape index: {2}]  }
   0x1   :  { %14 = vsyncpa [#allocation6], 0 }
   0x2   :  { %15 = vsyncpa [#allocation9], 0 }
   0x3   :  { %16 = vsyncpa [#allocation4], 0 }
   0x4   :  { %17 = vsyncpa [#allocation12], 0  ;;  %s6089_s24 = smov [#allocation5]  }
   0x5   :  { %s35_s25 = sshll.u32 %s6089_s24, 4  ;;  %s36_s25 = int_to_ptr.vmem [resolvable:$true] %s35_s25 }
   0x6   :  { %s5947_s26 = scalar_lea.vmem %s36_s25, 256  ;;  %p5952_p1 = scmp.lt.s32.totalorder %s36_s25, %s36_s25 }
   0x7   :  { %p5948_p0 = scmp.ne.s32.totalorder %s36_s25, %s5947_s26  ;;  %p5953_p2 = scmp.lt.s32.totalorder %s5947_s26, %s5947_s26 }
   0x9   :  { %p5954_p3 = por %p5953_p2, %p5952_p1 }
   0xb   :  { %p5955_p4 = pnand %p5954_p3, %p5948_p0 }
   0xd   :  { %5958 = shalt.err (!%p5955_p4)
}
   0xe   :  { %s6090_s27 = smov 128   ;;  %s6091_s28 = smov 8  }
   0xf   :  { %41 = dma.hbm_to_vmem [thread:$0]  %s7280_s1, 256, %s36_s25, [#allocation6], %s6090_s27, %s6090_s27, %s6091_s28  }
  0x10   :  { %s6092_s8 = smov [#allocation2]  }
  0x11   :  { %s23_s9 = sshll.u32 %s6092_s8, 4  ;;  %s24_s9 = int_to_ptr.vmem [resolvable:$true] %s23_s9 }
  0x12   :  { %s5967_s10 = scalar_lea.vmem %s24_s9, 1024  ;;  %p5972_p6 = scmp.lt.s32.totalorder %s24_s9, %s24_s9 }
  0x13   :  { %p5968_p5 = scmp.ne.s32.totalorder %s24_s9, %s5967_s10  ;;  %p5973_p7 = scmp.lt.s32.totalorder %s5967_s10, %s5967_s10 }
  0x15   :  { %p5974_p8 = por %p5973_p7, %p5972_p6 }
  0x17   :  { %p5975_p9 = pnand %p5974_p8, %p5968_p5 }
  0x19   :  { %5978 = shalt.err (!%p5975_p9)
}
  0x1a   :  { %s6093_s11 = smov 64   ;;  %s6094_s12 = smov 4  }
  0x1b   :  { %29 = dma.hbm_to_vmem [thread:$0]  %s7279_s0, 1024, %s24_s9, [#allocation3], %s6093_s11, %s6093_s11, %s6094_s12  }
  0x1c   :  { %s6095_s1 = smov [#allocation7]   ;;  %s6096_s16 = smov [#allocation8]  }
  0x1d   :  { %s47_s15 = sshll.u32 %s6095_s1, 4  ;;  %s59_s17 = sshll.u32 %s6096_s16, 4  ;;  %s48_s15 = int_to_ptr.vmem [resolvable:$true] %s47_s15  ;;  %s60_s17 = int_to_ptr.vmem [resolvable:$true] %s59_s17 }
  0x1e   :  { %s5987_s18 = scalar_lea.vmem %s48_s15, 256  ;;  %p5992_p11 = scmp.lt.s32.totalorder %s48_s15, %s48_s15 }
  0x1f   :  { %p5988_p10 = scmp.ne.s32.totalorder %s48_s15, %s5987_s18  ;;  %p5993_p12 = scmp.lt.s32.totalorder %s5987_s18, %s5987_s18 }
  0x21   :  { %p5994_p13 = por %p5993_p12, %p5992_p11 }
  0x23   :  { %p5995_p0 = pnand %p5994_p13, %p5988_p10 }
  0x25   :  { %5998 = shalt.err (!%p5995_p0)
}
  0x26   :  { %53 = dma.hbm_to_vmem [thread:$0]  %s7281_s2, 256, %s48_s15, [#allocation6], %s6090_s27, %s6090_s27, %s6091_s28  }
  0x27   :  { %s6007_s0 = scalar_lea.vmem %s60_s17, 8192  ;;  %p6012_p2 = scmp.lt.s32.totalorder %s60_s17, %s60_s17 }
  0x28   :  { %p6008_p1 = scmp.ne.s32.totalorder %s60_s17, %s6007_s0  ;;  %p6013_p3 = scmp.lt.s32.totalorder %s6007_s0, %s6007_s0 }
  0x2a   :  { %p6014_p4 = por %p6013_p3, %p6012_p2 }
  0x2c   :  { %p6015_p5 = pnand %p6014_p4, %p6008_p1 }
  0x2e   :  { %6018 = shalt.err (!%p6015_p5)
}
  0x2f   :  { %s6097_s21 = smov 256   ;;  %s6098_s22 = smov 16  }
  0x30   :  { %65 = dma.hbm_to_vmem [thread:$0]  %s7282_s3, 8192, %s60_s17, [#allocation9], %s6097_s21, %s6097_s21, %s6098_s22  }
  0x31   :  { %6079 = dma.done.wait [#allocation3], 1024  }
  0x32   :  { %6080 = vsyncadd [#allocation3], 4294966272 }
  0x33   :  { %6081 = dma.done.wait [#allocation6], 512  }
  0x34   :  { %6082 = vsyncadd [#allocation6], 4294966784 }
  0x35   :  { %6083 = dma.done.wait [#allocation9], 8192  }
  0x36   :  { %6084 = vsyncadd [#allocation9], 4294959104  ;;  %v6163_v0 = vld [vmem:[#allocation8 + $0xe4] ss:$16 sps:$4 sm:$0xff]   ;;  %v6165_v1 = vld [vmem:[#allocation8 + $0xe0] ss:$16 sps:$4 sm:$0xff]  }
  0x37   :  { %511 = vmatprep.subr.bf16.mxu0 %v6163_v0  ;;  %v6168_v2 = vld [vmem:[#allocation8 + $0xc4] ss:$16 sps:$4 sm:$0xff]   ;;  %v6171_v3 = vld [vmem:[#allocation8 + $0xc0] ss:$16 sps:$4 sm:$0xff]   ;;  %v134_v5 = vld [vmem:[#allocation8 + $0xe8] sm:$0xff]  ;;  %s6100_s20 = smov [#allocation13]  }
  0x38   :  { %512 = vmatpush1.bf16.msra.mxu0 %v6165_v1  ;;  %v6174_v4 = vld [vmem:[#allocation8 + $0xa4] ss:$16 sps:$4 sm:$0xff]   ;;  %v136_v6 = vld [vmem:[#allocation8 + $0xf8] sm:$0xff]  ;;  %v6176_v7 = vld [vmem:[#allocation8 + $0xa0] ss:$16 sps:$4 sm:$0xff]   ;;  %s4608_s0 = sshll.u32 %s6100_s20, 4  ;;  %s4609_s0 = int_to_ptr.vmem [resolvable:$true] %s4608_s0 }
  0x39   :  { %513 = vmatprep.subr.bf16.mxu0 %v6168_v2  ;;  %v6178_v8 = vcombine.high %v134_v5, %v136_v6  ;;  %v6180_v9 = vcombine.low %v134_v5, %v136_v6  ;;  %v6183_v10 = vld [vmem:[#allocation8 + $0xcc] ss:$16 sps:$4 sm:$0xff]   ;;  %v6186_v11 = vld [vmem:[#allocation8 + $0x84] ss:$16 sps:$4 sm:$0xff]   ;;  %v6190_v12 = vld [vmem:[#allocation8 + $0xc8] ss:$16 sps:$4 sm:$0xff]  }
  0x3a   :  { %v6193_v13 = vld [vmem:[#allocation8 + $0xac] ss:$16 sps:$4 sm:$0xff]   ;;  %v6196_v14 = vld [vmem:[#allocation8 + $0x80] ss:$16 sps:$4 sm:$0xff]   ;;  %v6199_v15 = vld [vmem:[#allocation8 + $0x64] ss:$16 sps:$4 sm:$0xff]  }
  0x3b   :  { %554 = vmatprep.subr.bf16.mxu1 %v6178_v8  ;;  %v6202_v16 = vld [vmem:[#allocation8 + $0xa8] ss:$16 sps:$4 sm:$0xff]   ;;  %v6205_v17 = vld [vmem:[#allocation8 + $0x8c] ss:$16 sps:$4 sm:$0xff]   ;;  %v6208_v18 = vld [vmem:[#allocation8 + $0x60] ss:$16 sps:$4 sm:$0xff]  }
  0x3c   :  { %514 = vmatpush1.bf16.msra.mxu0 %v6171_v3  ;;  %555 = vmatpush1.bf16.msra.mxu1 %v6180_v9  ;;  %v6211_v19 = vld [vmem:[#allocation8 + $0x44] ss:$16 sps:$4 sm:$0xff]   ;;  %v6214_v20 = vld [vmem:[#allocation8 + $0x88] ss:$16 sps:$4 sm:$0xff]   ;;  %v6217_v21 = vld [vmem:[#allocation8 + $0x6c] ss:$16 sps:$4 sm:$0xff]  }
  0x3d   :  { %515 = vmatprep.subr.bf16.mxu0 %v6174_v4  ;;  %556 = vmatprep.subr.bf16.mxu1 %v6183_v10  ;;  %v6220_v22 = vld [vmem:[#allocation8 + $0x40] ss:$16 sps:$4 sm:$0xff]   ;;  %v6223_v23 = vld [vmem:[#allocation8 + $0x24] ss:$16 sps:$4 sm:$0xff]   ;;  %v6226_v24 = vld [vmem:[#allocation8 + $0x68] ss:$16 sps:$4 sm:$0xff]  }
  0x3e   :  { %v6229_v25 = vld [vmem:[#allocation8 + $0x4c] ss:$16 sps:$4 sm:$0xff]   ;;  %v6232_v26 = vld [vmem:[#allocation8 + $0x20] ss:$16 sps:$4 sm:$0xff]   ;;  %v6235_v27 = vld [vmem:[#allocation8 + $0x4] ss:$16 sps:$4 sm:$0xff]  }
  0x3f   :  { %v6238_v28 = vld [vmem:[#allocation8 + $0x48] ss:$16 sps:$4 sm:$0xff]   ;;  %v6241_v29 = vld [vmem:[#allocation8 + $0x2c] ss:$16 sps:$4 sm:$0xff]   ;;  %v6244_v30 = vld [vmem:[#allocation8] ss:$16 sps:$4 sm:$0xff]  }
  0x40   :  { %516 = vmatpush1.bf16.msra.mxu0 %v6176_v7  ;;  %557 = vmatpush1.bf16.msra.mxu1 %v6190_v12  ;;  %v6247_v31 = vld [vmem:[#allocation8 + $0x1e4] ss:$16 sps:$4 sm:$0xff]   ;;  %v6250_v32 = vld [vmem:[#allocation8 + $0x28] ss:$16 sps:$4 sm:$0xff]   ;;  %v6253_v33 = vld [vmem:[#allocation8 + $0xc] ss:$16 sps:$4 sm:$0xff]  }
  0x41   :  { %517 = vmatprep.subr.bf16.mxu0 %v6186_v11  ;;  %558 = vmatprep.subr.bf16.mxu1 %v6193_v13  ;;  %v6256_v34 = vld [vmem:[#allocation8 + $0x1e0] ss:$16 sps:$4 sm:$0xff]   ;;  %v6259_v35 = vld [vmem:[#allocation8 + $0x1c4] ss:$16 sps:$4 sm:$0xff]   ;;  %v6262_v36 = vld [vmem:[#allocation8 + $0x8] ss:$16 sps:$4 sm:$0xff]  }
  0x42   :  { %v6265_v37 = vld [vmem:[#allocation8 + $0x1ec] ss:$16 sps:$4 sm:$0xff]   ;;  %v6268_v38 = vld [vmem:[#allocation8 + $0x1c0] ss:$16 sps:$4 sm:$0xff]   ;;  %v6271_v39 = vld [vmem:[#allocation8 + $0x1a4] ss:$16 sps:$4 sm:$0xff]  }
  0x43   :  { %v6274_v40 = vld [vmem:[#allocation8 + $0x1e8] ss:$16 sps:$4 sm:$0xff]   ;;  %v6276_v41 = vld [vmem:[#allocation8 + $0x1cc] ss:$16 sps:$4 sm:$0xff]   ;;  %v84_v42 = vld [vmem:[#allocation5] sm:$0xff]  ;;  %s6101_s21 = smov [#allocation10]  }
  0x44   :  { %518 = vmatpush1.bf16.msra.mxu0 %v6196_v14  ;;  %559 = vmatpush1.bf16.msra.mxu1 %v6202_v16  ;;  %v85_v43 = vld [vmem:[#allocation5 + $0x8] sm:$0xff]  ;;  %v6280_v44 = vld [vmem:[#allocation8 + $0x1a0] ss:$16 sps:$4 sm:$0xff]   ;;  %v6283_v46 = vld [vmem:[#allocation8 + $0x184] ss:$16 sps:$4 sm:$0xff]   ;;  %s4584_s22 = sshll.u32 %s6101_s21, 4  ;;  %s4585_s22 = int_to_ptr.vmem [resolvable:$true] %s4584_s22 }
  0x45   :  { %519 = vmatprep.subr.bf16.mxu0 %v6199_v15  ;;  %560 = vmatprep.subr.bf16.mxu1 %v6205_v17  ;;  %v98_v45 = vpack.c.bf16 %v85_v43, %v84_v42  ;;  %v6286_v47 = vld [vmem:[#allocation8 + $0x1c8] ss:$16 sps:$4 sm:$0xff]   ;;  %v6289_v48 = vld [vmem:[#allocation8 + $0x1ac] ss:$16 sps:$4 sm:$0xff]   ;;  %v6292_v49 = vld [vmem:[#allocation8 + $0x180] ss:$16 sps:$4 sm:$0xff]  }
  0x46   :  { %v6294_v50 = vld [vmem:[#allocation8 + $0x164] ss:$16 sps:$4 sm:$0xff]   ;;  %v6296_v51 = vld [vmem:[#allocation8 + $0x1a8] ss:$16 sps:$4 sm:$0xff]   ;;  %v6299_v52 = vld [vmem:[#allocation8 + $0x18c] ss:$16 sps:$4 sm:$0xff]  }
  0x47   :  { %543 = vmatprep.mubr.bf16.mxu0 %v98_v45  ;;  %586 = vmatprep.mubr.bf16.mxu1 %v98_v45  ;;  %v6301_v53 = vld [vmem:[#allocation8 + $0x160] ss:$16 sps:$4 sm:$0xff]   ;;  %v6304_v54 = vld [vmem:[#allocation8 + $0x144] ss:$16 sps:$4 sm:$0xff]   ;;  %v6308_v55 = vld [vmem:[#allocation8 + $0x188] ss:$16 sps:$4 sm:$0xff]  }
  0x48   :  { %520 = vmatpush1.bf16.msra.mxu0 %v6208_v18  ;;  %561 = vmatpush1.bf16.msra.mxu1 %v6214_v20  ;;  %v6311_v56 = vld [vmem:[#allocation8 + $0x16c] ss:$16 sps:$4 sm:$0xff]   ;;  %v6313_v57 = vld [vmem:[#allocation8 + $0x140] ss:$16 sps:$4 sm:$0xff]   ;;  %v6316_v58 = vld [vmem:[#allocation8 + $0x124] ss:$16 sps:$4 sm:$0xff]  }
  0x49   :  { %521 = vmatprep.subr.bf16.mxu0 %v6211_v19  ;;  %562 = vmatprep.subr.bf16.mxu1 %v6217_v21  ;;  %7341 = vst [vmem:[#allocation19_spill] sm:$0xff] %v6316_v58  ;;  %v6320_v59 = vld [vmem:[#allocation8 + $0x168] ss:$16 sps:$4 sm:$0xff]   ;;  %v6323_v60 = vld [vmem:[#allocation8 + $0x14c] ss:$16 sps:$4 sm:$0xff]   ;;  %v5368_v43 = vld [vmem:[#allocation2] sm:$0xff]  }
  0x4a   :  { %v6325_v61 = vld [vmem:[#allocation8 + $0x120] ss:$16 sps:$4 sm:$0xff]   ;;  %v6328_v62 = vld [vmem:[#allocation8 + $0x104] ss:$16 sps:$4 sm:$0xff]   ;;  %v6332_v63 = vld [vmem:[#allocation8 + $0x148] ss:$16 sps:$4 sm:$0xff]  }
  0x4b   :  { %v6335_v5 = vld [vmem:[#allocation8 + $0x12c] ss:$16 sps:$4 sm:$0xff]   ;;  %v6337_v6 = vld [vmem:[#allocation8 + $0x100] ss:$16 sps:$4 sm:$0xff]   ;;  %v6342_v42 = vld [vmem:[#allocation8 + $0x128] ss:$16 sps:$4 sm:$0xff]  }
  0x4c   :  { %522 = vmatpush1.bf16.msra.mxu0 %v6220_v22  ;;  %563 = vmatpush1.bf16.msra.mxu1 %v6226_v24  ;;  %v6345_v45 = vld [vmem:[#allocation8 + $0x10c] ss:$16 sps:$4 sm:$0xff]  }
  0x4d   :  { %523 = vmatprep.subr.bf16.mxu0 %v6223_v23  ;;  %564 = vmatprep.subr.bf16.mxu1 %v6229_v25 }
  0x50   :  { %524 = vmatpush1.bf16.msra.mxu0 %v6232_v26  ;;  %565 = vmatpush1.bf16.msra.mxu1 %v6238_v28 }
  0x51   :  { %525 = vmatprep.subr.bf16.mxu0 %v6235_v27  ;;  %566 = vmatprep.subr.bf16.mxu1 %v6241_v29 }
  0x54   :  { %526 = vmatpush1.bf16.msra.mxu0 %v6244_v30  ;;  %567 = vmatpush1.bf16.msra.mxu1 %v6250_v32 }
  0x55   :  { %527 = vmatprep.subr.bf16.mxu0 %v6247_v31  ;;  %568 = vmatprep.subr.bf16.mxu1 %v6253_v33 }
  0x58   :  { %528 = vmatpush2.bf16.msra.mxu0 %v6256_v34  ;;  %569 = vmatpush1.bf16.msra.mxu1 %v6262_v36 }
  0x59   :  { %529 = vmatprep.subr.bf16.mxu0 %v6259_v35  ;;  %570 = vmatprep.subr.bf16.mxu1 %v6265_v37 }
  0x5c   :  { %530 = vmatpush2.bf16.msra.mxu0 %v6268_v38  ;;  %571 = vmatpush2.bf16.msra.mxu1 %v6274_v40 }
  0x5d   :  { %531 = vmatprep.subr.bf16.mxu0 %v6271_v39  ;;  %572 = vmatprep.subr.bf16.mxu1 %v6276_v41 }
  0x60   :  { %532 = vmatpush2.bf16.msra.mxu0 %v6280_v44  ;;  %573 = vmatpush2.bf16.msra.mxu1 %v6286_v47 }
  0x61   :  { %533 = vmatprep.subr.bf16.mxu0 %v6283_v46  ;;  %574 = vmatprep.subr.bf16.mxu1 %v6289_v48 }
  0x64   :  { %534 = vmatpush2.bf16.msra.mxu0 %v6292_v49  ;;  %575 = vmatpush2.bf16.msra.mxu1 %v6296_v51 }
  0x65   :  { %535 = vmatprep.subr.bf16.mxu0 %v6294_v50  ;;  %576 = vmatprep.subr.bf16.mxu1 %v6299_v52 }
  0x68   :  { %536 = vmatpush2.bf16.msra.mxu0 %v6301_v53  ;;  %577 = vmatpush2.bf16.msra.mxu1 %v6308_v55 }
  0x69   :  { %537 = vmatprep.subr.bf16.mxu0 %v6304_v54  ;;  %578 = vmatprep.subr.bf16.mxu1 %v6311_v56 }
  0x6c   :  { %538 = vmatpush2.bf16.msra.mxu0 %v6313_v57  ;;  %579 = vmatpush2.bf16.msra.mxu1 %v6320_v59 }
  0x6d   :  { %539 = vmatprep.subr.bf16.mxu0 %v6316_v58  ;;  %580 = vmatprep.subr.bf16.mxu1 %v6323_v60  ;;  %v6350_v58 = vld [vmem:[#allocation8 + $0x108] ss:$16 sps:$4 sm:$0xff]  }
  0x70   :  { %540 = vmatpush2.bf16.msra.mxu0 %v6325_v61  ;;  %581 = vmatpush2.bf16.msra.mxu1 %v6332_v63 }
  0x71   :  { %541 = vmatprep.subr.bf16.mxu0 %v6328_v62  ;;  %582 = vmatprep.subr.bf16.mxu1 %v6335_v5 }
  0x74   :  { %542 = vmatpush2.bf16.msra.mxu0 %v6337_v6  ;;  %583 = vmatpush2.bf16.msra.mxu1 %v6342_v42 }
  0x75   :  { %1070 = vmatprep.subr.bf16.mxu0 %v6163_v0  ;;  %584 = vmatprep.subr.bf16.mxu1 %v6345_v45 }
  0x77   :  { %544 = vmatmul.mubr.bf16.vlgmr.msra.gmra.mxu0 %v5368_v43 }
  0x78   :  { %1071 = vmatpush1.bf16.msra.mxu0 %v6165_v1  ;;  %585 = vmatpush2.bf16.msra.mxu1 %v6350_v58  ;;  %v7342_v1 = vld [vmem:[#allocation19_spill] sm:$0xff] }
  0x79   :  { %1072 = vmatprep.subr.bf16.mxu0 %v6168_v2  ;;  %1113 = vmatprep.subr.bf16.mxu1 %v6178_v8  ;;  %v171_v2 = vlaneseq }
  0x7b   :  { %587 = vmatmul.mubr.bf16.vlgmr.msra.gmra.mxu1 %v5368_v43 }
  0x7c   :  { %1073 = vmatpush1.bf16.msra.mxu0 %v6171_v3  ;;  %1114 = vmatpush1.bf16.msra.mxu1 %v6180_v9  ;;  %v172_v3 = vshrl.u32 %v171_v2, 7 }
  0x7d   :  { %1074 = vmatprep.subr.bf16.mxu0 %v6174_v4  ;;  %1115 = vmatprep.subr.bf16.mxu1 %v6183_v10 }
  0x7e   :  { %v6420_v4 = vsub.s32 0, %v172_v3  ;;  %v6425_v8 = vsub.s32 1, %v172_v3 }
  0x80   :  { %1075 = vmatpush1.bf16.msra.mxu0 %v6176_v7  ;;  %1116 = vmatpush1.bf16.msra.mxu1 %v6190_v12  ;;  %7343 = vst [vmem:[#allocation19_spill] sm:$0xff] %v6420_v4  ;;  %v169_v7 = vld [vmem:[%s7283_s4] sm:$0xf]  ;;  %7344 = vst [vmem:[#allocation20_spill] sm:$0xff] %v6425_v8 }
  0x81   :  { %1076 = vmatprep.subr.bf16.mxu0 %v6186_v11  ;;  %1117 = vmatprep.subr.bf16.mxu1 %v6193_v13  ;;  %v174_v10 = vrot.slane %v169_v7, %v6420_v4 }
  0x84   :  { %1077 = vmatpush1.bf16.msra.mxu0 %v6196_v14  ;;  %1118 = vmatpush1.bf16.msra.mxu1 %v6202_v16 }
  0x85   :  { %1078 = vmatprep.subr.bf16.mxu0 %v6199_v15  ;;  %1119 = vmatprep.subr.bf16.mxu1 %v6205_v17 }
  0x88   :  { %1079 = vmatpush1.bf16.msra.mxu0 %v6208_v18  ;;  %1120 = vmatpush1.bf16.msra.mxu1 %v6214_v20 }
  0x89   :  { %1080 = vmatprep.subr.bf16.mxu0 %v6211_v19  ;;  %1121 = vmatprep.subr.bf16.mxu1 %v6217_v21  ;;  %v6429_v21 = vsub.s32 3, %v172_v3 }
  0x8c   :  { %1081 = vmatpush1.bf16.msra.mxu0 %v6220_v22  ;;  %1122 = vmatpush1.bf16.msra.mxu1 %v6226_v24  ;;  %v6431_v24 = vsub.s32 2, %v172_v3 }
  0x8d   :  { %1082 = vmatprep.subr.bf16.mxu0 %v6223_v23  ;;  %1123 = vmatprep.subr.bf16.mxu1 %v6229_v25 }
  0x90   :  { %1083 = vmatpush1.bf16.msra.mxu0 %v6232_v26  ;;  %1124 = vmatpush1.bf16.msra.mxu1 %v6238_v28 }
  0x91   :  { %1084 = vmatprep.subr.bf16.mxu0 %v6235_v27  ;;  %1125 = vmatprep.subr.bf16.mxu1 %v6241_v29  ;;  %v186_v27 = vrot.slane %v169_v7, %v6429_v21  ;;  %v182_v29 = vrot.slane %v169_v7, %v6431_v24 }
  0x94   :  { %1085 = vmatpush1.bf16.msra.mxu0 %v6244_v30  ;;  %1126 = vmatpush1.bf16.msra.mxu1 %v6250_v32 }
  0x95   :  { %1086 = vmatprep.subr.bf16.mxu0 %v6247_v31  ;;  %1127 = vmatprep.subr.bf16.mxu1 %v6253_v33 }
  0x98   :  { %1087 = vmatpush2.bf16.msra.mxu0 %v6256_v34  ;;  %1128 = vmatpush1.bf16.msra.mxu1 %v6262_v36 }
  0x99   :  { %1088 = vmatprep.subr.bf16.mxu0 %v6259_v35  ;;  %1129 = vmatprep.subr.bf16.mxu1 %v6265_v37 }
  0x9c   :  { %1089 = vmatpush2.bf16.msra.mxu0 %v6268_v38  ;;  %1130 = vmatpush2.bf16.msra.mxu1 %v6274_v40 }
  0x9d   :  { %1090 = vmatprep.subr.bf16.mxu0 %v6271_v39  ;;  %1131 = vmatprep.subr.bf16.mxu1 %v6276_v41 }
  0xa0   :  { %1091 = vmatpush2.bf16.msra.mxu0 %v6280_v44  ;;  %1132 = vmatpush2.bf16.msra.mxu1 %v6286_v47 }
  0xa1   :  { %1092 = vmatprep.subr.bf16.mxu0 %v6283_v46  ;;  %1133 = vmatprep.subr.bf16.mxu1 %v6289_v48 }
  0xa4   :  { %1093 = vmatpush2.bf16.msra.mxu0 %v6292_v49  ;;  %1134 = vmatpush2.bf16.msra.mxu1 %v6296_v51 }
  0xa5   :  { %1094 = vmatprep.subr.bf16.mxu0 %v6294_v50  ;;  %1135 = vmatprep.subr.bf16.mxu1 %v6299_v52  ;;  %v88_v50 = vld [vmem:[#allocation7] sm:$0xff] }
  0xa8   :  { %1095 = vmatpush2.bf16.msra.mxu0 %v6301_v53  ;;  %1136 = vmatpush2.bf16.msra.mxu1 %v6308_v55 }
  0xa9   :  { %1096 = vmatprep.subr.bf16.mxu0 %v6304_v54  ;;  %1137 = vmatprep.subr.bf16.mxu1 %v6311_v56 }
  0xac   :  { %1097 = vmatpush2.bf16.msra.mxu0 %v6313_v57  ;;  %1138 = vmatpush2.bf16.msra.mxu1 %v6320_v59 }
  0xad   :  { %1098 = vmatprep.subr.bf16.mxu0 %v7342_v1  ;;  %1139 = vmatprep.subr.bf16.mxu1 %v6323_v60 }
  0xb0   :  { %1099 = vmatpush2.bf16.msra.mxu0 %v6325_v61  ;;  %1140 = vmatpush2.bf16.msra.mxu1 %v6332_v63 }
  0xb1   :  { %1100 = vmatprep.subr.bf16.mxu0 %v6328_v62  ;;  %1141 = vmatprep.subr.bf16.mxu1 %v6335_v5 }
  0xb4   :  { %1101 = vmatpush2.bf16.msra.mxu0 %v6337_v6  ;;  %1142 = vmatpush2.bf16.msra.mxu1 %v6342_v42 }
  0xb5   :  { %1630 = vmatprep.subr.bf16.mxu0 %v6163_v0  ;;  %1143 = vmatprep.subr.bf16.mxu1 %v6345_v45  ;;  %v178_v0 = vrot.slane %v169_v7, %v6425_v8  ;;  %v5378_v7 = vld [vmem:[#allocation2 + $0x8] sm:$0xff]  }
  0xb8   :  { %1144 = vmatpush2.bf16.msra.mxu1 %v6350_v58  ;;  %v89_v58 = vld [vmem:[#allocation7 + $0x8] sm:$0xff] }
 0x137   :  { %v545_v11 = vpop.f32.mrf.mxu0 }
 0x138   :  { %v546_v12 = vadd.f32 %v545_v11, %v174_v10  ;;  %v5931_v11 = vld [vmem:[#allocation8 + $0xc4] ss:$16 sps:$4 sm:$0xff]  }
 0x139   :  { %v547_v13 = vpop.f32.mrf.mxu0 }
 0x13a   :  { %v4694_v14 = vmul.f32 -1.442695, %v546_v12  ;;  %v548_v15 = vadd.f32 %v547_v13, %v178_v0  ;;  %v5932_v12 = vld [vmem:[#allocation8 + $0xc0] ss:$16 sps:$4 sm:$0xff]   ;;  %v5933_v13 = vld [vmem:[#allocation8 + $0xa4] ss:$16 sps:$4 sm:$0xff]  }
 0x13b   :  { %v549_v16 = vpop.f32.mrf.mxu0  ;;  %v588_v20 = vpop.f32.mrf.mxu1 }
 0x13c   :  { %5674 = vpow2.f32 %v4694_v14  ;;  %v4696_v17 = vmul.f32 -1.442695, %v548_v15  ;;  %v550_v18 = vadd.f32 %v549_v16, %v174_v10  ;;  %v589_v32 = vadd.f32 %v588_v20, %v182_v29  ;;  %v5934_v14 = vld [vmem:[#allocation8 + $0xa0] ss:$16 sps:$4 sm:$0xff]   ;;  %v5935_v15 = vld [vmem:[#allocation8 + $0x84] ss:$16 sps:$4 sm:$0xff]  }
 0x13d   :  { %v551_v19 = vpop.f32.mrf.mxu0  ;;  %v590_v25 = vpop.f32.mrf.mxu1  ;;  %v5936_v16 = vld [vmem:[#allocation8 + $0x80] ss:$16 sps:$4 sm:$0xff]   ;;  %v6442_v20 = vld [vmem:[#allocation8 + $0x64] ss:$16 sps:$4 sm:$0xff]  }
 0x13e   :  { %5676 = vpow2.f32 %v4696_v17  ;;  %v4695_v22 = vmul.f32 -1.442695, %v550_v18  ;;  %v552_v23 = vadd.f32 %v551_v19, %v178_v0  ;;  %v591_v31 = vadd.f32 %v590_v25, %v186_v27  ;;  %v5930_v0 = vld [vmem:[#allocation8 + $0xe0] ss:$16 sps:$4 sm:$0xff]   ;;  %v5937_v17 = vld [vmem:[#allocation8 + $0xe8] sm:$0xff]  ;;  %v5938_v18 = vld [vmem:[#allocation8 + $0xf8] sm:$0xff] }
 0x13f   :  { %v592_v28 = vpop.f32.mrf.mxu1  ;;  %v4807_v19 = vcombine.high %v5937_v17, %v5938_v18  ;;  %v6448_v25 = vld [vmem:[#allocation8 + $0xc8] ss:$16 sps:$4 sm:$0xff]  }
 0x140   :  { %5678 = vpow2.f32 %v4695_v22  ;;  %v4697_v26 = vmul.f32 -1.442695, %v552_v23  ;;  %v4698_v35 = vmul.f32 -1.442695, %v591_v31  ;;  %v593_v41 = vadd.f32 %v592_v28, %v182_v29  ;;  %v6444_v22 = vld [vmem:[#allocation8 + $0xcc] ss:$16 sps:$4 sm:$0xff]  }
 0x141   :  { %v594_v30 = vpop.f32.mrf.mxu1  ;;  %1673 = vmatprep.subr.bf16.mxu1 %v4807_v19  ;;  %v6446_v23 = vld [vmem:[#allocation8 + $0x60] ss:$16 sps:$4 sm:$0xff]   ;;  %v6460_v28 = vld [vmem:[#allocation8 + $0xa8] ss:$16 sps:$4 sm:$0xff]   ;;  %v6466_v29 = vld [vmem:[#allocation8 + $0x24] ss:$16 sps:$4 sm:$0xff]  }
 0x142   :  { %5680 = vpow2.f32 %v4697_v26  ;;  %v595_v33 = vadd.f32 %v594_v30, %v186_v27  ;;  %v6454_v26 = vld [vmem:[#allocation8 + $0x44] ss:$16 sps:$4 sm:$0xff]   ;;  %v6456_v27 = vld [vmem:[#allocation8 + $0xac] ss:$16 sps:$4 sm:$0xff]   ;;  %v6470_v31 = vld [vmem:[#allocation8 + $0x20] ss:$16 sps:$4 sm:$0xff]  }
 0x143   :  { %5682 = vtanh.f32 %v589_v32  ;;  %v6468_v30 = vld [vmem:[#allocation8 + $0x8c] ss:$16 sps:$4 sm:$0xff]   ;;  %v6472_v32 = vld [vmem:[#allocation8 + $0x88] ss:$16 sps:$4 sm:$0xff]  }
 0x144   :  { %v4699_v38 = vmul.f32 -1.442695, %v595_v33  ;;  %v6478_v33 = vld [vmem:[#allocation8 + $0x4] ss:$16 sps:$4 sm:$0xff]  }
 0x149   :  { %v5675_v34 = vpop.eup %5674 }
 0x14a   :  { %v603_v36 = vadd.f32 1.0, %v5675_v34  ;;  %v6480_v34 = vld [vmem:[#allocation8 + $0x6c] ss:$16 sps:$4 sm:$0xff]  }
 0x14b   :  { %v5677_v37 = vpop.eup %5676 }
 0x14c   :  { %5684 = vrcp.f32 %v603_v36  ;;  %v615_v39 = vadd.f32 1.0, %v5677_v37  ;;  %v6484_v36 = vld [vmem:[#allocation8 + $0x68] ss:$16 sps:$4 sm:$0xff]   ;;  %v6490_v37 = vld [vmem:[#allocation8 + $0x1e4] ss:$16 sps:$4 sm:$0xff]  }
 0x14d   :  { %v5679_v40 = vpop.eup %5678  ;;  %5686 = vpow2.f32 %v4698_v35  ;;  %v6482_v35 = vld [vmem:[#allocation8] ss:$16 sps:$4 sm:$0xff]  }
 0x14e   :  { %5688 = vrcp.f32 %v615_v39  ;;  %v604_v44 = vadd.f32 1.0, %v5679_v40  ;;  %v6494_v39 = vld [vmem:[#allocation8 + $0x1e0] ss:$16 sps:$4 sm:$0xff]   ;;  %v6496_v40 = vld [vmem:[#allocation8 + $0x48] ss:$16 sps:$4 sm:$0xff]  }
 0x14f   :  { %v5681_v46 = vpop.eup %5680  ;;  %5690 = vpow2.f32 %v4699_v38  ;;  %v6492_v38 = vld [vmem:[#allocation8 + $0x4c] ss:$16 sps:$4 sm:$0xff]  }
 0x150   :  { %5692 = vrcp.f32 %v604_v44  ;;  %v616_v47 = vadd.f32 1.0, %v5681_v46  ;;  %v5683_v48 = vpop.eup %5682  ;;  %v6504_v44 = vld [vmem:[#allocation8 + $0x2c] ss:$16 sps:$4 sm:$0xff]   ;;  %v6506_v46 = vld [vmem:[#allocation8 + $0x1c0] ss:$16 sps:$4 sm:$0xff]  }
 0x151   :  { %5694 = vtanh.f32 %v593_v41  ;;  %v6502_v41 = vld [vmem:[#allocation8 + $0x1c4] ss:$16 sps:$4 sm:$0xff]  }
 0x152   :  { %5696 = vrcp.f32 %v616_v47  ;;  %v6508_v47 = vld [vmem:[#allocation8 + $0x28] ss:$16 sps:$4 sm:$0xff]  }
 0x159   :  { %v5685_v49 = vpop.eup %5684 }
 0x15a   :  { %v5687_v51 = vpop.eup %5686  ;;  %v637_v55 = vmul.f32 %v5685_v49, %v5683_v48  ;;  %v6514_v48 = vld [vmem:[#allocation8 + $0x1a4] ss:$16 sps:$4 sm:$0xff]   ;;  %v6516_v49 = vld [vmem:[#allocation8 + $0xc] ss:$16 sps:$4 sm:$0xff]  }
 0x15b   :  { %v5689_v52 = vpop.eup %5688  ;;  %v629_v57 = vadd.f32 1.0, %v5687_v51  ;;  %v6520_v51 = vld [vmem:[#allocation8 + $0x8] ss:$16 sps:$4 sm:$0xff]  }
 0x15c   :  { %v5691_v53 = vpop.eup %5690  ;;  %v635_v54 = vmul.f32 %v5689_v52, %v88_v50  ;;  %v6518_v50 = vld [vmem:[#allocation8 + $0x1a0] ss:$16 sps:$4 sm:$0xff]   ;;  %v6526_v52 = vld [vmem:[#allocation8 + $0x184] ss:$16 sps:$4 sm:$0xff]  }
 0x15d   :  { %v5693_v56 = vpop.eup %5692  ;;  %v630_v62 = vadd.f32 1.0, %v5691_v53  ;;  %5698 = vrcp.f32 %v629_v57  ;;  %v6528_v53 = vld [vmem:[#allocation8 + $0x1ec] ss:$16 sps:$4 sm:$0xff]   ;;  %v6540_v57 = vld [vmem:[#allocation8 + $0x164] ss:$16 sps:$4 sm:$0xff]  }
 0x15e   :  { %v5695_v59 = vpop.eup %5694  ;;  %v6435_v60 = vadd.f32 %v637_v55, %v635_v54  ;;  %v6530_v54 = vld [vmem:[#allocation8 + $0x180] ss:$16 sps:$4 sm:$0xff]   ;;  %v6532_v55 = vld [vmem:[#allocation8 + $0x1e8] ss:$16 sps:$4 sm:$0xff]  }
 0x15f   :  { %v5697_v61 = vpop.eup %5696  ;;  %v638_v5 = vmul.f32 %v5695_v59, %v5693_v56  ;;  %v6538_v56 = vld [vmem:[#allocation8 + $0x160] ss:$16 sps:$4 sm:$0xff]   ;;  %v6544_v59 = vld [vmem:[#allocation8 + $0x1cc] ss:$16 sps:$4 sm:$0xff]  }
 0x160   :  { %v636_v63 = vmul.f32 %v5697_v61, %v89_v58  ;;  %5700 = vtanh.f32 %v6435_v60  ;;  %v6542_v58 = vld [vmem:[#allocation8 + $0x1c8] ss:$16 sps:$4 sm:$0xff]   ;;  %v6546_v61 = vld [vmem:[#allocation8 + $0x144] ss:$16 sps:$4 sm:$0xff]  }
 0x161   :  { %5702 = vrcp.f32 %v630_v62  ;;  %v6549_v62 = vld [vmem:[#allocation8 + $0x1ac] ss:$16 sps:$4 sm:$0xff]  }
 0x162   :  { %v6438_v6 = vadd.f32 %v638_v5, %v636_v63  ;;  %v6554_v63 = vld [vmem:[#allocation8 + $0x140] ss:$16 sps:$4 sm:$0xff]   ;;  %v6556_v5 = vld [vmem:[#allocation8 + $0x1a8] ss:$16 sps:$4 sm:$0xff]  }
 0x163   :  { %7345 = vst [vmem:[#allocation21_spill] sm:$0xff] %v6556_v5 }
 0x164   :  { %5704 = vtanh.f32 %v6438_v6 }
 0x16a   :  { %v5699_v42 = vpop.eup %5698 }
 0x16d   :  { %v5701_v43 = vpop.eup %5700 }
 0x16e   :  { %v5703_v45 = vpop.eup %5702  ;;  %v643_v2 = vmul.f32 %v5701_v43, %v5699_v42  ;;  %v6560_v42 = vld [vmem:[#allocation8 + $0x124] ss:$16 sps:$4 sm:$0xff]   ;;  %v6562_v43 = vld [vmem:[#allocation8 + $0x18c] ss:$16 sps:$4 sm:$0xff]  }
 0x16f   :  { %7346 = vst [vmem:[#allocation22_spill] sm:$0xff] %v6560_v42  ;;  %7347 = vst [vmem:[#allocation23_spill] sm:$0xff] %v6562_v43 }
 0x171   :  { %v5705_v1 = vpop.eup %5704 }
 0x172   :  { %v644_v3 = vmul.f32 %v5705_v1, %v5703_v45  ;;  %v6566_v45 = vld [vmem:[#allocation8 + $0x120] ss:$16 sps:$4 sm:$0xff]   ;;  %v6568_v1 = vld [vmem:[#allocation8 + $0x188] ss:$16 sps:$4 sm:$0xff]  }
 0x173   :  { %7348 = vst [vmem:[#allocation24_spill] sm:$0xff] %v6566_v45  ;;  %7349 = vst [vmem:[#allocation25_spill] sm:$0xff] %v6568_v1 }
 0x174   :  { %v645_v10 = vpack.c.bf16 %v644_v3, %v643_v2  ;;  %v6572_v2 = vld [vmem:[#allocation8 + $0x104] ss:$16 sps:$4 sm:$0xff]   ;;  %v6574_v3 = vld [vmem:[#allocation8 + $0x16c] ss:$16 sps:$4 sm:$0xff]  }
 0x175   :  { %7350 = vst [vmem:[#allocation26_spill] sm:$0xff] %v6572_v2  ;;  %7351 = vst [vmem:[#allocation27_spill] sm:$0xff] %v6574_v3 }
 0x176   :  { %5233 = vst [vmem:[#allocation10] sm:$0xff] %v645_v10   ;;  %1102 = vmatprep.mubr.bf16.mxu0 %v645_v10  ;;  %1145 = vmatprep.mubr.bf16.mxu1 %v645_v10  ;;  %v6580_v10 = vld [vmem:[#allocation8 + $0x168] ss:$16 sps:$4 sm:$0xff]  }
 0x177   :  { %1103 = vmatmul.mubr.bf16.vlgmr.msra.gmra.mxu0 %v5378_v7  ;;  %1146 = vmatmul.mubr.bf16.vlgmr.msra.gmra.mxu1 %v5378_v7  ;;  %v6578_v7 = vld [vmem:[#allocation8 + $0x100] ss:$16 sps:$4 sm:$0xff]   ;;  %7353 = vst [vmem:[#allocation29_spill] sm:$0xff] %v6580_v10 }
 0x178   :  { %1631 = vmatpush1.bf16.msra.mxu0 %v5930_v0  ;;  %1674 = vmatpush1.bf16.msra.mxu1 %v6180_v9  ;;  %v6458_v9 = vld [vmem:[#allocation8 + $0x40] ss:$16 sps:$4 sm:$0xff]   ;;  %7352 = vst [vmem:[#allocation28_spill] sm:$0xff] %v6578_v7  ;;  %v6586_v0 = vld [vmem:[#allocation8 + $0x14c] ss:$16 sps:$4 sm:$0xff]  }
 0x179   :  { %1632 = vmatprep.subr.bf16.mxu0 %v5931_v11  ;;  %1675 = vmatprep.subr.bf16.mxu1 %v6444_v22  ;;  %7354 = vst [vmem:[#allocation30_spill] sm:$0xff] %v6586_v0  ;;  %v6588_v11 = vld [vmem:[#allocation8 + $0x148] ss:$16 sps:$4 sm:$0xff]  }
 0x17a   :  { %7355 = vst [vmem:[#allocation31_spill] sm:$0xff] %v6588_v11 }
 0x17c   :  { %1633 = vmatpush1.bf16.msra.mxu0 %v5932_v12  ;;  %1676 = vmatpush1.bf16.msra.mxu1 %v6448_v25  ;;  %v6591_v12 = vld [vmem:[#allocation8 + $0x12c] ss:$16 sps:$4 sm:$0xff]  }
 0x17d   :  { %1634 = vmatprep.subr.bf16.mxu0 %v5933_v13  ;;  %1677 = vmatprep.subr.bf16.mxu1 %v6456_v27  ;;  %7356 = vst [vmem:[#allocation32_spill] sm:$0xff] %v6591_v12  ;;  %v6594_v13 = vld [vmem:[#allocation8 + $0x128] ss:$16 sps:$4 sm:$0xff]  }
 0x17e   :  { %7357 = vst [vmem:[#allocation33_spill] sm:$0xff] %v6594_v13 }
 0x180   :  { %1635 = vmatpush1.bf16.msra.mxu0 %v5934_v14  ;;  %1678 = vmatpush1.bf16.msra.mxu1 %v6460_v28  ;;  %v6597_v14 = vld [vmem:[#allocation8 + $0x10c] ss:$16 sps:$4 sm:$0xff]  }
 0x181   :  { %1636 = vmatprep.subr.bf16.mxu0 %v5935_v15  ;;  %1679 = vmatprep.subr.bf16.mxu1 %v6468_v30  ;;  %7358 = vst [vmem:[#allocation34_spill] sm:$0xff] %v6597_v14  ;;  %v6600_v15 = vld [vmem:[#allocation8 + $0x108] ss:$16 sps:$4 sm:$0xff]  }
 0x182   :  { %7359 = vst [vmem:[#allocation35_spill] sm:$0xff] %v6600_v15 }
 0x184   :  { %1637 = vmatpush1.bf16.msra.mxu0 %v5936_v16  ;;  %1680 = vmatpush1.bf16.msra.mxu1 %v6472_v32  ;;  %v728_v16 = vld [vmem:[%s7283_s4] sm:$0xf] }
 0x185   :  { %1638 = vmatprep.subr.bf16.mxu0 %v6442_v20  ;;  %1681 = vmatprep.subr.bf16.mxu1 %v6480_v34  ;;  %v733_v17 = vrot.slane %v728_v16, %v6420_v4  ;;  %v737_v18 = vrot.slane %v728_v16, %v6425_v8  ;;  %v745_v8 = vrot.slane %v728_v16, %v6429_v21 }
 0x188   :  { %1639 = vmatpush1.bf16.msra.mxu0 %v6446_v23  ;;  %1682 = vmatpush1.bf16.msra.mxu1 %v6484_v36 }
 0x189   :  { %1640 = vmatprep.subr.bf16.mxu0 %v6454_v26  ;;  %1683 = vmatprep.subr.bf16.mxu1 %v6492_v38 }
 0x18c   :  { %1641 = vmatpush1.bf16.msra.mxu0 %v6458_v9  ;;  %1684 = vmatpush1.bf16.msra.mxu1 %v6496_v40 }
 0x18d   :  { %1642 = vmatprep.subr.bf16.mxu0 %v6466_v29  ;;  %1685 = vmatprep.subr.bf16.mxu1 %v6504_v44 }
 0x190   :  { %1643 = vmatpush1.bf16.msra.mxu0 %v6470_v31  ;;  %1686 = vmatpush1.bf16.msra.mxu1 %v6508_v47 }
 0x191   :  { %1644 = vmatprep.subr.bf16.mxu0 %v6478_v33  ;;  %1687 = vmatprep.subr.bf16.mxu1 %v6516_v49 }
 0x194   :  { %1645 = vmatpush1.bf16.msra.mxu0 %v6482_v35  ;;  %1688 = vmatpush1.bf16.msra.mxu1 %v6520_v51 }
 0x195   :  { %1646 = vmatprep.subr.bf16.mxu0 %v6490_v37  ;;  %1689 = vmatprep.subr.bf16.mxu1 %v6528_v53 }
 0x198   :  { %1647 = vmatpush2.bf16.msra.mxu0 %v6494_v39  ;;  %1690 = vmatpush2.bf16.msra.mxu1 %v6532_v55 }
 0x199   :  { %1648 = vmatprep.subr.bf16.mxu0 %v6502_v41  ;;  %1691 = vmatprep.subr.bf16.mxu1 %v6544_v59 }
 0x19c   :  { %1649 = vmatpush2.bf16.msra.mxu0 %v6506_v46  ;;  %1692 = vmatpush2.bf16.msra.mxu1 %v6542_v58 }
 0x19d   :  { %1650 = vmatprep.subr.bf16.mxu0 %v6514_v48  ;;  %1693 = vmatprep.subr.bf16.mxu1 %v6549_v62 }
 0x1a0   :  { %1651 = vmatpush2.bf16.msra.mxu0 %v6518_v50  ;;  %1694 = vmatpush2.bf16.msra.mxu1 %v6556_v5 }
 0x1a1   :  { %1652 = vmatprep.subr.bf16.mxu0 %v6526_v52  ;;  %1695 = vmatprep.subr.bf16.mxu1 %v6562_v43 }
 0x1a4   :  { %1653 = vmatpush2.bf16.msra.mxu0 %v6530_v54  ;;  %1696 = vmatpush2.bf16.msra.mxu1 %v6568_v1 }
 0x1a5   :  { %1654 = vmatprep.subr.bf16.mxu0 %v6540_v57  ;;  %1697 = vmatprep.subr.bf16.mxu1 %v6574_v3 }
 0x1a8   :  { %1655 = vmatpush2.bf16.msra.mxu0 %v6538_v56  ;;  %1698 = vmatpush2.bf16.msra.mxu1 %v6580_v10 }
 0x1a9   :  { %1656 = vmatprep.subr.bf16.mxu0 %v6546_v61  ;;  %1699 = vmatprep.subr.bf16.mxu1 %v6586_v0 }
 0x1ac   :  { %1657 = vmatpush2.bf16.msra.mxu0 %v6554_v63  ;;  %1700 = vmatpush2.bf16.msra.mxu1 %v6588_v11 }
 0x1ad   :  { %1658 = vmatprep.subr.bf16.mxu0 %v6560_v42  ;;  %1701 = vmatprep.subr.bf16.mxu1 %v6591_v12 }
 0x1b0   :  { %1659 = vmatpush2.bf16.msra.mxu0 %v6566_v45  ;;  %1702 = vmatpush2.bf16.msra.mxu1 %v6594_v13 }
 0x1b1   :  { %1660 = vmatprep.subr.bf16.mxu0 %v6572_v2  ;;  %1703 = vmatprep.subr.bf16.mxu1 %v6597_v14 }
 0x1b4   :  { %1661 = vmatpush2.bf16.msra.mxu0 %v6578_v7  ;;  %1704 = vmatpush2.bf16.msra.mxu1 %v6600_v15 }
 0x237   :  { %v1104_v19 = vpop.f32.mrf.mxu0  ;;  %v1147_v11 = vpop.f32.mrf.mxu1 }
 0x238   :  { %v1105_v12 = vadd.f32 %v1104_v19, %v733_v17  ;;  %v741_v19 = vrot.slane %v728_v16, %v6431_v24 }
 0x239   :  { %v1106_v0 = vpop.f32.mrf.mxu0  ;;  %v1149_v2 = vpop.f32.mrf.mxu1 }
 0x23a   :  { %v4767_v10 = vmul.f32 -1.442695, %v1105_v12  ;;  %v1107_v13 = vadd.f32 %v1106_v0, %v737_v18  ;;  %v1150_v12 = vadd.f32 %v1149_v2, %v745_v8  ;;  %v1148_v0 = vadd.f32 %v1147_v11, %v741_v19 }
 0x23b   :  { %v1108_v7 = vpop.f32.mrf.mxu0  ;;  %v1151_v4 = vpop.f32.mrf.mxu1 }
 0x23c   :  { %5706 = vpow2.f32 %v4767_v10  ;;  %v4769_v3 = vmul.f32 -1.442695, %v1107_v13  ;;  %v1109_v14 = vadd.f32 %v1108_v7, %v733_v17  ;;  %v4771_v13 = vmul.f32 -1.442695, %v1150_v12 }
 0x23d   :  { %v1110_v15 = vpop.f32.mrf.mxu0  ;;  %v1153_v42 = vpop.f32.mrf.mxu1 }
 0x23e   :  { %5708 = vpow2.f32 %v4769_v3  ;;  %v4768_v1 = vmul.f32 -1.442695, %v1109_v14  ;;  %v1111_v45 = vadd.f32 %v1110_v15, %v737_v18  ;;  %v1154_v5 = vadd.f32 %v1153_v42, %v745_v8 }
 0x240   :  { %5710 = vpow2.f32 %v4768_v1  ;;  %v4770_v43 = vmul.f32 -1.442695, %v1111_v45  ;;  %v4772_v3 = vmul.f32 -1.442695, %v1154_v5  ;;  %v1152_v45 = vadd.f32 %v1151_v4, %v741_v19 }
 0x242   :  { %5712 = vpow2.f32 %v4770_v43 }
 0x243   :  { %5714 = vtanh.f32 %v1148_v0 }
 0x249   :  { %v5707_v10 = vpop.eup %5706 }
 0x24a   :  { %v1162_v7 = vadd.f32 1.0, %v5707_v10 }
 0x24b   :  { %v5709_v17 = vpop.eup %5708 }
 0x24c   :  { %5716 = vrcp.f32 %v1162_v7  ;;  %v1174_v14 = vadd.f32 1.0, %v5709_v17 }
 0x24d   :  { %v5711_v1 = vpop.eup %5710  ;;  %5718 = vpow2.f32 %v4771_v13 }
 0x24e   :  { %5720 = vrcp.f32 %v1174_v14  ;;  %v1163_v15 = vadd.f32 1.0, %v5711_v1 }
 0x24f   :  { %v5713_v43 = vpop.eup %5712  ;;  %5722 = vpow2.f32 %v4772_v3 }
 0x250   :  { %5724 = vrcp.f32 %v1163_v15  ;;  %v1175_v16 = vadd.f32 1.0, %v5713_v43  ;;  %v5715_v8 = vpop.eup %5714 }
 0x251   :  { %5726 = vtanh.f32 %v1152_v45 }
 0x252   :  { %5728 = vrcp.f32 %v1175_v16 }
 0x259   :  { %v5717_v42 = vpop.eup %5716 }
 0x25a   :  { %v5719_v2 = vpop.eup %5718  ;;  %v1196_v12 = vmul.f32 %v5717_v42, %v5715_v8  ;;  %v5452_v8 = vld [vmem:[#allocation2 + $0x10] sm:$0xff]  }
 0x25b   :  { %v5721_v11 = vpop.eup %5720  ;;  %v1188_v10 = vadd.f32 1.0, %v5719_v2  ;;  %v6621_v2 = vld [vmem:[#allocation8 + $0xe0] ss:$16 sps:$4 sm:$0xff]  }
 0x25c   :  { %v5723_v18 = vpop.eup %5722  ;;  %v1194_v5 = vmul.f32 %v5721_v11, %v6435_v60  ;;  %v6625_v11 = vld [vmem:[#allocation8 + $0xc4] ss:$16 sps:$4 sm:$0xff]  }
 0x25d   :  { %v5725_v0 = vpop.eup %5724  ;;  %v1189_v7 = vadd.f32 1.0, %v5723_v18  ;;  %5730 = vrcp.f32 %v1188_v10  ;;  %v6627_v18 = vld [vmem:[#allocation8 + $0xc0] ss:$16 sps:$4 sm:$0xff]   ;;  %v5476_v10 = vld [vmem:[#allocation8 + $0xec] ss:$16 sps:$4 sm:$0xff]  }
 0x25e   :  { %v5727_v13 = vpop.eup %5726  ;;  %v6612_v4 = vadd.f32 %v1196_v12, %v1194_v5  ;;  %v6631_v5 = vld [vmem:[#allocation8 + $0xa4] ss:$16 sps:$4 sm:$0xff]   ;;  %v6633_v12 = vld [vmem:[#allocation8 + $0xa0] ss:$16 sps:$4 sm:$0xff]   ;;  %2233 = vmatprep.subr.bf16.mxu1 %v5476_v10 }
 0x25f   :  { %v5729_v19 = vpop.eup %5728  ;;  %v1197_v3 = vmul.f32 %v5727_v13, %v5725_v0  ;;  %v6637_v0 = vld [vmem:[#allocation8 + $0x84] ss:$16 sps:$4 sm:$0xff]   ;;  %v6639_v13 = vld [vmem:[#allocation8 + $0x80] ss:$16 sps:$4 sm:$0xff]  }
 0x260   :  { %v1195_v17 = vmul.f32 %v5729_v19, %v6438_v6  ;;  %5732 = vtanh.f32 %v6612_v4  ;;  %v6619_v6 = vld [vmem:[#allocation8 + $0xe4] ss:$16 sps:$4 sm:$0xff]   ;;  %v6641_v19 = vld [vmem:[#allocation8 + $0xe8] ss:$16 sps:$4 sm:$0xff]  }
 0x261   :  { %5734 = vrcp.f32 %v1189_v7  ;;  %2190 = vmatprep.subr.bf16.mxu0 %v6619_v6 }
 0x262   :  { %v6616_v14 = vadd.f32 %v1197_v3, %v1195_v17 }
 0x264   :  { %5736 = vtanh.f32 %v6616_v14 }
 0x26a   :  { %v5731_v60 = vpop.eup %5730 }
 0x26d   :  { %v5733_v1 = vpop.eup %5732 }
 0x26e   :  { %v5735_v45 = vpop.eup %5734  ;;  %v1202_v43 = vmul.f32 %v5733_v1, %v5731_v60 }
 0x271   :  { %v5737_v15 = vpop.eup %5736 }
 0x272   :  { %v1203_v16 = vmul.f32 %v5737_v15, %v5735_v45 }
 0x274   :  { %v1204_v42 = vpack.c.bf16 %v1203_v16, %v1202_v43 }
 0x276   :  { %5238 = vst [vmem:[#allocation10 + $0x8] sm:$0xff] %v1204_v42   ;;  %1662 = vmatprep.mubr.bf16.mxu0 %v1204_v42  ;;  %1705 = vmatprep.mubr.bf16.mxu1 %v1204_v42 }
 0x277   :  { %1663 = vmatmul.mubr.bf16.vlgmr.msra.gmra.mxu0 %v5452_v8  ;;  %1706 = vmatmul.mubr.bf16.vlgmr.msra.gmra.mxu1 %v5452_v8 }
 0x278   :  { %2191 = vmatpush1.bf16.msra.mxu0 %v6621_v2  ;;  %2234 = vmatpush1.bf16.msra.mxu1 %v6641_v19 }
 0x279   :  { %2192 = vmatprep.subr.bf16.mxu0 %v6625_v11  ;;  %2235 = vmatprep.subr.bf16.mxu1 %v6444_v22  ;;  %v7361_v22 = vld [vmem:[#allocation22_spill] sm:$0xff] }
 0x27c   :  { %2193 = vmatpush1.bf16.msra.mxu0 %v6627_v18  ;;  %2236 = vmatpush1.bf16.msra.mxu1 %v6448_v25  ;;  %v7363_v25 = vld [vmem:[#allocation24_spill] sm:$0xff] }
 0x27d   :  { %2194 = vmatprep.subr.bf16.mxu0 %v6631_v5  ;;  %2237 = vmatprep.subr.bf16.mxu1 %v6456_v27  ;;  %v7365_v27 = vld [vmem:[#allocation26_spill] sm:$0xff] }
 0x280   :  { %2195 = vmatpush1.bf16.msra.mxu0 %v6633_v12  ;;  %2238 = vmatpush1.bf16.msra.mxu1 %v6460_v28  ;;  %v7367_v28 = vld [vmem:[#allocation28_spill] sm:$0xff] }
 0x281   :  { %2196 = vmatprep.subr.bf16.mxu0 %v6637_v0  ;;  %2239 = vmatprep.subr.bf16.mxu1 %v6468_v30  ;;  %v7369_v30 = vld [vmem:[#allocation30_spill] sm:$0xff] }
 0x284   :  { %2197 = vmatpush1.bf16.msra.mxu0 %v6639_v13  ;;  %2240 = vmatpush1.bf16.msra.mxu1 %v6472_v32  ;;  %v7371_v32 = vld [vmem:[#allocation32_spill] sm:$0xff] }
 0x285   :  { %2198 = vmatprep.subr.bf16.mxu0 %v6442_v20  ;;  %2241 = vmatprep.subr.bf16.mxu1 %v6480_v34  ;;  %v7360_v20 = vld [vmem:[#allocation21_spill] sm:$0xff]  ;;  %v7373_v34 = vld [vmem:[#allocation34_spill] sm:$0xff] }
 0x288   :  { %2199 = vmatpush1.bf16.msra.mxu0 %v6446_v23  ;;  %2242 = vmatpush1.bf16.msra.mxu1 %v6484_v36  ;;  %v7362_v23 = vld [vmem:[#allocation23_spill] sm:$0xff] }
 0x289   :  { %2200 = vmatprep.subr.bf16.mxu0 %v6454_v26  ;;  %2243 = vmatprep.subr.bf16.mxu1 %v6492_v38  ;;  %v7364_v26 = vld [vmem:[#allocation25_spill] sm:$0xff]  ;;  %v1288_v36 = vld [vmem:[%s7283_s4] sm:$0xf] }
 0x28c   :  { %2201 = vmatpush1.bf16.msra.mxu0 %v6458_v9  ;;  %2244 = vmatpush1.bf16.msra.mxu1 %v6496_v40  ;;  %v7366_v9 = vld [vmem:[#allocation27_spill] sm:$0xff] }
 0x28d   :  { %2202 = vmatprep.subr.bf16.mxu0 %v6466_v29  ;;  %2245 = vmatprep.subr.bf16.mxu1 %v6504_v44  ;;  %v7368_v29 = vld [vmem:[#allocation29_spill] sm:$0xff] }
 0x290   :  { %2203 = vmatpush1.bf16.msra.mxu0 %v6470_v31  ;;  %2246 = vmatpush1.bf16.msra.mxu1 %v6508_v47  ;;  %v7370_v31 = vld [vmem:[#allocation31_spill] sm:$0xff] }
 0x291   :  { %2204 = vmatprep.subr.bf16.mxu0 %v6478_v33  ;;  %2247 = vmatprep.subr.bf16.mxu1 %v6516_v49  ;;  %v7372_v33 = vld [vmem:[#allocation33_spill] sm:$0xff] }
 0x294   :  { %2205 = vmatpush1.bf16.msra.mxu0 %v6482_v35  ;;  %2248 = vmatpush1.bf16.msra.mxu1 %v6520_v51  ;;  %v7374_v35 = vld [vmem:[#allocation35_spill] sm:$0xff] }
 0x295   :  { %2206 = vmatprep.subr.bf16.mxu0 %v6490_v37  ;;  %2249 = vmatprep.subr.bf16.mxu1 %v6528_v53  ;;  %v7375_v37 = vld [vmem:[#allocation19_spill] sm:$0xff] }
 0x296   :  { %v1293_v38 = vrot.slane %v1288_v36, %v7375_v37 }
 0x298   :  { %2207 = vmatpush2.bf16.msra.mxu0 %v6494_v39  ;;  %2250 = vmatpush2.bf16.msra.mxu1 %v6532_v55  ;;  %v7376_v39 = vld [vmem:[#allocation20_spill] sm:$0xff] }
 0x299   :  { %2208 = vmatprep.subr.bf16.mxu0 %v6502_v41  ;;  %2251 = vmatprep.subr.bf16.mxu1 %v6544_v59  ;;  %v1297_v40 = vrot.slane %v1288_v36, %v7376_v39  ;;  %v1305_v59 = vrot.slane %v1288_v36, %v6429_v21 }
 0x29c   :  { %2209 = vmatpush2.bf16.msra.mxu0 %v6506_v46  ;;  %2252 = vmatpush2.bf16.msra.mxu1 %v6542_v58 }
 0x29d   :  { %2210 = vmatprep.subr.bf16.mxu0 %v6514_v48  ;;  %2253 = vmatprep.subr.bf16.mxu1 %v6549_v62 }
 0x2a0   :  { %2211 = vmatpush2.bf16.msra.mxu0 %v6518_v50  ;;  %2254 = vmatpush2.bf16.msra.mxu1 %v7360_v20 }
 0x2a1   :  { %2212 = vmatprep.subr.bf16.mxu0 %v6526_v52  ;;  %2255 = vmatprep.subr.bf16.mxu1 %v7362_v23 }
 0x2a4   :  { %2213 = vmatpush2.bf16.msra.mxu0 %v6530_v54  ;;  %2256 = vmatpush2.bf16.msra.mxu1 %v7364_v26 }
 0x2a5   :  { %2214 = vmatprep.subr.bf16.mxu0 %v6540_v57  ;;  %2257 = vmatprep.subr.bf16.mxu1 %v7366_v9 }
 0x2a8   :  { %2215 = vmatpush2.bf16.msra.mxu0 %v6538_v56  ;;  %2258 = vmatpush2.bf16.msra.mxu1 %v7368_v29 }
 0x2a9   :  { %2216 = vmatprep.subr.bf16.mxu0 %v6546_v61  ;;  %2259 = vmatprep.subr.bf16.mxu1 %v7369_v30  ;;  %v1301_v61 = vrot.slane %v1288_v36, %v6431_v24 }
 0x2ac   :  { %2217 = vmatpush2.bf16.msra.mxu0 %v6554_v63  ;;  %2260 = vmatpush2.bf16.msra.mxu1 %v7370_v31 }
 0x2ad   :  { %2218 = vmatprep.subr.bf16.mxu0 %v7361_v22  ;;  %2261 = vmatprep.subr.bf16.mxu1 %v7371_v32 }
 0x2b0   :  { %2219 = vmatpush2.bf16.msra.mxu0 %v7363_v25  ;;  %2262 = vmatpush2.bf16.msra.mxu1 %v7372_v33 }
 0x2b1   :  { %2220 = vmatprep.subr.bf16.mxu0 %v7365_v27  ;;  %2263 = vmatprep.subr.bf16.mxu1 %v7373_v34 }
 0x2b4   :  { %2221 = vmatpush2.bf16.msra.mxu0 %v7367_v28  ;;  %2264 = vmatpush2.bf16.msra.mxu1 %v7374_v35 }
 0x2b5   :  { %2750 = vmatprep.subr.bf16.mxu0 %v6619_v6  ;;  %2793 = vmatprep.subr.bf16.mxu1 %v5476_v10 }
 0x337   :  { %v1664_v41 = vpop.f32.mrf.mxu0  ;;  %v1707_v46 = vpop.f32.mrf.mxu1 }
 0x338   :  { %v1665_v44 = vadd.f32 %v1664_v41, %v1293_v38  ;;  %v1708_v7 = vadd.f32 %v1707_v46, %v1301_v61 }
 0x339   :  { %v1666_v47 = vpop.f32.mrf.mxu0  ;;  %v1709_v53 = vpop.f32.mrf.mxu1 }
 0x33a   :  { %v4840_v48 = vmul.f32 -1.442695, %v1665_v44  ;;  %v1667_v49 = vadd.f32 %v1666_v47, %v1297_v40  ;;  %v1710_v63 = vadd.f32 %v1709_v53, %v1305_v59  ;;  %v5477_v47 = vld [vmem:[#allocation2 + $0x18] sm:$0xff]  }
 0x33b   :  { %v1668_v50 = vpop.f32.mrf.mxu0  ;;  %v1711_v58 = vpop.f32.mrf.mxu1  ;;  %v6762_v53 = vld [vmem:[#allocation8 + $0x6c] ss:$16 sps:$4 sm:$0xff]  }
 0x33c   :  { %5738 = vpow2.f32 %v4840_v48  ;;  %v4842_v51 = vmul.f32 -1.442695, %v1667_v49  ;;  %v1669_v52 = vadd.f32 %v1668_v50, %v1293_v38  ;;  %v4844_v60 = vmul.f32 -1.442695, %v1710_v63  ;;  %v6726_v49 = vld [vmem:[#allocation8 + $0xcc] ss:$16 sps:$4 sm:$0xff]  }
 0x33d   :  { %v1670_v54 = vpop.f32.mrf.mxu0  ;;  %v1713_v62 = vpop.f32.mrf.mxu1  ;;  %v1712_v8 = vadd.f32 %v1711_v58, %v1301_v61  ;;  %v6728_v50 = vld [vmem:[#allocation8 + $0x60] ss:$16 sps:$4 sm:$0xff]   ;;  %v6784_v61 = vld [vmem:[#allocation8 + $0x1c4] ss:$16 sps:$4 sm:$0xff]  }
 0x33e   :  { %5740 = vpow2.f32 %v4842_v51  ;;  %v4841_v55 = vmul.f32 -1.442695, %v1669_v52  ;;  %v1671_v56 = vadd.f32 %v1670_v54, %v1297_v40  ;;  %v1714_v17 = vadd.f32 %v1713_v62, %v1305_v59  ;;  %v6754_v51 = vld [vmem:[#allocation8 + $0x88] ss:$16 sps:$4 sm:$0xff]   ;;  %v6760_v52 = vld [vmem:[#allocation8 + $0x4] ss:$16 sps:$4 sm:$0xff]  }
 0x33f   :  { %v6764_v54 = vld [vmem:[#allocation8] ss:$16 sps:$4 sm:$0xff]   ;;  %v6778_v59 = vld [vmem:[#allocation8 + $0x48] ss:$16 sps:$4 sm:$0xff]   ;;  %v6786_v62 = vld [vmem:[#allocation8 + $0x2c] ss:$16 sps:$4 sm:$0xff]  }
 0x340   :  { %5742 = vpow2.f32 %v4841_v55  ;;  %v4843_v57 = vmul.f32 -1.442695, %v1671_v56  ;;  %v4845_v15 = vmul.f32 -1.442695, %v1714_v17  ;;  %v6766_v55 = vld [vmem:[#allocation8 + $0x68] ss:$16 sps:$4 sm:$0xff]  }
 0x341   :  { %v6772_v56 = vld [vmem:[#allocation8 + $0x1e4] ss:$16 sps:$4 sm:$0xff]   ;;  %v6776_v58 = vld [vmem:[#allocation8 + $0x1e0] ss:$16 sps:$4 sm:$0xff]  }
 0x342   :  { %5744 = vpow2.f32 %v4843_v57  ;;  %v6774_v57 = vld [vmem:[#allocation8 + $0x4c] ss:$16 sps:$4 sm:$0xff]   ;;  %v6788_v63 = vld [vmem:[#allocation8 + $0x1c0] ss:$16 sps:$4 sm:$0xff]   ;;  %v6796_v17 = vld [vmem:[#allocation8 + $0x1a4] ss:$16 sps:$4 sm:$0xff]  }
 0x343   :  { %5746 = vtanh.f32 %v1708_v7  ;;  %v6790_v7 = vld [vmem:[#allocation8 + $0x28] ss:$16 sps:$4 sm:$0xff]  }
 0x349   :  { %v5739_v3 = vpop.eup %5738 }
 0x34a   :  { %v1722_v1 = vadd.f32 1.0, %v5739_v3  ;;  %v6798_v3 = vld [vmem:[#allocation8 + $0xc] ss:$16 sps:$4 sm:$0xff]  }
 0x34b   :  { %v5741_v45 = vpop.eup %5740 }
 0x34c   :  { %5748 = vrcp.f32 %v1722_v1  ;;  %v1734_v43 = vadd.f32 1.0, %v5741_v45  ;;  %v6802_v1 = vld [vmem:[#allocation8 + $0x8] ss:$16 sps:$4 sm:$0xff]   ;;  %v6808_v45 = vld [vmem:[#allocation8 + $0x184] ss:$16 sps:$4 sm:$0xff]  }
 0x34d   :  { %v5743_v16 = vpop.eup %5742  ;;  %5750 = vpow2.f32 %v4844_v60  ;;  %v6800_v60 = vld [vmem:[#allocation8 + $0x1a0] ss:$16 sps:$4 sm:$0xff]  }
 0x34e   :  { %5752 = vrcp.f32 %v1734_v43  ;;  %v1723_v42 = vadd.f32 1.0, %v5743_v16  ;;  %v6812_v43 = vld [vmem:[#allocation8 + $0x180] ss:$16 sps:$4 sm:$0xff]   ;;  %v6814_v16 = vld [vmem:[#allocation8 + $0x1e8] ss:$16 sps:$4 sm:$0xff]  }
 0x34f   :  { %v5745_v6 = vpop.eup %5744  ;;  %5754 = vpow2.f32 %v4845_v15  ;;  %v6810_v15 = vld [vmem:[#allocation8 + $0x1ec] ss:$16 sps:$4 sm:$0xff]  }
 0x350   :  { %5756 = vrcp.f32 %v1723_v42  ;;  %v1735_v10 = vadd.f32 1.0, %v5745_v6  ;;  %v5747_v20 = vpop.eup %5746  ;;  %v6822_v42 = vld [vmem:[#allocation8 + $0x164] ss:$16 sps:$4 sm:$0xff]   ;;  %v6824_v6 = vld [vmem:[#allocation8 + $0x1c8] ss:$16 sps:$4 sm:$0xff]  }
 0x351   :  { %5758 = vtanh.f32 %v1712_v8  ;;  %v6820_v8 = vld [vmem:[#allocation8 + $0x160] ss:$16 sps:$4 sm:$0xff]  }
 0x352   :  { %5760 = vrcp.f32 %v1735_v10  ;;  %v6826_v10 = vld [vmem:[#allocation8 + $0x1cc] ss:$16 sps:$4 sm:$0xff]  }
 0x359   :  { %v5749_v22 = vpop.eup %5748 }
 0x35a   :  { %v5751_v23 = vpop.eup %5750  ;;  %v1756_v9 = vmul.f32 %v5749_v22, %v5747_v20  ;;  %v6828_v20 = vld [vmem:[#allocation8 + $0x144] ss:$16 sps:$4 sm:$0xff]   ;;  %v6831_v22 = vld [vmem:[#allocation8 + $0x1ac] ss:$16 sps:$4 sm:$0xff]  }
 0x35b   :  { %v5753_v25 = vpop.eup %5752  ;;  %v1748_v29 = vadd.f32 1.0, %v5751_v23  ;;  %v6836_v23 = vld [vmem:[#allocation8 + $0x140] ss:$16 sps:$4 sm:$0xff]  }
 0x35c   :  { %v5755_v26 = vpop.eup %5754  ;;  %v1754_v27 = vmul.f32 %v5753_v25, %v6612_v4  ;;  %v6838_v25 = vld [vmem:[#allocation8 + $0x1a8] ss:$16 sps:$4 sm:$0xff]  }
 0x35d   :  { %v5757_v28 = vpop.eup %5756  ;;  %v1749_v33 = vadd.f32 1.0, %v5755_v26  ;;  %5762 = vrcp.f32 %v1748_v29  ;;  %7377 = vst [vmem:[#allocation21_spill] sm:$0xff] %v6838_v25  ;;  %v6842_v26 = vld [vmem:[#allocation8 + $0x124] ss:$16 sps:$4 sm:$0xff]  }
 0x35e   :  { %v5759_v30 = vpop.eup %5758  ;;  %v6709_v31 = vadd.f32 %v1756_v9, %v1754_v27  ;;  %7378 = vst [vmem:[#allocation22_spill] sm:$0xff] %v6842_v26  ;;  %v6844_v27 = vld [vmem:[#allocation8 + $0x18c] ss:$16 sps:$4 sm:$0xff]   ;;  %v6848_v9 = vld [vmem:[#allocation8 + $0x120] ss:$16 sps:$4 sm:$0xff]  }
 0x35f   :  { %v5761_v32 = vpop.eup %5760  ;;  %v1757_v35 = vmul.f32 %v5759_v30, %v5757_v28  ;;  %7379 = vst [vmem:[#allocation23_spill] sm:$0xff] %v6844_v27  ;;  %7380 = vst [vmem:[#allocation24_spill] sm:$0xff] %v6848_v9  ;;  %v6850_v28 = vld [vmem:[#allocation8 + $0x188] ss:$16 sps:$4 sm:$0xff]   ;;  %v6854_v29 = vld [vmem:[#allocation8 + $0x104] ss:$16 sps:$4 sm:$0xff]  }
 0x360   :  { %v1755_v34 = vmul.f32 %v5761_v32, %v6616_v14  ;;  %5764 = vtanh.f32 %v6709_v31  ;;  %v6724_v14 = vld [vmem:[#allocation8 + $0x64] ss:$16 sps:$4 sm:$0xff]   ;;  %7381 = vst [vmem:[#allocation25_spill] sm:$0xff] %v6850_v28  ;;  %7382 = vst [vmem:[#allocation26_spill] sm:$0xff] %v6854_v29  ;;  %v6856_v30 = vld [vmem:[#allocation8 + $0x16c] ss:$16 sps:$4 sm:$0xff]  }
 0x361   :  { %5766 = vrcp.f32 %v1749_v33  ;;  %7383 = vst [vmem:[#allocation27_spill] sm:$0xff] %v6856_v30  ;;  %v6860_v32 = vld [vmem:[#allocation8 + $0x100] ss:$16 sps:$4 sm:$0xff]   ;;  %v6862_v33 = vld [vmem:[#allocation8 + $0x168] ss:$16 sps:$4 sm:$0xff]  }
 0x362   :  { %v6713_v36 = vadd.f32 %v1757_v35, %v1755_v34  ;;  %7384 = vst [vmem:[#allocation28_spill] sm:$0xff] %v6860_v32  ;;  %7385 = vst [vmem:[#allocation29_spill] sm:$0xff] %v6862_v33  ;;  %v6868_v34 = vld [vmem:[#allocation8 + $0x14c] ss:$16 sps:$4 sm:$0xff]   ;;  %v6870_v35 = vld [vmem:[#allocation8 + $0x148] ss:$16 sps:$4 sm:$0xff]  }
 0x363   :  { %7386 = vst [vmem:[#allocation30_spill] sm:$0xff] %v6868_v34  ;;  %7387 = vst [vmem:[#allocation31_spill] sm:$0xff] %v6870_v35 }
 0x364   :  { %5768 = vtanh.f32 %v6713_v36 }
 0x36a   :  { %v5763_v4 = vpop.eup %5762 }
 0x36d   :  { %v5765_v38 = vpop.eup %5764 }
 0x36e   :  { %v5767_v40 = vpop.eup %5766  ;;  %v1762_v44 = vmul.f32 %v5765_v38, %v5763_v4  ;;  %v6873_v4 = vld [vmem:[#allocation8 + $0x12c] ss:$16 sps:$4 sm:$0xff]   ;;  %v6876_v38 = vld [vmem:[#allocation8 + $0x128] ss:$16 sps:$4 sm:$0xff]  }
 0x36f   :  { %7388 = vst [vmem:[#allocation32_spill] sm:$0xff] %v6873_v4  ;;  %7389 = vst [vmem:[#allocation33_spill] sm:$0xff] %v6876_v38 }
 0x371   :  { %v5769_v41 = vpop.eup %5768 }
 0x372   :  { %v1763_v46 = vmul.f32 %v5769_v41, %v5767_v40  ;;  %v6879_v40 = vld [vmem:[#allocation8 + $0x10c] ss:$16 sps:$4 sm:$0xff]   ;;  %v6882_v41 = vld [vmem:[#allocation8 + $0x108] ss:$16 sps:$4 sm:$0xff]  }
 0x373   :  { %7390 = vst [vmem:[#allocation34_spill] sm:$0xff] %v6879_v40  ;;  %7391 = vst [vmem:[#allocation35_spill] sm:$0xff] %v6882_v41 }
 0x374   :  { %v1764_v48 = vpack.c.bf16 %v1763_v46, %v1762_v44  ;;  %v1848_v44 = vld [vmem:[%s7283_s4] sm:$0xf] }
 0x375   :  { %v1853_v46 = vrot.slane %v1848_v44, %v7375_v37 }
 0x376   :  { %5243 = vst [vmem:[#allocation10 + $0x10] sm:$0xff] %v1764_v48   ;;  %2222 = vmatprep.mubr.bf16.mxu0 %v1764_v48  ;;  %2265 = vmatprep.mubr.bf16.mxu1 %v1764_v48 }
 0x377   :  { %2223 = vmatmul.mubr.bf16.vlgmr.msra.gmra.mxu0 %v5477_v47  ;;  %2266 = vmatmul.mubr.bf16.vlgmr.msra.gmra.mxu1 %v5477_v47  ;;  %v1857_v47 = vrot.slane %v1848_v44, %v7376_v39  ;;  %v1865_v39 = vrot.slane %v1848_v44, %v6429_v21 }
 0x378   :  { %2751 = vmatpush1.bf16.msra.mxu0 %v6621_v2  ;;  %2794 = vmatpush1.bf16.msra.mxu1 %v6641_v19  ;;  %v6730_v2 = vld [vmem:[#allocation8 + $0xc8] ss:$16 sps:$4 sm:$0xff]   ;;  %v6752_v19 = vld [vmem:[#allocation8 + $0x20] ss:$16 sps:$4 sm:$0xff]  }
 0x379   :  { %2752 = vmatprep.subr.bf16.mxu0 %v6625_v11  ;;  %2795 = vmatprep.subr.bf16.mxu1 %v6726_v49  ;;  %v6736_v11 = vld [vmem:[#allocation8 + $0x44] ss:$16 sps:$4 sm:$0xff]  }
 0x37c   :  { %2753 = vmatpush1.bf16.msra.mxu0 %v6627_v18  ;;  %2796 = vmatpush1.bf16.msra.mxu1 %v6730_v2  ;;  %v6738_v18 = vld [vmem:[#allocation8 + $0xac] ss:$16 sps:$4 sm:$0xff]  }
 0x37d   :  { %2754 = vmatprep.subr.bf16.mxu0 %v6631_v5  ;;  %v6740_v5 = vld [vmem:[#allocation8 + $0x40] ss:$16 sps:$4 sm:$0xff]   ;;  %2797 = vmatprep.subr.bf16.mxu1 %v6738_v18 }
 0x380   :  { %2755 = vmatpush1.bf16.msra.mxu0 %v6633_v12  ;;  %v6742_v12 = vld [vmem:[#allocation8 + $0xa8] ss:$16 sps:$4 sm:$0xff]  }
 0x381   :  { %2756 = vmatprep.subr.bf16.mxu0 %v6637_v0  ;;  %2798 = vmatpush1.bf16.msra.mxu1 %v6742_v12  ;;  %v6748_v0 = vld [vmem:[#allocation8 + $0x24] ss:$16 sps:$4 sm:$0xff]  }
 0x384   :  { %2757 = vmatpush1.bf16.msra.mxu0 %v6639_v13  ;;  %v6750_v13 = vld [vmem:[#allocation8 + $0x8c] ss:$16 sps:$4 sm:$0xff]  }
 0x385   :  { %2758 = vmatprep.subr.bf16.mxu0 %v6724_v14  ;;  %2799 = vmatprep.subr.bf16.mxu1 %v6750_v13 }
 0x386   :  { %2800 = vmatpush1.bf16.msra.mxu1 %v6754_v51 }
 0x387   :  { %2801 = vmatprep.subr.bf16.mxu1 %v6762_v53 }
 0x388   :  { %2759 = vmatpush1.bf16.msra.mxu0 %v6728_v50 }
 0x389   :  { %2760 = vmatprep.subr.bf16.mxu0 %v6736_v11 }
 0x38a   :  { %2802 = vmatpush1.bf16.msra.mxu1 %v6766_v55 }
 0x38b   :  { %2803 = vmatprep.subr.bf16.mxu1 %v6774_v57 }
 0x38c   :  { %2761 = vmatpush1.bf16.msra.mxu0 %v6740_v5 }
 0x38d   :  { %2762 = vmatprep.subr.bf16.mxu0 %v6748_v0 }
 0x38e   :  { %2804 = vmatpush1.bf16.msra.mxu1 %v6778_v59 }
 0x38f   :  { %2805 = vmatprep.subr.bf16.mxu1 %v6786_v62 }
 0x390   :  { %2763 = vmatpush1.bf16.msra.mxu0 %v6752_v19 }
 0x391   :  { %2764 = vmatprep.subr.bf16.mxu0 %v6760_v52 }
 0x392   :  { %2806 = vmatpush1.bf16.msra.mxu1 %v6790_v7 }
 0x393   :  { %2807 = vmatprep.subr.bf16.mxu1 %v6798_v3 }
 0x394   :  { %2765 = vmatpush1.bf16.msra.mxu0 %v6764_v54 }
 0x395   :  { %2766 = vmatprep.subr.bf16.mxu0 %v6772_v56 }
 0x396   :  { %2808 = vmatpush1.bf16.msra.mxu1 %v6802_v1 }
 0x397   :  { %2809 = vmatprep.subr.bf16.mxu1 %v6810_v15 }
 0x398   :  { %2767 = vmatpush2.bf16.msra.mxu0 %v6776_v58 }
 0x399   :  { %2768 = vmatprep.subr.bf16.mxu0 %v6784_v61 }
 0x39a   :  { %2810 = vmatpush2.bf16.msra.mxu1 %v6814_v16 }
 0x39b   :  { %2811 = vmatprep.subr.bf16.mxu1 %v6826_v10 }
 0x39c   :  { %2769 = vmatpush2.bf16.msra.mxu0 %v6788_v63 }
 0x39d   :  { %2770 = vmatprep.subr.bf16.mxu0 %v6796_v17 }
 0x39e   :  { %2812 = vmatpush2.bf16.msra.mxu1 %v6824_v6 }
 0x39f   :  { %2813 = vmatprep.subr.bf16.mxu1 %v6831_v22 }
 0x3a0   :  { %2771 = vmatpush2.bf16.msra.mxu0 %v6800_v60 }
 0x3a1   :  { %2772 = vmatprep.subr.bf16.mxu0 %v6808_v45 }
 0x3a2   :  { %2814 = vmatpush2.bf16.msra.mxu1 %v6838_v25 }
 0x3a3   :  { %2815 = vmatprep.subr.bf16.mxu1 %v6844_v27 }
 0x3a4   :  { %2773 = vmatpush2.bf16.msra.mxu0 %v6812_v43 }
 0x3a5   :  { %2774 = vmatprep.subr.bf16.mxu0 %v6822_v42 }
 0x3a6   :  { %2816 = vmatpush2.bf16.msra.mxu1 %v6850_v28 }
 0x3a7   :  { %2817 = vmatprep.subr.bf16.mxu1 %v6856_v30 }
 0x3a8   :  { %2775 = vmatpush2.bf16.msra.mxu0 %v6820_v8 }
 0x3a9   :  { %2776 = vmatprep.subr.bf16.mxu0 %v6828_v20 }
 0x3aa   :  { %2818 = vmatpush2.bf16.msra.mxu1 %v6862_v33 }
 0x3ab   :  { %2819 = vmatprep.subr.bf16.mxu1 %v6868_v34 }
 0x3ac   :  { %2777 = vmatpush2.bf16.msra.mxu0 %v6836_v23 }
 0x3ad   :  { %2778 = vmatprep.subr.bf16.mxu0 %v6842_v26 }
 0x3ae   :  { %2820 = vmatpush2.bf16.msra.mxu1 %v6870_v35 }
 0x3af   :  { %2821 = vmatprep.subr.bf16.mxu1 %v6873_v4 }
 0x3b0   :  { %2779 = vmatpush2.bf16.msra.mxu0 %v6848_v9 }
 0x3b1   :  { %2780 = vmatprep.subr.bf16.mxu0 %v6854_v29 }
 0x3b2   :  { %2822 = vmatpush2.bf16.msra.mxu1 %v6876_v38 }
 0x3b3   :  { %2823 = vmatprep.subr.bf16.mxu1 %v6879_v40 }
 0x3b4   :  { %2781 = vmatpush2.bf16.msra.mxu0 %v6860_v32 }
 0x3b6   :  { %2824 = vmatpush2.bf16.msra.mxu1 %v6882_v41 }
 0x437   :  { %v2224_v48 = vpop.f32.mrf.mxu0  ;;  %v2267_v35 = vpop.f32.mrf.mxu1 }
 0x438   :  { %v2225_v4 = vadd.f32 %v2224_v48, %v1853_v46  ;;  %v1861_v48 = vrot.slane %v1848_v44, %v6431_v24 }
 0x439   :  { %v2226_v34 = vpop.f32.mrf.mxu0  ;;  %v2269_v29 = vpop.f32.mrf.mxu1 }
 0x43a   :  { %v4913_v33 = vmul.f32 -1.442695, %v2225_v4  ;;  %v2227_v38 = vadd.f32 %v2226_v34, %v1857_v47  ;;  %v2270_v4 = vadd.f32 %v2269_v29, %v1865_v39  ;;  %v2268_v34 = vadd.f32 %v2267_v35, %v1861_v48 }
 0x43b   :  { %v2228_v32 = vpop.f32.mrf.mxu0  ;;  %v2271_v37 = vpop.f32.mrf.mxu1 }
 0x43c   :  { %5770 = vpow2.f32 %v4913_v33  ;;  %v4915_v30 = vmul.f32 -1.442695, %v2227_v38  ;;  %v2229_v40 = vadd.f32 %v2228_v32, %v1853_v46  ;;  %v4917_v38 = vmul.f32 -1.442695, %v2270_v4 }
 0x43d   :  { %v2230_v41 = vpop.f32.mrf.mxu0  ;;  %v2273_v26 = vpop.f32.mrf.mxu1 }
 0x43e   :  { %5772 = vpow2.f32 %v4915_v30  ;;  %v4914_v28 = vmul.f32 -1.442695, %v2229_v40  ;;  %v2231_v9 = vadd.f32 %v2230_v41, %v1857_v47  ;;  %v2274_v25 = vadd.f32 %v2273_v26, %v1865_v39 }
 0x440   :  { %5774 = vpow2.f32 %v4914_v28  ;;  %v4916_v27 = vmul.f32 -1.442695, %v2231_v9  ;;  %v4918_v30 = vmul.f32 -1.442695, %v2274_v25  ;;  %v2272_v9 = vadd.f32 %v2271_v37, %v1861_v48 }
 0x442   :  { %5776 = vpow2.f32 %v4916_v27 }
 0x443   :  { %5778 = vtanh.f32 %v2268_v34 }
 0x449   :  { %v5771_v33 = vpop.eup %5770 }
 0x44a   :  { %v2282_v32 = vadd.f32 1.0, %v5771_v33 }
 0x44b   :  { %v5773_v46 = vpop.eup %5772 }
 0x44c   :  { %5780 = vrcp.f32 %v2282_v32  ;;  %v2294_v40 = vadd.f32 1.0, %v5773_v46 }
 0x44d   :  { %v5775_v28 = vpop.eup %5774  ;;  %5782 = vpow2.f32 %v4917_v38 }
 0x44e   :  { %5784 = vrcp.f32 %v2294_v40  ;;  %v2283_v41 = vadd.f32 1.0, %v5775_v28 }
 0x44f   :  { %v5777_v27 = vpop.eup %5776  ;;  %5786 = vpow2.f32 %v4918_v30 }
 0x450   :  { %5788 = vrcp.f32 %v2283_v41  ;;  %v2295_v44 = vadd.f32 1.0, %v5777_v27  ;;  %v5779_v39 = vpop.eup %5778 }
 0x451   :  { %5790 = vtanh.f32 %v2272_v9 }
 0x452   :  { %5792 = vrcp.f32 %v2295_v44 }
 0x459   :  { %v5781_v26 = vpop.eup %5780 }
 0x45a   :  { %v5783_v29 = vpop.eup %5782  ;;  %v2316_v4 = vmul.f32 %v5781_v26, %v5779_v39  ;;  %v5550_v39 = vld [vmem:[#allocation2 + $0x20] sm:$0xff]  }
 0x45b   :  { %v5785_v35 = vpop.eup %5784  ;;  %v2308_v33 = vadd.f32 1.0, %v5783_v29  ;;  %v6903_v29 = vld [vmem:[#allocation8 + $0xe0] ss:$16 sps:$4 sm:$0xff]  }
 0x45c   :  { %v5787_v47 = vpop.eup %5786  ;;  %v2314_v25 = vmul.f32 %v5785_v35, %v6709_v31  ;;  %v6907_v35 = vld [vmem:[#allocation8 + $0xc4] ss:$16 sps:$4 sm:$0xff]  }
 0x45d   :  { %v5789_v34 = vpop.eup %5788  ;;  %v2309_v32 = vadd.f32 1.0, %v5787_v47  ;;  %5794 = vrcp.f32 %v2308_v33  ;;  %v6909_v47 = vld [vmem:[#allocation8 + $0xc0] ss:$16 sps:$4 sm:$0xff]   ;;  %v5574_v33 = vld [vmem:[#allocation8 + $0xec] ss:$16 sps:$4 sm:$0xff]  }
 0x45e   :  { %v5791_v38 = vpop.eup %5790  ;;  %v6894_v37 = vadd.f32 %v2316_v4, %v2314_v25  ;;  %v6913_v25 = vld [vmem:[#allocation8 + $0xa4] ss:$16 sps:$4 sm:$0xff]   ;;  %v6915_v4 = vld [vmem:[#allocation8 + $0xa0] ss:$16 sps:$4 sm:$0xff]   ;;  %3353 = vmatprep.subr.bf16.mxu1 %v5574_v33 }
 0x45f   :  { %v5793_v48 = vpop.eup %5792  ;;  %v2317_v30 = vmul.f32 %v5791_v38, %v5789_v34  ;;  %v6919_v34 = vld [vmem:[#allocation8 + $0x84] ss:$16 sps:$4 sm:$0xff]   ;;  %v6921_v38 = vld [vmem:[#allocation8 + $0x80] ss:$16 sps:$4 sm:$0xff]  }
 0x460   :  { %v2315_v46 = vmul.f32 %v5793_v48, %v6713_v36  ;;  %5796 = vtanh.f32 %v6894_v37  ;;  %v6901_v36 = vld [vmem:[#allocation8 + $0xe4] ss:$16 sps:$4 sm:$0xff]   ;;  %v6923_v48 = vld [vmem:[#allocation8 + $0xe8] ss:$16 sps:$4 sm:$0xff]  }
 0x461   :  { %5798 = vrcp.f32 %v2309_v32  ;;  %3310 = vmatprep.subr.bf16.mxu0 %v6901_v36 }
 0x462   :  { %v6898_v40 = vadd.f32 %v2317_v30, %v2315_v46 }
 0x464   :  { %5800 = vtanh.f32 %v6898_v40 }
 0x46a   :  { %v5795_v31 = vpop.eup %5794 }
 0x46d   :  { %v5797_v28 = vpop.eup %5796 }
 0x46e   :  { %v5799_v9 = vpop.eup %5798  ;;  %v2322_v27 = vmul.f32 %v5797_v28, %v5795_v31 }
 0x471   :  { %v5801_v41 = vpop.eup %5800 }
 0x472   :  { %v2323_v44 = vmul.f32 %v5801_v41, %v5799_v9 }
 0x474   :  { %v2324_v26 = vpack.c.bf16 %v2323_v44, %v2322_v27 }
 0x476   :  { %5248 = vst [vmem:[#allocation10 + $0x18] sm:$0xff] %v2324_v26   ;;  %2782 = vmatprep.mubr.bf16.mxu0 %v2324_v26  ;;  %2825 = vmatprep.mubr.bf16.mxu1 %v2324_v26 }
 0x477   :  { %2783 = vmatmul.mubr.bf16.vlgmr.msra.gmra.mxu0 %v5550_v39  ;;  %2826 = vmatmul.mubr.bf16.vlgmr.msra.gmra.mxu1 %v5550_v39 }
 0x478   :  { %3311 = vmatpush1.bf16.msra.mxu0 %v6903_v29  ;;  %3354 = vmatpush1.bf16.msra.mxu1 %v6923_v48 }
 0x479   :  { %3312 = vmatprep.subr.bf16.mxu0 %v6907_v35  ;;  %3355 = vmatprep.subr.bf16.mxu1 %v6726_v49  ;;  %v7393_v49 = vld [vmem:[#allocation22_spill] sm:$0xff] }
 0x47c   :  { %3313 = vmatpush1.bf16.msra.mxu0 %v6909_v47  ;;  %3356 = vmatpush1.bf16.msra.mxu1 %v6730_v2  ;;  %v7395_v2 = vld [vmem:[#allocation24_spill] sm:$0xff] }
 0x47d   :  { %3314 = vmatprep.subr.bf16.mxu0 %v6913_v25  ;;  %3357 = vmatprep.subr.bf16.mxu1 %v6738_v18  ;;  %v7397_v18 = vld [vmem:[#allocation26_spill] sm:$0xff] }
 0x480   :  { %3315 = vmatpush1.bf16.msra.mxu0 %v6915_v4  ;;  %3358 = vmatpush1.bf16.msra.mxu1 %v6742_v12  ;;  %v7399_v12 = vld [vmem:[#allocation28_spill] sm:$0xff] }
 0x481   :  { %3316 = vmatprep.subr.bf16.mxu0 %v6919_v34  ;;  %3359 = vmatprep.subr.bf16.mxu1 %v6750_v13  ;;  %v7401_v13 = vld [vmem:[#allocation30_spill] sm:$0xff] }
 0x484   :  { %3317 = vmatpush1.bf16.msra.mxu0 %v6921_v38  ;;  %3360 = vmatpush1.bf16.msra.mxu1 %v6754_v51  ;;  %v7403_v51 = vld [vmem:[#allocation32_spill] sm:$0xff] }
 0x485   :  { %3318 = vmatprep.subr.bf16.mxu0 %v6724_v14  ;;  %3361 = vmatprep.subr.bf16.mxu1 %v6762_v53  ;;  %v7392_v14 = vld [vmem:[#allocation21_spill] sm:$0xff]  ;;  %v7405_v53 = vld [vmem:[#allocation34_spill] sm:$0xff] }
 0x488   :  { %3319 = vmatpush1.bf16.msra.mxu0 %v6728_v50  ;;  %3362 = vmatpush1.bf16.msra.mxu1 %v6766_v55  ;;  %v7394_v50 = vld [vmem:[#allocation23_spill] sm:$0xff] }
 0x489   :  { %3320 = vmatprep.subr.bf16.mxu0 %v6736_v11  ;;  %3363 = vmatprep.subr.bf16.mxu1 %v6774_v57  ;;  %v7396_v11 = vld [vmem:[#allocation25_spill] sm:$0xff]  ;;  %v2408_v55 = vld [vmem:[%s7283_s4] sm:$0xf] }
 0x48c   :  { %3321 = vmatpush1.bf16.msra.mxu0 %v6740_v5  ;;  %3364 = vmatpush1.bf16.msra.mxu1 %v6778_v59  ;;  %v7398_v5 = vld [vmem:[#allocation27_spill] sm:$0xff] }
 0x48d   :  { %3322 = vmatprep.subr.bf16.mxu0 %v6748_v0  ;;  %3365 = vmatprep.subr.bf16.mxu1 %v6786_v62  ;;  %v7400_v0 = vld [vmem:[#allocation29_spill] sm:$0xff] }
 0x490   :  { %3323 = vmatpush1.bf16.msra.mxu0 %v6752_v19  ;;  %3366 = vmatpush1.bf16.msra.mxu1 %v6790_v7  ;;  %v7402_v19 = vld [vmem:[#allocation31_spill] sm:$0xff] }
 0x491   :  { %3324 = vmatprep.subr.bf16.mxu0 %v6760_v52  ;;  %3367 = vmatprep.subr.bf16.mxu1 %v6798_v3  ;;  %v7404_v52 = vld [vmem:[#allocation33_spill] sm:$0xff] }
 0x494   :  { %3325 = vmatpush1.bf16.msra.mxu0 %v6764_v54  ;;  %3368 = vmatpush1.bf16.msra.mxu1 %v6802_v1  ;;  %v7406_v54 = vld [vmem:[#allocation35_spill] sm:$0xff] }
 0x495   :  { %3326 = vmatprep.subr.bf16.mxu0 %v6772_v56  ;;  %3369 = vmatprep.subr.bf16.mxu1 %v6810_v15  ;;  %v7407_v56 = vld [vmem:[#allocation19_spill] sm:$0xff] }
 0x496   :  { %v2413_v57 = vrot.slane %v2408_v55, %v7407_v56 }
 0x498   :  { %3327 = vmatpush2.bf16.msra.mxu0 %v6776_v58  ;;  %3370 = vmatpush2.bf16.msra.mxu1 %v6814_v16  ;;  %v7408_v58 = vld [vmem:[#allocation20_spill] sm:$0xff] }
 0x499   :  { %3328 = vmatprep.subr.bf16.mxu0 %v6784_v61  ;;  %3371 = vmatprep.subr.bf16.mxu1 %v6826_v10  ;;  %v2417_v59 = vrot.slane %v2408_v55, %v7408_v58  ;;  %v2425_v10 = vrot.slane %v2408_v55, %v6429_v21 }
 0x49c   :  { %3329 = vmatpush2.bf16.msra.mxu0 %v6788_v63  ;;  %3372 = vmatpush2.bf16.msra.mxu1 %v6824_v6 }
 0x49d   :  { %3330 = vmatprep.subr.bf16.mxu0 %v6796_v17  ;;  %3373 = vmatprep.subr.bf16.mxu1 %v6831_v22 }
 0x4a0   :  { %3331 = vmatpush2.bf16.msra.mxu0 %v6800_v60  ;;  %3374 = vmatpush2.bf16.msra.mxu1 %v7392_v14 }
 0x4a1   :  { %3332 = vmatprep.subr.bf16.mxu0 %v6808_v45  ;;  %3375 = vmatprep.subr.bf16.mxu1 %v7394_v50 }
 0x4a4   :  { %3333 = vmatpush2.bf16.msra.mxu0 %v6812_v43  ;;  %3376 = vmatpush2.bf16.msra.mxu1 %v7396_v11 }
 0x4a5   :  { %3334 = vmatprep.subr.bf16.mxu0 %v6822_v42  ;;  %3377 = vmatprep.subr.bf16.mxu1 %v7398_v5 }
 0x4a8   :  { %3335 = vmatpush2.bf16.msra.mxu0 %v6820_v8  ;;  %3378 = vmatpush2.bf16.msra.mxu1 %v7400_v0 }
 0x4a9   :  { %3336 = vmatprep.subr.bf16.mxu0 %v6828_v20  ;;  %3379 = vmatprep.subr.bf16.mxu1 %v7401_v13  ;;  %v2421_v20 = vrot.slane %v2408_v55, %v6431_v24 }
 0x4ac   :  { %3337 = vmatpush2.bf16.msra.mxu0 %v6836_v23  ;;  %3380 = vmatpush2.bf16.msra.mxu1 %v7402_v19 }
 0x4ad   :  { %3338 = vmatprep.subr.bf16.mxu0 %v7393_v49  ;;  %3381 = vmatprep.subr.bf16.mxu1 %v7403_v51 }
 0x4b0   :  { %3339 = vmatpush2.bf16.msra.mxu0 %v7395_v2  ;;  %3382 = vmatpush2.bf16.msra.mxu1 %v7404_v52 }
 0x4b1   :  { %3340 = vmatprep.subr.bf16.mxu0 %v7397_v18  ;;  %3383 = vmatprep.subr.bf16.mxu1 %v7405_v53 }
 0x4b4   :  { %3341 = vmatpush2.bf16.msra.mxu0 %v7399_v12  ;;  %3384 = vmatpush2.bf16.msra.mxu1 %v7406_v54 }
 0x4b5   :  { %3870 = vmatprep.subr.bf16.mxu0 %v6901_v36  ;;  %3913 = vmatprep.subr.bf16.mxu1 %v5574_v33 }
 0x537   :  { %v2784_v61 = vpop.f32.mrf.mxu0  ;;  %v2827_v63 = vpop.f32.mrf.mxu1 }
 0x538   :  { %v2785_v62 = vadd.f32 %v2784_v61, %v2413_v57  ;;  %v2828_v32 = vadd.f32 %v2827_v63, %v2421_v20 }
 0x539   :  { %v2786_v7 = vpop.f32.mrf.mxu0  ;;  %v2829_v15 = vpop.f32.mrf.mxu1 }
 0x53a   :  { %v4986_v17 = vmul.f32 -1.442695, %v2785_v62  ;;  %v2787_v3 = vadd.f32 %v2786_v7, %v2417_v59  ;;  %v2830_v23 = vadd.f32 %v2829_v15, %v2425_v10  ;;  %v5575_v7 = vld [vmem:[#allocation2 + $0x28] sm:$0xff]  }
 0x53b   :  { %v2788_v60 = vpop.f32.mrf.mxu0  ;;  %v2831_v6 = vpop.f32.mrf.mxu1  ;;  %v7044_v15 = vld [vmem:[#allocation8 + $0x6c] ss:$16 sps:$4 sm:$0xff]  }
 0x53c   :  { %5802 = vpow2.f32 %v4986_v17  ;;  %v4988_v1 = vmul.f32 -1.442695, %v2787_v3  ;;  %v2789_v45 = vadd.f32 %v2788_v60, %v2413_v57  ;;  %v4990_v31 = vmul.f32 -1.442695, %v2830_v23  ;;  %v7008_v3 = vld [vmem:[#allocation8 + $0xcc] ss:$16 sps:$4 sm:$0xff]  }
 0x53d   :  { %v2790_v43 = vpop.f32.mrf.mxu0  ;;  %v2833_v22 = vpop.f32.mrf.mxu1  ;;  %v2832_v39 = vadd.f32 %v2831_v6, %v2421_v20  ;;  %v7010_v60 = vld [vmem:[#allocation8 + $0x60] ss:$16 sps:$4 sm:$0xff]   ;;  %v7066_v20 = vld [vmem:[#allocation8 + $0x1c4] ss:$16 sps:$4 sm:$0xff]  }
 0x53e   :  { %5804 = vpow2.f32 %v4988_v1  ;;  %v4987_v16 = vmul.f32 -1.442695, %v2789_v45  ;;  %v2791_v8 = vadd.f32 %v2790_v43, %v2417_v59  ;;  %v2834_v46 = vadd.f32 %v2833_v22, %v2425_v10  ;;  %v7036_v1 = vld [vmem:[#allocation8 + $0x88] ss:$16 sps:$4 sm:$0xff]   ;;  %v7042_v45 = vld [vmem:[#allocation8 + $0x4] ss:$16 sps:$4 sm:$0xff]  }
 0x53f   :  { %v7046_v43 = vld [vmem:[#allocation8] ss:$16 sps:$4 sm:$0xff]   ;;  %v7060_v10 = vld [vmem:[#allocation8 + $0x48] ss:$16 sps:$4 sm:$0xff]   ;;  %v7068_v22 = vld [vmem:[#allocation8 + $0x2c] ss:$16 sps:$4 sm:$0xff]  }
 0x540   :  { %5806 = vpow2.f32 %v4987_v16  ;;  %v4989_v42 = vmul.f32 -1.442695, %v2791_v8  ;;  %v4991_v41 = vmul.f32 -1.442695, %v2834_v46  ;;  %v7048_v16 = vld [vmem:[#allocation8 + $0x68] ss:$16 sps:$4 sm:$0xff]  }
 0x541   :  { %v7054_v8 = vld [vmem:[#allocation8 + $0x1e4] ss:$16 sps:$4 sm:$0xff]   ;;  %v7058_v6 = vld [vmem:[#allocation8 + $0x1e0] ss:$16 sps:$4 sm:$0xff]  }
 0x542   :  { %5808 = vpow2.f32 %v4989_v42  ;;  %v7056_v42 = vld [vmem:[#allocation8 + $0x4c] ss:$16 sps:$4 sm:$0xff]   ;;  %v7070_v23 = vld [vmem:[#allocation8 + $0x1c0] ss:$16 sps:$4 sm:$0xff]   ;;  %v7078_v46 = vld [vmem:[#allocation8 + $0x1a4] ss:$16 sps:$4 sm:$0xff]  }
 0x543   :  { %5810 = vtanh.f32 %v2828_v32  ;;  %v7072_v32 = vld [vmem:[#allocation8 + $0x28] ss:$16 sps:$4 sm:$0xff]  }
 0x549   :  { %v5803_v30 = vpop.eup %5802 }
 0x54a   :  { %v2842_v28 = vadd.f32 1.0, %v5803_v30  ;;  %v7080_v30 = vld [vmem:[#allocation8 + $0xc] ss:$16 sps:$4 sm:$0xff]  }
 0x54b   :  { %v5805_v9 = vpop.eup %5804 }
 0x54c   :  { %5812 = vrcp.f32 %v2842_v28  ;;  %v2854_v27 = vadd.f32 1.0, %v5805_v9  ;;  %v7084_v28 = vld [vmem:[#allocation8 + $0x8] ss:$16 sps:$4 sm:$0xff]   ;;  %v7090_v9 = vld [vmem:[#allocation8 + $0x184] ss:$16 sps:$4 sm:$0xff]  }
 0x54d   :  { %v5807_v44 = vpop.eup %5806  ;;  %5814 = vpow2.f32 %v4990_v31  ;;  %v7082_v31 = vld [vmem:[#allocation8 + $0x1a0] ss:$16 sps:$4 sm:$0xff]  }
 0x54e   :  { %5816 = vrcp.f32 %v2854_v27  ;;  %v2843_v26 = vadd.f32 1.0, %v5807_v44  ;;  %v7094_v27 = vld [vmem:[#allocation8 + $0x180] ss:$16 sps:$4 sm:$0xff]   ;;  %v7096_v44 = vld [vmem:[#allocation8 + $0x1e8] ss:$16 sps:$4 sm:$0xff]  }
 0x54f   :  { %v5809_v36 = vpop.eup %5808  ;;  %5818 = vpow2.f32 %v4991_v41  ;;  %v7092_v41 = vld [vmem:[#allocation8 + $0x1ec] ss:$16 sps:$4 sm:$0xff]  }
 0x550   :  { %5820 = vrcp.f32 %v2843_v26  ;;  %v2855_v33 = vadd.f32 1.0, %v5809_v36  ;;  %v5811_v14 = vpop.eup %5810  ;;  %v7104_v26 = vld [vmem:[#allocation8 + $0x164] ss:$16 sps:$4 sm:$0xff]   ;;  %v7106_v36 = vld [vmem:[#allocation8 + $0x1c8] ss:$16 sps:$4 sm:$0xff]  }
 0x551   :  { %5822 = vtanh.f32 %v2832_v39  ;;  %v7102_v39 = vld [vmem:[#allocation8 + $0x160] ss:$16 sps:$4 sm:$0xff]  }
 0x552   :  { %5824 = vrcp.f32 %v2855_v33  ;;  %v7108_v33 = vld [vmem:[#allocation8 + $0x1cc] ss:$16 sps:$4 sm:$0xff]  }
 0x559   :  { %v5813_v49 = vpop.eup %5812 }
 0x55a   :  { %v5815_v50 = vpop.eup %5814  ;;  %v2876_v5 = vmul.f32 %v5813_v49, %v5811_v14  ;;  %v7110_v14 = vld [vmem:[#allocation8 + $0x144] ss:$16 sps:$4 sm:$0xff]   ;;  %v7113_v49 = vld [vmem:[#allocation8 + $0x1ac] ss:$16 sps:$4 sm:$0xff]  }
 0x55b   :  { %v5817_v2 = vpop.eup %5816  ;;  %v2868_v0 = vadd.f32 1.0, %v5815_v50  ;;  %v7118_v50 = vld [vmem:[#allocation8 + $0x140] ss:$16 sps:$4 sm:$0xff]  }
 0x55c   :  { %v5819_v11 = vpop.eup %5818  ;;  %v2874_v18 = vmul.f32 %v5817_v2, %v6894_v37  ;;  %v7120_v2 = vld [vmem:[#allocation8 + $0x1a8] ss:$16 sps:$4 sm:$0xff]  }
 0x55d   :  { %v5821_v12 = vpop.eup %5820  ;;  %v2869_v52 = vadd.f32 1.0, %v5819_v11  ;;  %5826 = vrcp.f32 %v2868_v0  ;;  %7409 = vst [vmem:[#allocation21_spill] sm:$0xff] %v7120_v2  ;;  %v7124_v11 = vld [vmem:[#allocation8 + $0x124] ss:$16 sps:$4 sm:$0xff]  }
 0x55e   :  { %v5823_v13 = vpop.eup %5822  ;;  %v6991_v19 = vadd.f32 %v2876_v5, %v2874_v18  ;;  %7410 = vst [vmem:[#allocation22_spill] sm:$0xff] %v7124_v11  ;;  %v7126_v18 = vld [vmem:[#allocation8 + $0x18c] ss:$16 sps:$4 sm:$0xff]   ;;  %v7130_v5 = vld [vmem:[#allocation8 + $0x120] ss:$16 sps:$4 sm:$0xff]  }
 0x55f   :  { %v5825_v51 = vpop.eup %5824  ;;  %v2877_v54 = vmul.f32 %v5823_v13, %v5821_v12  ;;  %7411 = vst [vmem:[#allocation23_spill] sm:$0xff] %v7126_v18  ;;  %7412 = vst [vmem:[#allocation24_spill] sm:$0xff] %v7130_v5  ;;  %v7132_v12 = vld [vmem:[#allocation8 + $0x188] ss:$16 sps:$4 sm:$0xff]   ;;  %v7136_v0 = vld [vmem:[#allocation8 + $0x104] ss:$16 sps:$4 sm:$0xff]  }
 0x560   :  { %v2875_v53 = vmul.f32 %v5825_v51, %v6898_v40  ;;  %5828 = vtanh.f32 %v6991_v19  ;;  %v7006_v40 = vld [vmem:[#allocation8 + $0x64] ss:$16 sps:$4 sm:$0xff]   ;;  %7413 = vst [vmem:[#allocation25_spill] sm:$0xff] %v7132_v12  ;;  %7414 = vst [vmem:[#allocation26_spill] sm:$0xff] %v7136_v0  ;;  %v7138_v13 = vld [vmem:[#allocation8 + $0x16c] ss:$16 sps:$4 sm:$0xff]  }
 0x561   :  { %5830 = vrcp.f32 %v2869_v52  ;;  %7415 = vst [vmem:[#allocation27_spill] sm:$0xff] %v7138_v13  ;;  %v7142_v51 = vld [vmem:[#allocation8 + $0x100] ss:$16 sps:$4 sm:$0xff]   ;;  %v7144_v52 = vld [vmem:[#allocation8 + $0x168] ss:$16 sps:$4 sm:$0xff]  }
 0x562   :  { %v6995_v55 = vadd.f32 %v2877_v54, %v2875_v53  ;;  %7416 = vst [vmem:[#allocation28_spill] sm:$0xff] %v7142_v51  ;;  %7417 = vst [vmem:[#allocation29_spill] sm:$0xff] %v7144_v52  ;;  %v7150_v53 = vld [vmem:[#allocation8 + $0x14c] ss:$16 sps:$4 sm:$0xff]   ;;  %v7152_v54 = vld [vmem:[#allocation8 + $0x148] ss:$16 sps:$4 sm:$0xff]  }
 0x563   :  { %7418 = vst [vmem:[#allocation30_spill] sm:$0xff] %v7150_v53  ;;  %7419 = vst [vmem:[#allocation31_spill] sm:$0xff] %v7152_v54 }
 0x564   :  { %5832 = vtanh.f32 %v6995_v55 }
 0x56a   :  { %v5827_v37 = vpop.eup %5826 }
 0x56d   :  { %v5829_v57 = vpop.eup %5828 }
 0x56e   :  { %v5831_v59 = vpop.eup %5830  ;;  %v2882_v62 = vmul.f32 %v5829_v57, %v5827_v37  ;;  %v7155_v37 = vld [vmem:[#allocation8 + $0x12c] ss:$16 sps:$4 sm:$0xff]   ;;  %v7158_v57 = vld [vmem:[#allocation8 + $0x128] ss:$16 sps:$4 sm:$0xff]  }
 0x56f   :  { %7420 = vst [vmem:[#allocation32_spill] sm:$0xff] %v7155_v37  ;;  %7421 = vst [vmem:[#allocation33_spill] sm:$0xff] %v7158_v57 }
 0x571   :  { %v5833_v61 = vpop.eup %5832 }
 0x572   :  { %v2883_v63 = vmul.f32 %v5833_v61, %v5831_v59  ;;  %v7161_v59 = vld [vmem:[#allocation8 + $0x10c] ss:$16 sps:$4 sm:$0xff]   ;;  %v7164_v61 = vld [vmem:[#allocation8 + $0x108] ss:$16 sps:$4 sm:$0xff]  }
 0x573   :  { %7422 = vst [vmem:[#allocation34_spill] sm:$0xff] %v7161_v59  ;;  %7423 = vst [vmem:[#allocation35_spill] sm:$0xff] %v7164_v61 }
 0x574   :  { %v2884_v17 = vpack.c.bf16 %v2883_v63, %v2882_v62  ;;  %v2968_v62 = vld [vmem:[%s7283_s4] sm:$0xf] }
 0x575   :  { %v2973_v63 = vrot.slane %v2968_v62, %v7407_v56 }
 0x576   :  { %5253 = vst [vmem:[#allocation10 + $0x20] sm:$0xff] %v2884_v17   ;;  %3342 = vmatprep.mubr.bf16.mxu0 %v2884_v17  ;;  %3385 = vmatprep.mubr.bf16.mxu1 %v2884_v17 }
 0x577   :  { %3343 = vmatmul.mubr.bf16.vlgmr.msra.gmra.mxu0 %v5575_v7  ;;  %3386 = vmatmul.mubr.bf16.vlgmr.msra.gmra.mxu1 %v5575_v7  ;;  %v2977_v7 = vrot.slane %v2968_v62, %v7408_v58  ;;  %v2985_v58 = vrot.slane %v2968_v62, %v6429_v21 }
 0x578   :  { %3871 = vmatpush1.bf16.msra.mxu0 %v6903_v29  ;;  %3914 = vmatpush1.bf16.msra.mxu1 %v6923_v48  ;;  %v7012_v29 = vld [vmem:[#allocation8 + $0xc8] ss:$16 sps:$4 sm:$0xff]   ;;  %v7034_v48 = vld [vmem:[#allocation8 + $0x20] ss:$16 sps:$4 sm:$0xff]  }
 0x579   :  { %3872 = vmatprep.subr.bf16.mxu0 %v6907_v35  ;;  %3915 = vmatprep.subr.bf16.mxu1 %v7008_v3  ;;  %v7018_v35 = vld [vmem:[#allocation8 + $0x44] ss:$16 sps:$4 sm:$0xff]  }
 0x57c   :  { %3873 = vmatpush1.bf16.msra.mxu0 %v6909_v47  ;;  %3916 = vmatpush1.bf16.msra.mxu1 %v7012_v29  ;;  %v7020_v47 = vld [vmem:[#allocation8 + $0xac] ss:$16 sps:$4 sm:$0xff]  }
 0x57d   :  { %3874 = vmatprep.subr.bf16.mxu0 %v6913_v25  ;;  %v7022_v25 = vld [vmem:[#allocation8 + $0x40] ss:$16 sps:$4 sm:$0xff]   ;;  %3917 = vmatprep.subr.bf16.mxu1 %v7020_v47 }
 0x580   :  { %3875 = vmatpush1.bf16.msra.mxu0 %v6915_v4  ;;  %v7024_v4 = vld [vmem:[#allocation8 + $0xa8] ss:$16 sps:$4 sm:$0xff]  }
 0x581   :  { %3876 = vmatprep.subr.bf16.mxu0 %v6919_v34  ;;  %3918 = vmatpush1.bf16.msra.mxu1 %v7024_v4  ;;  %v7030_v34 = vld [vmem:[#allocation8 + $0x24] ss:$16 sps:$4 sm:$0xff]  }
 0x584   :  { %3877 = vmatpush1.bf16.msra.mxu0 %v6921_v38  ;;  %v7032_v38 = vld [vmem:[#allocation8 + $0x8c] ss:$16 sps:$4 sm:$0xff]  }
 0x585   :  { %3878 = vmatprep.subr.bf16.mxu0 %v7006_v40  ;;  %3919 = vmatprep.subr.bf16.mxu1 %v7032_v38 }
 0x586   :  { %3920 = vmatpush1.bf16.msra.mxu1 %v7036_v1 }
 0x587   :  { %3921 = vmatprep.subr.bf16.mxu1 %v7044_v15 }
 0x588   :  { %3879 = vmatpush1.bf16.msra.mxu0 %v7010_v60 }
 0x589   :  { %3880 = vmatprep.subr.bf16.mxu0 %v7018_v35 }
 0x58a   :  { %3922 = vmatpush1.bf16.msra.mxu1 %v7048_v16 }
 0x58b   :  { %3923 = vmatprep.subr.bf16.mxu1 %v7056_v42 }
 0x58c   :  { %3881 = vmatpush1.bf16.msra.mxu0 %v7022_v25 }
 0x58d   :  { %3882 = vmatprep.subr.bf16.mxu0 %v7030_v34 }
 0x58e   :  { %3924 = vmatpush1.bf16.msra.mxu1 %v7060_v10 }
 0x58f   :  { %3925 = vmatprep.subr.bf16.mxu1 %v7068_v22 }
 0x590   :  { %3883 = vmatpush1.bf16.msra.mxu0 %v7034_v48 }
 0x591   :  { %3884 = vmatprep.subr.bf16.mxu0 %v7042_v45 }
 0x592   :  { %3926 = vmatpush1.bf16.msra.mxu1 %v7072_v32 }
 0x593   :  { %3927 = vmatprep.subr.bf16.mxu1 %v7080_v30 }
 0x594   :  { %3885 = vmatpush1.bf16.msra.mxu0 %v7046_v43 }
 0x595   :  { %3886 = vmatprep.subr.bf16.mxu0 %v7054_v8 }
 0x596   :  { %3928 = vmatpush1.bf16.msra.mxu1 %v7084_v28 }
 0x597   :  { %3929 = vmatprep.subr.bf16.mxu1 %v7092_v41 }
 0x598   :  { %3887 = vmatpush2.bf16.msra.mxu0 %v7058_v6 }
 0x599   :  { %3888 = vmatprep.subr.bf16.mxu0 %v7066_v20 }
 0x59a   :  { %3930 = vmatpush2.bf16.msra.mxu1 %v7096_v44 }
 0x59b   :  { %3931 = vmatprep.subr.bf16.mxu1 %v7108_v33 }
 0x59c   :  { %3889 = vmatpush2.bf16.msra.mxu0 %v7070_v23 }
 0x59d   :  { %3890 = vmatprep.subr.bf16.mxu0 %v7078_v46 }
 0x59e   :  { %3932 = vmatpush2.bf16.msra.mxu1 %v7106_v36 }
 0x59f   :  { %3933 = vmatprep.subr.bf16.mxu1 %v7113_v49 }
 0x5a0   :  { %3891 = vmatpush2.bf16.msra.mxu0 %v7082_v31 }
 0x5a1   :  { %3892 = vmatprep.subr.bf16.mxu0 %v7090_v9 }
 0x5a2   :  { %3934 = vmatpush2.bf16.msra.mxu1 %v7120_v2 }
 0x5a3   :  { %3935 = vmatprep.subr.bf16.mxu1 %v7126_v18 }
 0x5a4   :  { %3893 = vmatpush2.bf16.msra.mxu0 %v7094_v27 }
 0x5a5   :  { %3894 = vmatprep.subr.bf16.mxu0 %v7104_v26 }
 0x5a6   :  { %3936 = vmatpush2.bf16.msra.mxu1 %v7132_v12 }
 0x5a7   :  { %3937 = vmatprep.subr.bf16.mxu1 %v7138_v13 }
 0x5a8   :  { %3895 = vmatpush2.bf16.msra.mxu0 %v7102_v39 }
 0x5a9   :  { %3896 = vmatprep.subr.bf16.mxu0 %v7110_v14 }
 0x5aa   :  { %3938 = vmatpush2.bf16.msra.mxu1 %v7144_v52 }
 0x5ab   :  { %3939 = vmatprep.subr.bf16.mxu1 %v7150_v53 }
 0x5ac   :  { %3897 = vmatpush2.bf16.msra.mxu0 %v7118_v50 }
 0x5ad   :  { %3898 = vmatprep.subr.bf16.mxu0 %v7124_v11 }
 0x5ae   :  { %3940 = vmatpush2.bf16.msra.mxu1 %v7152_v54 }
 0x5af   :  { %3941 = vmatprep.subr.bf16.mxu1 %v7155_v37 }
 0x5b0   :  { %3899 = vmatpush2.bf16.msra.mxu0 %v7130_v5 }
 0x5b1   :  { %3900 = vmatprep.subr.bf16.mxu0 %v7136_v0 }
 0x5b2   :  { %3942 = vmatpush2.bf16.msra.mxu1 %v7158_v57 }
 0x5b3   :  { %3943 = vmatprep.subr.bf16.mxu1 %v7161_v59 }
 0x5b4   :  { %3901 = vmatpush2.bf16.msra.mxu0 %v7142_v51 }
 0x5b6   :  { %3944 = vmatpush2.bf16.msra.mxu1 %v7164_v61 }
 0x637   :  { %v3344_v17 = vpop.f32.mrf.mxu0  ;;  %v3387_v54 = vpop.f32.mrf.mxu1 }
 0x638   :  { %v3345_v37 = vadd.f32 %v3344_v17, %v2973_v63  ;;  %v2981_v17 = vrot.slane %v2968_v62, %v6431_v24 }
 0x639   :  { %v3346_v53 = vpop.f32.mrf.mxu0  ;;  %v3389_v0 = vpop.f32.mrf.mxu1 }
 0x63a   :  { %v5059_v52 = vmul.f32 -1.442695, %v3345_v37  ;;  %v3347_v57 = vadd.f32 %v3346_v53, %v2977_v7  ;;  %v3390_v37 = vadd.f32 %v3389_v0, %v2985_v58  ;;  %v3388_v53 = vadd.f32 %v3387_v54, %v2981_v17 }
 0x63b   :  { %v3348_v51 = vpop.f32.mrf.mxu0  ;;  %v3391_v56 = vpop.f32.mrf.mxu1 }
 0x63c   :  { %5834 = vpow2.f32 %v5059_v52  ;;  %v5061_v13 = vmul.f32 -1.442695, %v3347_v57  ;;  %v3349_v59 = vadd.f32 %v3348_v51, %v2973_v63  ;;  %v5063_v57 = vmul.f32 -1.442695, %v3390_v37 }
 0x63d   :  { %v3350_v61 = vpop.f32.mrf.mxu0  ;;  %v3393_v11 = vpop.f32.mrf.mxu1 }
 0x63e   :  { %5836 = vpow2.f32 %v5061_v13  ;;  %v5060_v12 = vmul.f32 -1.442695, %v3349_v59  ;;  %v3351_v5 = vadd.f32 %v3350_v61, %v2977_v7  ;;  %v3394_v2 = vadd.f32 %v3393_v11, %v2985_v58 }
 0x640   :  { %5838 = vpow2.f32 %v5060_v12  ;;  %v5062_v18 = vmul.f32 -1.442695, %v3351_v5  ;;  %v5064_v13 = vmul.f32 -1.442695, %v3394_v2  ;;  %v3392_v5 = vadd.f32 %v3391_v56, %v2981_v17 }
 0x642   :  { %5840 = vpow2.f32 %v5062_v18 }
 0x643   :  { %5842 = vtanh.f32 %v3388_v53 }
 0x649   :  { %v5835_v52 = vpop.eup %5834 }
 0x64a   :  { %v3402_v51 = vadd.f32 1.0, %v5835_v52 }
 0x64b   :  { %v5837_v63 = vpop.eup %5836 }
 0x64c   :  { %5844 = vrcp.f32 %v3402_v51  ;;  %v3414_v59 = vadd.f32 1.0, %v5837_v63 }
 0x64d   :  { %v5839_v12 = vpop.eup %5838  ;;  %5846 = vpow2.f32 %v5063_v57 }
 0x64e   :  { %5848 = vrcp.f32 %v3414_v59  ;;  %v3403_v61 = vadd.f32 1.0, %v5839_v12 }
 0x64f   :  { %v5841_v18 = vpop.eup %5840  ;;  %5850 = vpow2.f32 %v5064_v13 }
 0x650   :  { %5852 = vrcp.f32 %v3403_v61  ;;  %v3415_v62 = vadd.f32 1.0, %v5841_v18  ;;  %v5843_v58 = vpop.eup %5842 }
 0x651   :  { %5854 = vtanh.f32 %v3392_v5 }
 0x652   :  { %5856 = vrcp.f32 %v3415_v62 }
 0x659   :  { %v5845_v11 = vpop.eup %5844 }
 0x65a   :  { %v5847_v0 = vpop.eup %5846  ;;  %v3436_v37 = vmul.f32 %v5845_v11, %v5843_v58  ;;  %v5648_v58 = vld [vmem:[#allocation2 + $0x30] sm:$0xff]  }
 0x65b   :  { %v5849_v54 = vpop.eup %5848  ;;  %v3428_v52 = vadd.f32 1.0, %v5847_v0  ;;  %v5658_v0 = vld [vmem:[#allocation8 + $0xe0] ss:$16 sps:$4 sm:$0xff]  }
 0x65c   :  { %v5851_v7 = vpop.eup %5850  ;;  %v3434_v2 = vmul.f32 %v5849_v54, %v6991_v19  ;;  %v5663_v54 = vld [vmem:[#allocation8 + $0xc4] ss:$16 sps:$4 sm:$0xff]  }
 0x65d   :  { %v5853_v53 = vpop.eup %5852  ;;  %v3429_v51 = vadd.f32 1.0, %v5851_v7  ;;  %5858 = vrcp.f32 %v3428_v52  ;;  %v5661_v7 = vld [vmem:[#allocation8 + $0xc0] ss:$16 sps:$4 sm:$0xff]   ;;  %v5672_v52 = vld [vmem:[#allocation8 + $0xec] ss:$16 sps:$4 sm:$0xff]  }
 0x65e   :  { %v5855_v57 = vpop.eup %5854  ;;  %v7176_v56 = vadd.f32 %v3436_v37, %v3434_v2  ;;  %v5666_v2 = vld [vmem:[#allocation8 + $0xa4] ss:$16 sps:$4 sm:$0xff]   ;;  %v5664_v37 = vld [vmem:[#allocation8 + $0xa0] ss:$16 sps:$4 sm:$0xff]   ;;  %4473 = vmatprep.subr.bf16.mxu1 %v5672_v52 }
 0x65f   :  { %v5857_v17 = vpop.eup %5856  ;;  %v3437_v13 = vmul.f32 %v5855_v57, %v5853_v53  ;;  %v5669_v53 = vld [vmem:[#allocation8 + $0x84] ss:$16 sps:$4 sm:$0xff]   ;;  %v5667_v57 = vld [vmem:[#allocation8 + $0x80] ss:$16 sps:$4 sm:$0xff]  }
 0x660   :  { %v3435_v63 = vmul.f32 %v5857_v17, %v6995_v55  ;;  %5860 = vtanh.f32 %v7176_v56  ;;  %v5660_v55 = vld [vmem:[#allocation8 + $0xe4] ss:$16 sps:$4 sm:$0xff]   ;;  %v5670_v17 = vld [vmem:[#allocation8 + $0xe8] ss:$16 sps:$4 sm:$0xff]  }
 0x661   :  { %5862 = vrcp.f32 %v3429_v51  ;;  %4430 = vmatprep.subr.bf16.mxu0 %v5660_v55 }
 0x662   :  { %v7180_v59 = vadd.f32 %v3437_v13, %v3435_v63 }
 0x664   :  { %5864 = vtanh.f32 %v7180_v59 }
 0x66a   :  { %v5859_v19 = vpop.eup %5858 }
 0x66d   :  { %v5861_v12 = vpop.eup %5860 }
 0x66e   :  { %v5863_v5 = vpop.eup %5862  ;;  %v3442_v18 = vmul.f32 %v5861_v12, %v5859_v19 }
 0x671   :  { %v5865_v61 = vpop.eup %5864 }
 0x672   :  { %v3443_v62 = vmul.f32 %v5865_v61, %v5863_v5 }
 0x674   :  { %v3444_v11 = vpack.c.bf16 %v3443_v62, %v3442_v18 }
 0x676   :  { %5258 = vst [vmem:[#allocation10 + $0x28] sm:$0xff] %v3444_v11   ;;  %3902 = vmatprep.mubr.bf16.mxu0 %v3444_v11  ;;  %3945 = vmatprep.mubr.bf16.mxu1 %v3444_v11 }
 0x677   :  { %3903 = vmatmul.mubr.bf16.vlgmr.msra.gmra.mxu0 %v5648_v58  ;;  %3946 = vmatmul.mubr.bf16.vlgmr.msra.gmra.mxu1 %v5648_v58 }
 0x678   :  { %4431 = vmatpush1.bf16.msra.mxu0 %v5658_v0  ;;  %4474 = vmatpush1.bf16.msra.mxu1 %v5670_v17 }
 0x679   :  { %4432 = vmatprep.subr.bf16.mxu0 %v5663_v54  ;;  %4475 = vmatprep.subr.bf16.mxu1 %v7008_v3  ;;  %v7425_v3 = vld [vmem:[#allocation22_spill] sm:$0xff] }
 0x67c   :  { %4433 = vmatpush1.bf16.msra.mxu0 %v5661_v7  ;;  %4476 = vmatpush1.bf16.msra.mxu1 %v7012_v29  ;;  %v7427_v29 = vld [vmem:[#allocation24_spill] sm:$0xff] }
 0x67d   :  { %4434 = vmatprep.subr.bf16.mxu0 %v5666_v2  ;;  %4477 = vmatprep.subr.bf16.mxu1 %v7020_v47  ;;  %v7429_v47 = vld [vmem:[#allocation26_spill] sm:$0xff] }
 0x680   :  { %4435 = vmatpush1.bf16.msra.mxu0 %v5664_v37  ;;  %4478 = vmatpush1.bf16.msra.mxu1 %v7024_v4  ;;  %v7431_v4 = vld [vmem:[#allocation28_spill] sm:$0xff] }
 0x681   :  { %4436 = vmatprep.subr.bf16.mxu0 %v5669_v53  ;;  %4479 = vmatprep.subr.bf16.mxu1 %v7032_v38  ;;  %v7433_v38 = vld [vmem:[#allocation30_spill] sm:$0xff] }
 0x684   :  { %4437 = vmatpush1.bf16.msra.mxu0 %v5667_v57  ;;  %4480 = vmatpush1.bf16.msra.mxu1 %v7036_v1  ;;  %v7435_v1 = vld [vmem:[#allocation32_spill] sm:$0xff] }
 0x685   :  { %4438 = vmatprep.subr.bf16.mxu0 %v7006_v40  ;;  %4481 = vmatprep.subr.bf16.mxu1 %v7044_v15  ;;  %v7424_v40 = vld [vmem:[#allocation21_spill] sm:$0xff]  ;;  %v7437_v15 = vld [vmem:[#allocation34_spill] sm:$0xff] }
 0x688   :  { %4439 = vmatpush1.bf16.msra.mxu0 %v7010_v60  ;;  %4482 = vmatpush1.bf16.msra.mxu1 %v7048_v16  ;;  %v7426_v60 = vld [vmem:[#allocation23_spill] sm:$0xff] }
 0x689   :  { %4440 = vmatprep.subr.bf16.mxu0 %v7018_v35  ;;  %4483 = vmatprep.subr.bf16.mxu1 %v7056_v42  ;;  %v7428_v35 = vld [vmem:[#allocation25_spill] sm:$0xff]  ;;  %v3528_v16 = vld [vmem:[%s7283_s4] sm:$0xf] }
 0x68c   :  { %4441 = vmatpush1.bf16.msra.mxu0 %v7022_v25  ;;  %4484 = vmatpush1.bf16.msra.mxu1 %v7060_v10  ;;  %v7430_v25 = vld [vmem:[#allocation27_spill] sm:$0xff] }
 0x68d   :  { %4442 = vmatprep.subr.bf16.mxu0 %v7030_v34  ;;  %4485 = vmatprep.subr.bf16.mxu1 %v7068_v22  ;;  %v7432_v34 = vld [vmem:[#allocation29_spill] sm:$0xff] }
 0x690   :  { %4443 = vmatpush1.bf16.msra.mxu0 %v7034_v48  ;;  %4486 = vmatpush1.bf16.msra.mxu1 %v7072_v32  ;;  %v7434_v48 = vld [vmem:[#allocation31_spill] sm:$0xff] }
 0x691   :  { %4444 = vmatprep.subr.bf16.mxu0 %v7042_v45  ;;  %4487 = vmatprep.subr.bf16.mxu1 %v7080_v30  ;;  %v7436_v45 = vld [vmem:[#allocation33_spill] sm:$0xff] }
 0x694   :  { %4445 = vmatpush1.bf16.msra.mxu0 %v7046_v43  ;;  %4488 = vmatpush1.bf16.msra.mxu1 %v7084_v28  ;;  %v7438_v43 = vld [vmem:[#allocation35_spill] sm:$0xff] }
 0x695   :  { %4446 = vmatprep.subr.bf16.mxu0 %v7054_v8  ;;  %4489 = vmatprep.subr.bf16.mxu1 %v7092_v41  ;;  %v7439_v8 = vld [vmem:[#allocation19_spill] sm:$0xff] }
 0x696   :  { %v3533_v42 = vrot.slane %v3528_v16, %v7439_v8 }
 0x698   :  { %4447 = vmatpush2.bf16.msra.mxu0 %v7058_v6  ;;  %4490 = vmatpush2.bf16.msra.mxu1 %v7096_v44  ;;  %v7440_v6 = vld [vmem:[#allocation20_spill] sm:$0xff] }
 0x699   :  { %4448 = vmatprep.subr.bf16.mxu0 %v7066_v20  ;;  %4491 = vmatprep.subr.bf16.mxu1 %v7108_v33  ;;  %v3537_v10 = vrot.slane %v3528_v16, %v7440_v6  ;;  %v3545_v33 = vrot.slane %v3528_v16, %v6429_v21 }
 0x69c   :  { %4449 = vmatpush2.bf16.msra.mxu0 %v7070_v23  ;;  %4492 = vmatpush2.bf16.msra.mxu1 %v7106_v36 }
 0x69d   :  { %4450 = vmatprep.subr.bf16.mxu0 %v7078_v46  ;;  %4493 = vmatprep.subr.bf16.mxu1 %v7113_v49 }
 0x6a0   :  { %4451 = vmatpush2.bf16.msra.mxu0 %v7082_v31  ;;  %4494 = vmatpush2.bf16.msra.mxu1 %v7424_v40 }
 0x6a1   :  { %4452 = vmatprep.subr.bf16.mxu0 %v7090_v9  ;;  %4495 = vmatprep.subr.bf16.mxu1 %v7426_v60 }
 0x6a4   :  { %4453 = vmatpush2.bf16.msra.mxu0 %v7094_v27  ;;  %4496 = vmatpush2.bf16.msra.mxu1 %v7428_v35 }
 0x6a5   :  { %4454 = vmatprep.subr.bf16.mxu0 %v7104_v26  ;;  %4497 = vmatprep.subr.bf16.mxu1 %v7430_v25 }
 0x6a8   :  { %4455 = vmatpush2.bf16.msra.mxu0 %v7102_v39  ;;  %4498 = vmatpush2.bf16.msra.mxu1 %v7432_v34 }
 0x6a9   :  { %4456 = vmatprep.subr.bf16.mxu0 %v7110_v14  ;;  %4499 = vmatprep.subr.bf16.mxu1 %v7433_v38  ;;  %v3541_v14 = vrot.slane %v3528_v16, %v6431_v24 }
 0x6ac   :  { %4457 = vmatpush2.bf16.msra.mxu0 %v7118_v50  ;;  %4500 = vmatpush2.bf16.msra.mxu1 %v7434_v48 }
 0x6ad   :  { %4458 = vmatprep.subr.bf16.mxu0 %v7425_v3  ;;  %4501 = vmatprep.subr.bf16.mxu1 %v7435_v1 }
 0x6b0   :  { %4459 = vmatpush2.bf16.msra.mxu0 %v7427_v29  ;;  %4502 = vmatpush2.bf16.msra.mxu1 %v7436_v45 }
 0x6b1   :  { %4460 = vmatprep.subr.bf16.mxu0 %v7429_v47  ;;  %4503 = vmatprep.subr.bf16.mxu1 %v7437_v15  ;;  %v5673_v15 = vld [vmem:[#allocation2 + $0x38] sm:$0xff]  }
 0x6b4   :  { %4461 = vmatpush2.bf16.msra.mxu0 %v7431_v4  ;;  %4504 = vmatpush2.bf16.msra.mxu1 %v7438_v43 }
 0x737   :  { %v3904_v20 = vpop.f32.mrf.mxu0  ;;  %v3947_v23 = vpop.f32.mrf.mxu1 }
 0x738   :  { %v3905_v22 = vadd.f32 %v3904_v20, %v3533_v42  ;;  %v3948_v51 = vadd.f32 %v3947_v23, %v3541_v14 }
 0x739   :  { %v3906_v32 = vpop.f32.mrf.mxu0  ;;  %v3949_v41 = vpop.f32.mrf.mxu1 }
 0x73a   :  { %v5132_v46 = vmul.f32 -1.442695, %v3905_v22  ;;  %v3907_v30 = vadd.f32 %v3906_v32, %v3537_v10  ;;  %v3950_v50 = vadd.f32 %v3949_v41, %v3545_v33 }
 0x73b   :  { %v3908_v31 = vpop.f32.mrf.mxu0  ;;  %v3951_v36 = vpop.f32.mrf.mxu1 }
 0x73c   :  { %5866 = vpow2.f32 %v5132_v46  ;;  %v5134_v28 = vmul.f32 -1.442695, %v3907_v30  ;;  %v3909_v9 = vadd.f32 %v3908_v31, %v3533_v42  ;;  %v5136_v19 = vmul.f32 -1.442695, %v3950_v50 }
 0x73d   :  { %v3910_v27 = vpop.f32.mrf.mxu0  ;;  %v3953_v49 = vpop.f32.mrf.mxu1  ;;  %v3952_v58 = vadd.f32 %v3951_v36, %v3541_v14 }
 0x73e   :  { %5868 = vpow2.f32 %v5134_v28  ;;  %v5133_v44 = vmul.f32 -1.442695, %v3909_v9  ;;  %v3911_v39 = vadd.f32 %v3910_v27, %v3537_v10  ;;  %v3954_v63 = vadd.f32 %v3953_v49, %v3545_v33 }
 0x740   :  { %5870 = vpow2.f32 %v5133_v44  ;;  %v5135_v26 = vmul.f32 -1.442695, %v3911_v39  ;;  %v5137_v61 = vmul.f32 -1.442695, %v3954_v63 }
 0x742   :  { %5872 = vpow2.f32 %v5135_v26 }
 0x743   :  { %5874 = vtanh.f32 %v3948_v51 }
 0x749   :  { %v5867_v13 = vpop.eup %5866 }
 0x74a   :  { %v3962_v12 = vadd.f32 1.0, %v5867_v13 }
 0x74b   :  { %v5869_v5 = vpop.eup %5868 }
 0x74c   :  { %5876 = vrcp.f32 %v3962_v12  ;;  %v3974_v18 = vadd.f32 1.0, %v5869_v5 }
 0x74d   :  { %v5871_v62 = vpop.eup %5870  ;;  %5878 = vpow2.f32 %v5136_v19 }
 0x74e   :  { %5880 = vrcp.f32 %v3974_v18  ;;  %v3963_v11 = vadd.f32 1.0, %v5871_v62 }
 0x74f   :  { %v5873_v55 = vpop.eup %5872  ;;  %5882 = vpow2.f32 %v5137_v61 }
 0x750   :  { %5884 = vrcp.f32 %v3963_v11  ;;  %v3975_v0 = vadd.f32 1.0, %v5873_v55  ;;  %v5875_v54 = vpop.eup %5874 }
 0x751   :  { %5886 = vtanh.f32 %v3952_v58 }
 0x752   :  { %5888 = vrcp.f32 %v3975_v0 }
 0x759   :  { %v5877_v7 = vpop.eup %5876 }
 0x75a   :  { %v5879_v2 = vpop.eup %5878  ;;  %v3996_v57 = vmul.f32 %v5877_v7, %v5875_v54 }
 0x75b   :  { %v5881_v37 = vpop.eup %5880  ;;  %v3988_v40 = vadd.f32 1.0, %v5879_v2 }
 0x75c   :  { %v5883_v53 = vpop.eup %5882  ;;  %v3994_v52 = vmul.f32 %v5881_v37, %v7176_v56 }
 0x75d   :  { %v5885_v17 = vpop.eup %5884  ;;  %v3989_v35 = vadd.f32 1.0, %v5883_v53  ;;  %5890 = vrcp.f32 %v3988_v40 }
 0x75e   :  { %v5887_v3 = vpop.eup %5886  ;;  %v7245_v60 = vadd.f32 %v3996_v57, %v3994_v52 }
 0x75f   :  { %v5889_v29 = vpop.eup %5888  ;;  %v3997_v25 = vmul.f32 %v5887_v3, %v5885_v17 }
 0x760   :  { %v3995_v47 = vmul.f32 %v5889_v29, %v7180_v59  ;;  %5892 = vtanh.f32 %v7245_v60  ;;  %v4088_v59 = vld [vmem:[%s7283_s4] sm:$0xf]  ;;  %s6099_s4 = smov [#allocation11]  }
 0x761   :  { %5894 = vrcp.f32 %v3989_v35  ;;  %v4093_v16 = vrot.slane %v4088_v59, %v7439_v8  ;;  %v4097_v42 = vrot.slane %v4088_v59, %v7440_v6  ;;  %v4105_v39 = vrot.slane %v4088_v59, %v6429_v21  ;;  %s4596_s19 = sshll.u32 %s6099_s4, 4  ;;  %s4597_s19 = int_to_ptr.vmem [resolvable:$true] %s4596_s19 }
 0x762   :  { %v7249_v4 = vadd.f32 %v3997_v25, %v3995_v47  ;;  %v4101_v26 = vrot.slane %v4088_v59, %v6431_v24  ;;  %s6019_s23 = scalar_lea.vmem %s4597_s19, 256  ;;  %p6024_p7 = scmp.lt.s32.totalorder %s4597_s19, %s4597_s19 }
 0x763   :  { %p6020_p6 = scmp.ne.s32.totalorder %s4597_s19, %s6019_s23  ;;  %p6025_p8 = scmp.lt.s32.totalorder %s6019_s23, %s6019_s23 }
 0x764   :  { %5896 = vtanh.f32 %v7249_v4 }
 0x765   :  { %p6026_p9 = por %p6025_p8, %p6024_p7 }
 0x767   :  { %p6027_p10 = pnand %p6026_p9, %p6020_p6 }
 0x76a   :  { %v5891_v56 = vpop.eup %5890 }
 0x76d   :  { %v5893_v34 = vpop.eup %5892 }
 0x76e   :  { %v5895_v38 = vpop.eup %5894  ;;  %v4002_v1 = vmul.f32 %v5893_v34, %v5891_v56 }
 0x771   :  { %v5897_v48 = vpop.eup %5896 }
 0x772   :  { %v4003_v45 = vmul.f32 %v5897_v48, %v5895_v38 }
 0x774   :  { %v4004_v43 = vpack.c.bf16 %v4003_v45, %v4002_v1 }
 0x776   :  { %5263 = vst [vmem:[#allocation10 + $0x30] sm:$0xff] %v4004_v43   ;;  %4462 = vmatprep.mubr.bf16.mxu0 %v4004_v43  ;;  %4505 = vmatprep.mubr.bf16.mxu1 %v4004_v43 }
 0x777   :  { %4463 = vmatmul.mubr.bf16.vlgmr.msra.gmra.mxu0 %v5673_v15  ;;  %4506 = vmatmul.mubr.bf16.vlgmr.msra.gmra.mxu1 %v5673_v15 }
 0x837   :  { %v4464_v10 = vpop.f32.mrf.mxu0  ;;  %v4507_v22 = vpop.f32.mrf.mxu1 }
 0x838   :  { %v4465_v20 = vadd.f32 %v4464_v10, %v4093_v16  ;;  %v4508_v14 = vadd.f32 %v4507_v22, %v4101_v26 }
 0x839   :  { %v4466_v23 = vpop.f32.mrf.mxu0  ;;  %v4509_v9 = vpop.f32.mrf.mxu1 }
 0x83a   :  { %v5205_v32 = vmul.f32 -1.442695, %v4465_v20  ;;  %v4467_v46 = vadd.f32 %v4466_v23, %v4097_v42  ;;  %v4510_v36 = vadd.f32 %v4509_v9, %v4105_v39 }
 0x83b   :  { %v4468_v30 = vpop.f32.mrf.mxu0  ;;  %v4511_v6 = vpop.f32.mrf.mxu1 }
 0x83c   :  { %5898 = vpow2.f32 %v5205_v32  ;;  %v5207_v31 = vmul.f32 -1.442695, %v4467_v46  ;;  %v4469_v28 = vadd.f32 %v4468_v30, %v4093_v16  ;;  %v5209_v49 = vmul.f32 -1.442695, %v4510_v36 }
 0x83d   :  { %v4470_v41 = vpop.f32.mrf.mxu0  ;;  %v4513_v33 = vpop.f32.mrf.mxu1  ;;  %v4512_v5 = vadd.f32 %v4511_v6, %v4101_v26 }
 0x83e   :  { %5900 = vpow2.f32 %v5207_v31  ;;  %v5206_v27 = vmul.f32 -1.442695, %v4469_v28  ;;  %v4471_v44 = vadd.f32 %v4470_v41, %v4097_v42  ;;  %v4514_v50 = vadd.f32 %v4513_v33, %v4105_v39 }
 0x840   :  { %5902 = vpow2.f32 %v5206_v27  ;;  %v5208_v8 = vmul.f32 -1.442695, %v4471_v44  ;;  %v5210_v19 = vmul.f32 -1.442695, %v4514_v50 }
 0x842   :  { %5904 = vpow2.f32 %v5208_v8 }
 0x843   :  { %5906 = vtanh.f32 %v4508_v14 }
 0x844   :  { %5908 = vpow2.f32 %v5209_v49 }
 0x849   :  { %v5899_v51 = vpop.eup %5898 }
 0x84a   :  { %v4522_v63 = vadd.f32 1.0, %v5899_v51 }
 0x84b   :  { %v5901_v13 = vpop.eup %5900 }
 0x84c   :  { %5910 = vrcp.f32 %v4522_v63  ;;  %v4534_v12 = vadd.f32 1.0, %v5901_v13 }
 0x84d   :  { %v5903_v21 = vpop.eup %5902 }
 0x84e   :  { %5912 = vrcp.f32 %v4534_v12  ;;  %v4523_v61 = vadd.f32 1.0, %v5903_v21 }
 0x84f   :  { %v5905_v18 = vpop.eup %5904  ;;  %5914 = vpow2.f32 %v5210_v19 }
 0x850   :  { %5916 = vrcp.f32 %v4523_v61  ;;  %v4535_v24 = vadd.f32 1.0, %v5905_v18  ;;  %v5907_v62 = vpop.eup %5906 }
 0x851   :  { %5918 = vtanh.f32 %v4512_v5  ;;  %v5909_v58 = vpop.eup %5908 }
 0x852   :  { %5920 = vrcp.f32 %v4535_v24  ;;  %v4548_v0 = vadd.f32 1.0, %v5909_v58 }
 0x854   :  { %5922 = vrcp.f32 %v4548_v0 }
 0x859   :  { %v5911_v11 = vpop.eup %5910 }
 0x85a   :  { %v4556_v2 = vmul.f32 %v5911_v11, %v5907_v62 }
 0x85b   :  { %v5913_v55 = vpop.eup %5912 }
 0x85c   :  { %v5915_v54 = vpop.eup %5914  ;;  %v4554_v7 = vmul.f32 %v5913_v55, %v7245_v60 }
 0x85d   :  { %v5917_v37 = vpop.eup %5916  ;;  %v4549_v17 = vadd.f32 1.0, %v5915_v54 }
 0x85e   :  { %v5919_v53 = vpop.eup %5918  ;;  %v4558_v52 = vadd.f32 %v4556_v2, %v4554_v7 }
 0x85f   :  { %v5921_v57 = vpop.eup %5920  ;;  %v4557_v3 = vmul.f32 %v5919_v53, %v5917_v37 }
 0x860   :  { %5924 = vtanh.f32 %v4558_v52  ;;  %4577 = vst [vmem:[#allocation13] sm:$0xff] %v4558_v52  ;;  %v4555_v40 = vmul.f32 %v5921_v57, %v7249_v4 }
 0x861   :  { %5926 = vrcp.f32 %v4549_v17  ;;  %v5923_v35 = vpop.eup %5922 }
 0x862   :  { %v4559_v29 = vadd.f32 %v4557_v3, %v4555_v40 }
 0x864   :  { %5928 = vtanh.f32 %v4559_v29  ;;  %4578 = vst [vmem:[#allocation13 + $0x8] sm:$0xff] %v4559_v29 }
 0x86d   :  { %v5925_v47 = vpop.eup %5924 }
 0x86e   :  { %v4562_v25 = vmul.f32 %v5925_v47, %v5923_v35  ;;  %v5927_v60 = vpop.eup %5926 }
 0x870   :  { %4575 = vst [vmem:[#allocation11] sm:$0xff] %v4562_v25 }
 0x871   :  { %v5929_v56 = vpop.eup %5928 }
 0x872   :  { %v4563_v34 = vmul.f32 %v5929_v56, %v5927_v60 }
 0x874   :  { %v5267_v4 = vpack.c.bf16 %v4563_v34, %v4562_v25  ;;  %4576 = vst [vmem:[#allocation11 + $0x8] sm:$0xff] %v4563_v34 }
 0x875   :  { %6030 = shalt.err (!%p6027_p10)
}
 0x876   :  { %4602 = dma.vmem_to_hbm [thread:$0]  %s4597_s19, 256, %s7285_s6, [#allocation12], %s6090_s27, %s6090_s27, %s6091_s28   ;;  %5268 = vst [vmem:[#allocation10 + $0x38] sm:$0xff] %v5267_v4  }
 0x877   :  { %s6039_s3 = scalar_lea.vmem %s4609_s0, 256  ;;  %p6044_p12 = scmp.lt.s32.totalorder %s4609_s0, %s4609_s0 }
 0x878   :  { %p6040_p11 = scmp.ne.s32.totalorder %s4609_s0, %s6039_s3  ;;  %p6045_p13 = scmp.lt.s32.totalorder %s6039_s3, %s6039_s3 }
 0x87a   :  { %p6046_p0 = por %p6045_p13, %p6044_p12 }
 0x87c   :  { %p6047_p1 = pnand %p6046_p0, %p6040_p11 }
 0x87e   :  { %6050 = shalt.err (!%p6047_p1)
}
 0x87f   :  { %4614 = dma.vmem_to_hbm [thread:$0]  %s4609_s0, 256, %s7286_s7, [#allocation12], %s6090_s27, %s6090_s27, %s6091_s28  }
 0x880   :  { %s6059_s29 = scalar_lea.vmem %s4585_s22, 1024  ;;  %p6064_p3 = scmp.lt.s32.totalorder %s4585_s22, %s4585_s22 }
 0x881   :  { %p6060_p2 = scmp.ne.s32.totalorder %s4585_s22, %s6059_s29  ;;  %p6065_p4 = scmp.lt.s32.totalorder %s6059_s29, %s6059_s29 }
 0x883   :  { %p6066_p5 = por %p6065_p4, %p6064_p3 }
 0x885   :  { %p6067_p6 = pnand %p6066_p5, %p6060_p2 }
 0x887   :  { %6070 = shalt.err (!%p6067_p6)
}
 0x888   :  { %4590 = dma.vmem_to_hbm [thread:$0]  %s4585_s22, 1024, %s7284_s5, [#allocation4], %s6093_s11, %s6093_s11, %s6094_s12  }
 0x889   :  { %6085 = dma.done.wait [#allocation4], 1024  }
 0x88a   :  { %6086 = vsyncadd [#allocation4], 4294966272 }
 0x88b   :  { %6087 = dma.done.wait [#allocation12], 512  }
 0x88c   :  { %6088 = vsyncadd [#allocation12], 4294966784 }
 0x88d   :  { %4624 = vsyncpa [#allocation3], 1 }
 0x88e   :  { %4625 = vsyncpa [#allocation6], 1 }
 0x88f   :  { %4626 = vsyncpa [#allocation9], 1 }
 0x890   :  { %4627 = vsyncpa [#allocation4], 1 }
 0x891   :  { %4628 = vsyncpa [#allocation12], 1 }

</bundles_post_ra>
